<compile_context>
chip_gen: v6e
topology: v6e:2x2x1
jax: 0.10.0
libtpu: 0.0.40
codegen_flags: <defaults>
</compile_context>

<pallas_src>
import math

import jax
import jax.numpy as jnp
from jax import lax
from jax.experimental import pallas as pl
from jax.experimental.pallas import tpu as pltpu

# ----------------------- small ViT config -----------------------------------
BATCH = 2
CHANNELS = 3
IMAGE = 16
PATCH = 4
NUM_PATCHES = (IMAGE // PATCH) ** 2          # 16
SEQ = NUM_PATCHES + 1                        # +1 CLS token -> 17
SEQ_P = 24                                   # padded to a multiple of 8 sublanes
HIDDEN = 32
NUM_HEADS = 4
HEAD_DIM = HIDDEN // NUM_HEADS               # 8
MLP_DIM = 64
NUM_LAYERS = 2
NUM_LABELS = 2
LN_EPS = 1e-12                               # HF ViT layer_norm_eps
PATCH_DIM = CHANNELS * PATCH * PATCH         # 48


# ----------------------- in-kernel helpers (values, not refs) ----------------
def _layernorm(x, g, b):
    mu = jnp.mean(x, axis=-1, keepdims=True)
    var = jnp.mean(jnp.square(x - mu), axis=-1, keepdims=True)
    return (x - mu) * lax.rsqrt(var + LN_EPS) * g + b


def _gelu_exact(x):
    # Exact erf-GELU, matching HF ViT (gelu, not gelu_new).
    return 0.5 * x * (1.0 + lax.erf(x * (1.0 / math.sqrt(2.0))))


def _dot(a, b):
    # bf16 MXU inputs, f32 accumulation.
    return jnp.dot(a.astype(jnp.bfloat16), b.astype(jnp.bfloat16),
                   preferred_element_type=jnp.float32)


# ----------------------- fused whole-model kernel ----------------------------
def _vit_kernel(
    patches_ref, patch_w_ref, patch_b_ref, embed_ref,
    ln1_g_ref, ln1_b_ref, qkv_w_ref, qkv_b_ref, o_w_ref, o_b_ref,
    ln2_g_ref, ln2_b_ref, fc1_w_ref, fc1_b_ref, fc2_w_ref, fc2_b_ref,
    lnf_g_ref, lnf_b_ref, cls_w_ref, cls_b_ref,
    logits_ref,
):
    f32 = jnp.float32
    scale = 1.0 / math.sqrt(HEAD_DIM)

    # ---- patch embedding (one batch element per grid program) ----
    patches = patches_ref[0]                                     # (NUM_PATCHES, PATCH_DIM)
    proj = _dot(patches, patch_w_ref[...]) + patch_b_ref[...]    # (NUM_PATCHES, HIDDEN)

    # Padded token sequence: row 0 = CLS slot (embed table carries cls+pos),
    # rows 1..SEQ-1 = patches (+pos), rows SEQ..SEQ_P-1 = zero padding.
    x = jnp.concatenate(
        [jnp.zeros((1, HIDDEN), f32),
         proj,
         jnp.zeros((SEQ_P - SEQ, HIDDEN), f32)],
        axis=0,
    ) + embed_ref[...]                                           # (SEQ_P, HIDDEN)

    # Attention key-padding mask (columns >= SEQ are padding).
    col_ids = lax.broadcasted_iota(jnp.int32, (SEQ_P, SEQ_P), 1)
    key_mask = col_ids < SEQ

    for l in range(NUM_LAYERS):                                  # static unroll (2)
        # --- self-attention block (pre-LN) ---
        resid = x
        xn = _layernorm(x, ln1_g_ref[l], ln1_b_ref[l])
        qkv = _dot(xn, qkv_w_ref[l]) + qkv_b_ref[l]              # (SEQ_P, 3*HIDDEN)

        heads = []
        for h in range(NUM_HEADS):                               # static unroll (4)
            lo = h * HEAD_DIM
            q = qkv[:, lo:lo + HEAD_DIM]
            k = qkv[:, HIDDEN + lo:HIDDEN + lo + HEAD_DIM]
            v = qkv[:, 2 * HIDDEN + lo:2 * HIDDEN + lo + HEAD_DIM]
            s = lax.dot_general(
                q.astype(jnp.bfloat16), k.astype(jnp.bfloat16),
                (((1,), (1,)), ((), ())),
                preferred_element_type=f32) * scale              # (SEQ_P, SEQ_P)
            s = jnp.where(key_mask, s, -1e30)
            s = s - jnp.max(s, axis=-1, keepdims=True)
            p = jnp.exp(s)
            p = p * pl.reciprocal(jnp.sum(p, axis=-1, keepdims=True), approx=True)
            heads.append(_dot(p, v))                             # (SEQ_P, HEAD_DIM)
        attn = jnp.concatenate(heads, axis=-1)                   # (SEQ_P, HIDDEN)
        x = resid + _dot(attn, o_w_ref[l]) + o_b_ref[l]

        # --- MLP block (pre-LN) ---
        resid = x
        xn = _layernorm(x, ln2_g_ref[l], ln2_b_ref[l])
        hdn = _gelu_exact(_dot(xn, fc1_w_ref[l]) + fc1_b_ref[l]) # (SEQ_P, MLP_DIM)
        x = resid + _dot(hdn, fc2_w_ref[l]) + fc2_b_ref[l]

    # final encoder layernorm, CLS token, classifier head (dropout = identity).
    x = _layernorm(x, lnf_g_ref[...], lnf_b_ref[...])
    cls_tok = x[0:1, :]                                          # (1, HIDDEN)
    logits = _dot(cls_tok, cls_w_ref[...]) + cls_b_ref[...]      # (1, NUM_LABELS)
    logits_ref[...] = logits.reshape(1, 1, NUM_LABELS)


# ----------------------- parameter init (deterministic, synthetic) ----------
def init_params(key):
    bf16 = jnp.bfloat16

    def nrm(k, shape, scale=0.02, dtype=jnp.float32):
        return (scale * jax.random.normal(k, shape, dtype=jnp.float32)).astype(dtype)

    keys = jax.random.split(key, 16)
    it = iter(keys)

    patch_w = nrm(next(it), (PATCH_DIM, HIDDEN), dtype=bf16)
    patch_b = nrm(next(it), (1, HIDDEN))
    cls_token = nrm(next(it), (HIDDEN,))
    pos_embed = nrm(next(it), (SEQ, HIDDEN))
    # fold cls token + positional embedding into one padded additive table
    embed = jnp.zeros((SEQ_P, HIDDEN), jnp.float32)
    embed = embed.at[0].set(cls_token + pos_embed[0])
    embed = embed.at[1:SEQ].set(pos_embed[1:])

    return dict(
        patch_w=patch_w, patch_b=patch_b, embed=embed,
        ln1_g=jnp.ones((NUM_LAYERS, 1, HIDDEN), jnp.float32),
        ln1_b=jnp.zeros((NUM_LAYERS, 1, HIDDEN), jnp.float32),
        qkv_w=nrm(next(it), (NUM_LAYERS, HIDDEN, 3 * HIDDEN), dtype=bf16),
        qkv_b=nrm(next(it), (NUM_LAYERS, 1, 3 * HIDDEN)),
        o_w=nrm(next(it), (NUM_LAYERS, HIDDEN, HIDDEN), dtype=bf16),
        o_b=nrm(next(it), (NUM_LAYERS, 1, HIDDEN)),
        ln2_g=jnp.ones((NUM_LAYERS, 1, HIDDEN), jnp.float32),
        ln2_b=jnp.zeros((NUM_LAYERS, 1, HIDDEN), jnp.float32),
        fc1_w=nrm(next(it), (NUM_LAYERS, HIDDEN, MLP_DIM), dtype=bf16),
        fc1_b=nrm(next(it), (NUM_LAYERS, 1, MLP_DIM)),
        fc2_w=nrm(next(it), (NUM_LAYERS, MLP_DIM, HIDDEN), dtype=bf16),
        fc2_b=nrm(next(it), (NUM_LAYERS, 1, HIDDEN)),
        lnf_g=jnp.ones((1, HIDDEN), jnp.float32),
        lnf_b=jnp.zeros((1, HIDDEN), jnp.float32),
        cls_w=nrm(next(it), (HIDDEN, NUM_LABELS), dtype=bf16),
        cls_b=nrm(next(it), (1, NUM_LABELS)),
    )


# ----------------------- forward pass ----------------------------------------
def vit_forward(params, pixel_values):
    B, C, H, W = pixel_values.shape
    P = PATCH
    nH, nW = H // P, W // P

    # Patch extraction (single XLA layout op): NCHW -> (B, num_patches, C*P*P)
    # in Conv2d weight-flattening order (C, kh, kw).
    # TODO(synk): could be folded into the kernel's index_map; negligible here.
    patches = pixel_values.reshape(B, C, nH, P, nW, P)
    patches = patches.transpose(0, 2, 4, 1, 3, 5).reshape(B, nH * nW, C * P * P)

    def full_spec(arr):
        nd = arr.ndim
        return pl.BlockSpec(arr.shape, lambda b, nd=nd: (0,) * nd)

    flops_per_item = 2 * (
        NUM_PATCHES * PATCH_DIM * HIDDEN
        + NUM_LAYERS * (
            SEQ_P * HIDDEN * 3 * HIDDEN
            + NUM_HEADS * 2 * SEQ_P * SEQ_P * HEAD_DIM
            + SEQ_P * HIDDEN * HIDDEN
            + 2 * SEQ_P * HIDDEN * MLP_DIM
        )
        + HIDDEN * NUM_LABELS
    )
    cost = pl.CostEstimate(
        flops=B * flops_per_item,
        transcendentals=B * NUM_LAYERS * (NUM_HEADS * SEQ_P * SEQ_P + SEQ_P * MLP_DIM),
        bytes_accessed=4 * B * (NUM_PATCHES * PATCH_DIM + NUM_LABELS) + 64 * 1024,
    )

    logits3 = pl.pallas_call(
        _vit_kernel,
        out_shape=jax.ShapeDtypeStruct((B, 1, NUM_LABELS), jnp.float32),
        grid=(B,),
        in_specs=[
            pl.BlockSpec((1, NUM_PATCHES, PATCH_DIM), lambda b: (b, 0, 0)),
            full_spec(params["patch_w"]),
            full_spec(params["patch_b"]),
            full_spec(params["embed"]),
            full_spec(params["ln1_g"]),
            full_spec(params["ln1_b"]),
            full_spec(params["qkv_w"]),
            full_spec(params["qkv_b"]),
            full_spec(params["o_w"]),
            full_spec(params["o_b"]),
            full_spec(params["ln2_g"]),
            full_spec(params["ln2_b"]),
            full_spec(params["fc1_w"]),
            full_spec(params["fc1_b"]),
            full_spec(params["fc2_w"]),
            full_spec(params["fc2_b"]),
            full_spec(params["lnf_g"]),
            full_spec(params["lnf_b"]),
            full_spec(params["cls_w"]),
            full_spec(params["cls_b"]),
        ],
        out_specs=pl.BlockSpec((1, 1, NUM_LABELS), lambda b: (b, 0, 0)),
        compiler_params=pltpu.CompilerParams(
            dimension_semantics=("parallel",)),
        cost_estimate=cost,
    )(
        patches,
        params["patch_w"], params["patch_b"], params["embed"],
        params["ln1_g"], params["ln1_b"], params["qkv_w"], params["qkv_b"],
        params["o_w"], params["o_b"], params["ln2_g"], params["ln2_b"],
        params["fc1_w"], params["fc1_b"], params["fc2_w"], params["fc2_b"],
        params["lnf_g"], params["lnf_b"], params["cls_w"], params["cls_b"],
    )
    return logits3[:, 0, :]                                      # (B, NUM_LABELS)


# ----------------------- main -------------------------------------------------
if __name__ == "__main__":
    key = jax.random.PRNGKey(0)
    k_params, k_input = jax.random.split(key)

    params = init_params(k_params)
    pixel_values = jax.random.normal(
        k_input, (BATCH, CHANNELS, IMAGE, IMAGE), dtype=jnp.float32
    )

    logits = jax.jit(vit_forward)(params, pixel_values)
    logits = jax.block_until_ready(logits)

    assert logits.shape == (BATCH, NUM_LABELS)
    assert bool(jnp.all(jnp.isfinite(logits)))
    print("KERNEL_OK")
</pallas_src>

<mosaic_0001>
module attributes {stable_mosaic.version = 11 : i64} {
  func.func @_vit_kernel(%arg0: i32, %arg1: memref<1x16x48xf32, #tpu.memory_space<vmem>>, %arg2: memref<48x32xbf16, #tpu.memory_space<vmem>>, %arg3: memref<1x32xf32, #tpu.memory_space<vmem>>, %arg4: memref<24x32xf32, #tpu.memory_space<vmem>>, %arg5: memref<2x1x32xf32, #tpu.memory_space<vmem>>, %arg6: memref<2x1x32xf32, #tpu.memory_space<vmem>>, %arg7: memref<2x32x96xbf16, #tpu.memory_space<vmem>>, %arg8: memref<2x1x96xf32, #tpu.memory_space<vmem>>, %arg9: memref<2x32x32xbf16, #tpu.memory_space<vmem>>, %arg10: memref<2x1x32xf32, #tpu.memory_space<vmem>>, %arg11: memref<2x1x32xf32, #tpu.memory_space<vmem>>, %arg12: memref<2x1x32xf32, #tpu.memory_space<vmem>>, %arg13: memref<2x32x64xbf16, #tpu.memory_space<vmem>>, %arg14: memref<2x1x64xf32, #tpu.memory_space<vmem>>, %arg15: memref<2x64x32xbf16, #tpu.memory_space<vmem>>, %arg16: memref<2x1x32xf32, #tpu.memory_space<vmem>>, %arg17: memref<1x32xf32, #tpu.memory_space<vmem>>, %arg18: memref<1x32xf32, #tpu.memory_space<vmem>>, %arg19: memref<32x2xbf16, #tpu.memory_space<vmem>>, %arg20: memref<1x2xf32, #tpu.memory_space<vmem>>, %arg21: memref<1x1x2xf32, #tpu.memory_space<vmem>>) attributes {dimension_semantics = [#tpu.dimension_semantics<parallel>], iteration_bounds = array<i64: 2>, scalar_prefetch = 0 : i64, scratch_operands = 0 : i64, tpu.core_type = #tpu.core_type<tc>, window_params = [{transform_indices = @transform_0, window_bounds = array<i64: 1, 16, 48>}, {pipeline_mode = #tpu.pipeline_mode<synchronous>, transform_indices = @transform_1, window_bounds = array<i64: 48, 32>}, {pipeline_mode = #tpu.pipeline_mode<synchronous>, transform_indices = @transform_2, window_bounds = array<i64: 1, 32>}, {pipeline_mode = #tpu.pipeline_mode<synchronous>, transform_indices = @transform_3, window_bounds = array<i64: 24, 32>}, {pipeline_mode = #tpu.pipeline_mode<synchronous>, transform_indices = @transform_4, window_bounds = array<i64: 2, 1, 32>}, {pipeline_mode = #tpu.pipeline_mode<synchronous>, transform_indices = @transform_5, window_bounds = array<i64: 2, 1, 32>}, {pipeline_mode = #tpu.pipeline_mode<synchronous>, transform_indices = @transform_6, window_bounds = array<i64: 2, 32, 96>}, {pipeline_mode = #tpu.pipeline_mode<synchronous>, transform_indices = @transform_7, window_bounds = array<i64: 2, 1, 96>}, {pipeline_mode = #tpu.pipeline_mode<synchronous>, transform_indices = @transform_8, window_bounds = array<i64: 2, 32, 32>}, {pipeline_mode = #tpu.pipeline_mode<synchronous>, transform_indices = @transform_9, window_bounds = array<i64: 2, 1, 32>}, {pipeline_mode = #tpu.pipeline_mode<synchronous>, transform_indices = @transform_10, window_bounds = array<i64: 2, 1, 32>}, {pipeline_mode = #tpu.pipeline_mode<synchronous>, transform_indices = @transform_11, window_bounds = array<i64: 2, 1, 32>}, {pipeline_mode = #tpu.pipeline_mode<synchronous>, transform_indices = @transform_12, window_bounds = array<i64: 2, 32, 64>}, {pipeline_mode = #tpu.pipeline_mode<synchronous>, transform_indices = @transform_13, window_bounds = array<i64: 2, 1, 64>}, {pipeline_mode = #tpu.pipeline_mode<synchronous>, transform_indices = @transform_14, window_bounds = array<i64: 2, 64, 32>}, {pipeline_mode = #tpu.pipeline_mode<synchronous>, transform_indices = @transform_15, window_bounds = array<i64: 2, 1, 32>}, {pipeline_mode = #tpu.pipeline_mode<synchronous>, transform_indices = @transform_16, window_bounds = array<i64: 1, 32>}, {pipeline_mode = #tpu.pipeline_mode<synchronous>, transform_indices = @transform_17, window_bounds = array<i64: 1, 32>}, {pipeline_mode = #tpu.pipeline_mode<synchronous>, transform_indices = @transform_18, window_bounds = array<i64: 32, 2>}, {pipeline_mode = #tpu.pipeline_mode<synchronous>, transform_indices = @transform_19, window_bounds = array<i64: 1, 2>}, {transform_indices = @transform_20, window_bounds = array<i64: 1, 1, 2>}]} {
    %c0 = arith.constant 0 : index
    %c0_0 = arith.constant 0 : index
    %c0_1 = arith.constant 0 : index
    %0 = vector.load %arg1[%c0, %c0_0, %c0_1] : memref<1x16x48xf32, #tpu.memory_space<vmem>>, vector<1x16x48xf32>
    %1 = vector.shape_cast %0 : vector<1x16x48xf32> to vector<16x48xf32>
    %c0_2 = arith.constant 0 : index
    %c0_3 = arith.constant 0 : index
    %2 = vector.load %arg2[%c0_2, %c0_3] : memref<48x32xbf16, #tpu.memory_space<vmem>>, vector<48x32xbf16>
    %3 = arith.truncf %1 : vector<16x48xf32> to vector<16x48xbf16>
    %cst = arith.constant dense<0.000000e+00> : vector<16x32xf32>
    %4 = tpu.matmul %3, %2, %cst {dimension_numbers = #tpu.dot_dimension_numbers<[1], [0], [0], [1], [0, 0, 1, 1], [], []>} : vector<16x48xbf16>, vector<48x32xbf16>, vector<16x32xf32> -> vector<16x32xf32>
    %c0_4 = arith.constant 0 : index
    %c0_5 = arith.constant 0 : index
    %5 = vector.load %arg3[%c0_4, %c0_5] : memref<1x32xf32, #tpu.memory_space<vmem>>, vector<1x32xf32>
    %6 = vector.broadcast %5 : vector<1x32xf32> to vector<16x32xf32>
    %7 = arith.addf %4, %6 : vector<16x32xf32>
    %cst_6 = arith.constant 0.000000e+00 : f32
    %8 = vector.broadcast %cst_6 : f32 to vector<1x32xf32>
    %cst_7 = arith.constant 0.000000e+00 : f32
    %9 = vector.broadcast %cst_7 : f32 to vector<7x32xf32>
    %10 = tpu.concatenate %8, %7, %9 in 0 : vector<1x32xf32>, vector<16x32xf32>, vector<7x32xf32> -> vector<24x32xf32>
    %c0_8 = arith.constant 0 : index
    %c0_9 = arith.constant 0 : index
    %11 = vector.load %arg4[%c0_8, %c0_9] : memref<24x32xf32, #tpu.memory_space<vmem>>, vector<24x32xf32>
    %12 = arith.addf %10, %11 : vector<24x32xf32>
    %13 = tpu.iota {dimensions = array<i32: 1>} : vector<24x24xi32>
    %c17_i32 = arith.constant 17 : i32
    %14 = vector.broadcast %c17_i32 : i32 to vector<24x24xi32>
    %15 = arith.cmpi slt, %13, %14 : vector<24x24xi32>
    %c0_10 = arith.constant 0 : index
    %c0_11 = arith.constant 0 : index
    %c0_12 = arith.constant 0 : index
    %16 = vector.load %arg5[%c0_10, %c0_11, %c0_12] : memref<2x1x32xf32, #tpu.memory_space<vmem>>, vector<1x1x32xf32>
    %17 = vector.shape_cast %16 : vector<1x1x32xf32> to vector<1x32xf32>
    %c0_13 = arith.constant 0 : index
    %c0_14 = arith.constant 0 : index
    %c0_15 = arith.constant 0 : index
    %18 = vector.load %arg6[%c0_13, %c0_14, %c0_15] : memref<2x1x32xf32, #tpu.memory_space<vmem>>, vector<1x1x32xf32>
    %19 = vector.shape_cast %18 : vector<1x1x32xf32> to vector<1x32xf32>
    %cst_16 = arith.constant dense<0.000000e+00> : vector<24xf32>
    %20 = vector.multi_reduction <add>, %12, %cst_16 [1] : vector<24x32xf32> to vector<24xf32>
    %21 = vector.shape_cast %20 : vector<24xf32> to vector<24x1xf32>
    %cst_17 = arith.constant 3.200000e+01 : f32
    %22 = vector.broadcast %cst_17 : f32 to vector<24x1xf32>
    %23 = arith.divf %21, %22 : vector<24x1xf32>
    %24 = vector.broadcast %23 : vector<24x1xf32> to vector<24x32xf32>
    %25 = arith.subf %12, %24 : vector<24x32xf32>
    %26 = arith.mulf %25, %25 : vector<24x32xf32>
    %cst_18 = arith.constant dense<0.000000e+00> : vector<24xf32>
    %27 = vector.multi_reduction <add>, %26, %cst_18 [1] : vector<24x32xf32> to vector<24xf32>
    %28 = vector.shape_cast %27 : vector<24xf32> to vector<24x1xf32>
    %cst_19 = arith.constant 3.200000e+01 : f32
    %29 = vector.broadcast %cst_19 : f32 to vector<24x1xf32>
    %30 = arith.divf %28, %29 : vector<24x1xf32>
    %31 = vector.broadcast %23 : vector<24x1xf32> to vector<24x32xf32>
    %32 = arith.subf %12, %31 : vector<24x32xf32>
    %cst_20 = arith.constant 9.99999996E-13 : f32
    %33 = vector.broadcast %cst_20 : f32 to vector<24x1xf32>
    %34 = arith.addf %30, %33 : vector<24x1xf32>
    %35 = math.rsqrt %34 : vector<24x1xf32>
    %36 = vector.broadcast %35 : vector<24x1xf32> to vector<24x32xf32>
    %37 = arith.mulf %32, %36 : vector<24x32xf32>
    %38 = vector.broadcast %17 : vector<1x32xf32> to vector<24x32xf32>
    %39 = arith.mulf %37, %38 : vector<24x32xf32>
    %40 = vector.broadcast %19 : vector<1x32xf32> to vector<24x32xf32>
    %41 = arith.addf %39, %40 : vector<24x32xf32>
    %c0_21 = arith.constant 0 : index
    %c0_22 = arith.constant 0 : index
    %c0_23 = arith.constant 0 : index
    %42 = vector.load %arg7[%c0_21, %c0_22, %c0_23] : memref<2x32x96xbf16, #tpu.memory_space<vmem>>, vector<1x32x96xbf16>
    %43 = vector.shape_cast %42 : vector<1x32x96xbf16> to vector<32x96xbf16>
    %44 = arith.truncf %41 : vector<24x32xf32> to vector<24x32xbf16>
    %cst_24 = arith.constant dense<0.000000e+00> : vector<24x96xf32>
    %45 = tpu.matmul %44, %43, %cst_24 {dimension_numbers = #tpu.dot_dimension_numbers<[1], [0], [0], [1], [0, 0, 1, 1], [], []>} : vector<24x32xbf16>, vector<32x96xbf16>, vector<24x96xf32> -> vector<24x96xf32>
    %c0_25 = arith.constant 0 : index
    %c0_26 = arith.constant 0 : index
    %c0_27 = arith.constant 0 : index
    %46 = vector.load %arg8[%c0_25, %c0_26, %c0_27] : memref<2x1x96xf32, #tpu.memory_space<vmem>>, vector<1x1x96xf32>
    %47 = vector.shape_cast %46 : vector<1x1x96xf32> to vector<1x96xf32>
    %48 = vector.broadcast %47 : vector<1x96xf32> to vector<24x96xf32>
    %49 = arith.addf %45, %48 : vector<24x96xf32>
    %50 = vector.extract_strided_slice %49 {offsets = [0, 0], sizes = [24, 8], strides = [1, 1]} : vector<24x96xf32> to vector<24x8xf32>
    %51 = vector.extract_strided_slice %49 {offsets = [0, 32], sizes = [24, 8], strides = [1, 1]} : vector<24x96xf32> to vector<24x8xf32>
    %52 = vector.extract_strided_slice %49 {offsets = [0, 64], sizes = [24, 8], strides = [1, 1]} : vector<24x96xf32> to vector<24x8xf32>
    %53 = arith.truncf %50 : vector<24x8xf32> to vector<24x8xbf16>
    %54 = arith.truncf %51 : vector<24x8xf32> to vector<24x8xbf16>
    %cst_28 = arith.constant dense<0.000000e+00> : vector<24x24xf32>
    %55 = tpu.matmul %53, %54, %cst_28 {dimension_numbers = #tpu.dot_dimension_numbers<[1], [1], [0], [0], [0, 0, 1, 0], [], []>} : vector<24x8xbf16>, vector<24x8xbf16>, vector<24x24xf32> -> vector<24x24xf32>
    %cst_29 = arith.constant 0.353553385 : f32
    %56 = vector.broadcast %cst_29 : f32 to vector<24x24xf32>
    %57 = arith.mulf %55, %56 : vector<24x24xf32>
    %cst_30 = arith.constant -1.000000e+30 : f32
    %58 = vector.broadcast %cst_30 : f32 to vector<24x24xf32>
    %59 = arith.select %15, %57, %58 : vector<24x24xi1>, vector<24x24xf32>
    %cst_31 = arith.constant dense<0xFF800000> : vector<24xf32>
    %60 = vector.multi_reduction <maximumf>, %59, %cst_31 [1] : vector<24x24xf32> to vector<24xf32>
    %61 = vector.shape_cast %60 : vector<24xf32> to vector<24x1xf32>
    %62 = vector.broadcast %61 : vector<24x1xf32> to vector<24x24xf32>
    %63 = arith.subf %59, %62 : vector<24x24xf32>
    %64 = math.exp %63 : vector<24x24xf32>
    %cst_32 = arith.constant dense<0.000000e+00> : vector<24xf32>
    %65 = vector.multi_reduction <add>, %64, %cst_32 [1] : vector<24x24xf32> to vector<24xf32>
    %66 = vector.shape_cast %65 : vector<24xf32> to vector<24x1xf32>
    %67 = tpu.reciprocal %66 {approx = true} : vector<24x1xf32> -> vector<24x1xf32>
    %68 = vector.broadcast %67 : vector<24x1xf32> to vector<24x24xf32>
    %69 = arith.mulf %64, %68 : vector<24x24xf32>
    %70 = arith.truncf %69 : vector<24x24xf32> to vector<24x24xbf16>
    %71 = arith.truncf %52 : vector<24x8xf32> to vector<24x8xbf16>
    %cst_33 = arith.constant dense<0.000000e+00> : vector<24x8xf32>
    %72 = tpu.matmul %70, %71, %cst_33 {dimension_numbers = #tpu.dot_dimension_numbers<[1], [0], [0], [1], [0, 0, 1, 1], [], []>} : vector<24x24xbf16>, vector<24x8xbf16>, vector<24x8xf32> -> vector<24x8xf32>
    %73 = vector.extract_strided_slice %49 {offsets = [0, 8], sizes = [24, 8], strides = [1, 1]} : vector<24x96xf32> to vector<24x8xf32>
    %74 = vector.extract_strided_slice %49 {offsets = [0, 40], sizes = [24, 8], strides = [1, 1]} : vector<24x96xf32> to vector<24x8xf32>
    %75 = vector.extract_strided_slice %49 {offsets = [0, 72], sizes = [24, 8], strides = [1, 1]} : vector<24x96xf32> to vector<24x8xf32>
    %76 = arith.truncf %73 : vector<24x8xf32> to vector<24x8xbf16>
    %77 = arith.truncf %74 : vector<24x8xf32> to vector<24x8xbf16>
    %cst_34 = arith.constant dense<0.000000e+00> : vector<24x24xf32>
    %78 = tpu.matmul %76, %77, %cst_34 {dimension_numbers = #tpu.dot_dimension_numbers<[1], [1], [0], [0], [0, 0, 1, 0], [], []>} : vector<24x8xbf16>, vector<24x8xbf16>, vector<24x24xf32> -> vector<24x24xf32>
    %cst_35 = arith.constant 0.353553385 : f32
    %79 = vector.broadcast %cst_35 : f32 to vector<24x24xf32>
    %80 = arith.mulf %78, %79 : vector<24x24xf32>
    %cst_36 = arith.constant -1.000000e+30 : f32
    %81 = vector.broadcast %cst_36 : f32 to vector<24x24xf32>
    %82 = arith.select %15, %80, %81 : vector<24x24xi1>, vector<24x24xf32>
    %cst_37 = arith.constant dense<0xFF800000> : vector<24xf32>
    %83 = vector.multi_reduction <maximumf>, %82, %cst_37 [1] : vector<24x24xf32> to vector<24xf32>
    %84 = vector.shape_cast %83 : vector<24xf32> to vector<24x1xf32>
    %85 = vector.broadcast %84 : vector<24x1xf32> to vector<24x24xf32>
    %86 = arith.subf %82, %85 : vector<24x24xf32>
    %87 = math.exp %86 : vector<24x24xf32>
    %cst_38 = arith.constant dense<0.000000e+00> : vector<24xf32>
    %88 = vector.multi_reduction <add>, %87, %cst_38 [1] : vector<24x24xf32> to vector<24xf32>
    %89 = vector.shape_cast %88 : vector<24xf32> to vector<24x1xf32>
    %90 = tpu.reciprocal %89 {approx = true} : vector<24x1xf32> -> vector<24x1xf32>
    %91 = vector.broadcast %90 : vector<24x1xf32> to vector<24x24xf32>
    %92 = arith.mulf %87, %91 : vector<24x24xf32>
    %93 = arith.truncf %92 : vector<24x24xf32> to vector<24x24xbf16>
    %94 = arith.truncf %75 : vector<24x8xf32> to vector<24x8xbf16>
    %cst_39 = arith.constant dense<0.000000e+00> : vector<24x8xf32>
    %95 = tpu.matmul %93, %94, %cst_39 {dimension_numbers = #tpu.dot_dimension_numbers<[1], [0], [0], [1], [0, 0, 1, 1], [], []>} : vector<24x24xbf16>, vector<24x8xbf16>, vector<24x8xf32> -> vector<24x8xf32>
    %96 = vector.extract_strided_slice %49 {offsets = [0, 16], sizes = [24, 8], strides = [1, 1]} : vector<24x96xf32> to vector<24x8xf32>
    %97 = vector.extract_strided_slice %49 {offsets = [0, 48], sizes = [24, 8], strides = [1, 1]} : vector<24x96xf32> to vector<24x8xf32>
    %98 = vector.extract_strided_slice %49 {offsets = [0, 80], sizes = [24, 8], strides = [1, 1]} : vector<24x96xf32> to vector<24x8xf32>
    %99 = arith.truncf %96 : vector<24x8xf32> to vector<24x8xbf16>
    %100 = arith.truncf %97 : vector<24x8xf32> to vector<24x8xbf16>
    %cst_40 = arith.constant dense<0.000000e+00> : vector<24x24xf32>
    %101 = tpu.matmul %99, %100, %cst_40 {dimension_numbers = #tpu.dot_dimension_numbers<[1], [1], [0], [0], [0, 0, 1, 0], [], []>} : vector<24x8xbf16>, vector<24x8xbf16>, vector<24x24xf32> -> vector<24x24xf32>
    %cst_41 = arith.constant 0.353553385 : f32
    %102 = vector.broadcast %cst_41 : f32 to vector<24x24xf32>
    %103 = arith.mulf %101, %102 : vector<24x24xf32>
    %cst_42 = arith.constant -1.000000e+30 : f32
    %104 = vector.broadcast %cst_42 : f32 to vector<24x24xf32>
    %105 = arith.select %15, %103, %104 : vector<24x24xi1>, vector<24x24xf32>
    %cst_43 = arith.constant dense<0xFF800000> : vector<24xf32>
    %106 = vector.multi_reduction <maximumf>, %105, %cst_43 [1] : vector<24x24xf32> to vector<24xf32>
    %107 = vector.shape_cast %106 : vector<24xf32> to vector<24x1xf32>
    %108 = vector.broadcast %107 : vector<24x1xf32> to vector<24x24xf32>
    %109 = arith.subf %105, %108 : vector<24x24xf32>
    %110 = math.exp %109 : vector<24x24xf32>
    %cst_44 = arith.constant dense<0.000000e+00> : vector<24xf32>
    %111 = vector.multi_reduction <add>, %110, %cst_44 [1] : vector<24x24xf32> to vector<24xf32>
    %112 = vector.shape_cast %111 : vector<24xf32> to vector<24x1xf32>
    %113 = tpu.reciprocal %112 {approx = true} : vector<24x1xf32> -> vector<24x1xf32>
    %114 = vector.broadcast %113 : vector<24x1xf32> to vector<24x24xf32>
    %115 = arith.mulf %110, %114 : vector<24x24xf32>
    %116 = arith.truncf %115 : vector<24x24xf32> to vector<24x24xbf16>
    %117 = arith.truncf %98 : vector<24x8xf32> to vector<24x8xbf16>
    %cst_45 = arith.constant dense<0.000000e+00> : vector<24x8xf32>
    %118 = tpu.matmul %116, %117, %cst_45 {dimension_numbers = #tpu.dot_dimension_numbers<[1], [0], [0], [1], [0, 0, 1, 1], [], []>} : vector<24x24xbf16>, vector<24x8xbf16>, vector<24x8xf32> -> vector<24x8xf32>
    %119 = vector.extract_strided_slice %49 {offsets = [0, 24], sizes = [24, 8], strides = [1, 1]} : vector<24x96xf32> to vector<24x8xf32>
    %120 = vector.extract_strided_slice %49 {offsets = [0, 56], sizes = [24, 8], strides = [1, 1]} : vector<24x96xf32> to vector<24x8xf32>
    %121 = vector.extract_strided_slice %49 {offsets = [0, 88], sizes = [24, 8], strides = [1, 1]} : vector<24x96xf32> to vector<24x8xf32>
    %122 = arith.truncf %119 : vector<24x8xf32> to vector<24x8xbf16>
    %123 = arith.truncf %120 : vector<24x8xf32> to vector<24x8xbf16>
    %cst_46 = arith.constant dense<0.000000e+00> : vector<24x24xf32>
    %124 = tpu.matmul %122, %123, %cst_46 {dimension_numbers = #tpu.dot_dimension_numbers<[1], [1], [0], [0], [0, 0, 1, 0], [], []>} : vector<24x8xbf16>, vector<24x8xbf16>, vector<24x24xf32> -> vector<24x24xf32>
    %cst_47 = arith.constant 0.353553385 : f32
    %125 = vector.broadcast %cst_47 : f32 to vector<24x24xf32>
    %126 = arith.mulf %124, %125 : vector<24x24xf32>
    %cst_48 = arith.constant -1.000000e+30 : f32
    %127 = vector.broadcast %cst_48 : f32 to vector<24x24xf32>
    %128 = arith.select %15, %126, %127 : vector<24x24xi1>, vector<24x24xf32>
    %cst_49 = arith.constant dense<0xFF800000> : vector<24xf32>
    %129 = vector.multi_reduction <maximumf>, %128, %cst_49 [1] : vector<24x24xf32> to vector<24xf32>
    %130 = vector.shape_cast %129 : vector<24xf32> to vector<24x1xf32>
    %131 = vector.broadcast %130 : vector<24x1xf32> to vector<24x24xf32>
    %132 = arith.subf %128, %131 : vector<24x24xf32>
    %133 = math.exp %132 : vector<24x24xf32>
    %cst_50 = arith.constant dense<0.000000e+00> : vector<24xf32>
    %134 = vector.multi_reduction <add>, %133, %cst_50 [1] : vector<24x24xf32> to vector<24xf32>
    %135 = vector.shape_cast %134 : vector<24xf32> to vector<24x1xf32>
    %136 = tpu.reciprocal %135 {approx = true} : vector<24x1xf32> -> vector<24x1xf32>
    %137 = vector.broadcast %136 : vector<24x1xf32> to vector<24x24xf32>
    %138 = arith.mulf %133, %137 : vector<24x24xf32>
    %139 = arith.truncf %138 : vector<24x24xf32> to vector<24x24xbf16>
    %140 = arith.truncf %121 : vector<24x8xf32> to vector<24x8xbf16>
    %cst_51 = arith.constant dense<0.000000e+00> : vector<24x8xf32>
    %141 = tpu.matmul %139, %140, %cst_51 {dimension_numbers = #tpu.dot_dimension_numbers<[1], [0], [0], [1], [0, 0, 1, 1], [], []>} : vector<24x24xbf16>, vector<24x8xbf16>, vector<24x8xf32> -> vector<24x8xf32>
    %142 = tpu.concatenate %72, %95, %118, %141 in 1 : vector<24x8xf32>, vector<24x8xf32>, vector<24x8xf32>, vector<24x8xf32> -> vector<24x32xf32>
    %c0_52 = arith.constant 0 : index
    %c0_53 = arith.constant 0 : index
    %c0_54 = arith.constant 0 : index
    %143 = vector.load %arg9[%c0_52, %c0_53, %c0_54] : memref<2x32x32xbf16, #tpu.memory_space<vmem>>, vector<1x32x32xbf16>
    %144 = vector.shape_cast %143 : vector<1x32x32xbf16> to vector<32x32xbf16>
    %145 = arith.truncf %142 : vector<24x32xf32> to vector<24x32xbf16>
    %cst_55 = arith.constant dense<0.000000e+00> : vector<24x32xf32>
    %146 = tpu.matmul %145, %144, %cst_55 {dimension_numbers = #tpu.dot_dimension_numbers<[1], [0], [0], [1], [0, 0, 1, 1], [], []>} : vector<24x32xbf16>, vector<32x32xbf16>, vector<24x32xf32> -> vector<24x32xf32>
    %147 = arith.addf %12, %146 : vector<24x32xf32>
    %c0_56 = arith.constant 0 : index
    %c0_57 = arith.constant 0 : index
    %c0_58 = arith.constant 0 : index
    %148 = vector.load %arg10[%c0_56, %c0_57, %c0_58] : memref<2x1x32xf32, #tpu.memory_space<vmem>>, vector<1x1x32xf32>
    %149 = vector.shape_cast %148 : vector<1x1x32xf32> to vector<1x32xf32>
    %150 = vector.broadcast %149 : vector<1x32xf32> to vector<24x32xf32>
    %151 = arith.addf %147, %150 : vector<24x32xf32>
    %c0_59 = arith.constant 0 : index
    %c0_60 = arith.constant 0 : index
    %c0_61 = arith.constant 0 : index
    %152 = vector.load %arg11[%c0_59, %c0_60, %c0_61] : memref<2x1x32xf32, #tpu.memory_space<vmem>>, vector<1x1x32xf32>
    %153 = vector.shape_cast %152 : vector<1x1x32xf32> to vector<1x32xf32>
    %c0_62 = arith.constant 0 : index
    %c0_63 = arith.constant 0 : index
    %c0_64 = arith.constant 0 : index
    %154 = vector.load %arg12[%c0_62, %c0_63, %c0_64] : memref<2x1x32xf32, #tpu.memory_space<vmem>>, vector<1x1x32xf32>
    %155 = vector.shape_cast %154 : vector<1x1x32xf32> to vector<1x32xf32>
    %cst_65 = arith.constant dense<0.000000e+00> : vector<24xf32>
    %156 = vector.multi_reduction <add>, %151, %cst_65 [1] : vector<24x32xf32> to vector<24xf32>
    %157 = vector.shape_cast %156 : vector<24xf32> to vector<24x1xf32>
    %cst_66 = arith.constant 3.200000e+01 : f32
    %158 = vector.broadcast %cst_66 : f32 to vector<24x1xf32>
    %159 = arith.divf %157, %158 : vector<24x1xf32>
    %160 = vector.broadcast %159 : vector<24x1xf32> to vector<24x32xf32>
    %161 = arith.subf %151, %160 : vector<24x32xf32>
    %162 = arith.mulf %161, %161 : vector<24x32xf32>
    %cst_67 = arith.constant dense<0.000000e+00> : vector<24xf32>
    %163 = vector.multi_reduction <add>, %162, %cst_67 [1] : vector<24x32xf32> to vector<24xf32>
    %164 = vector.shape_cast %163 : vector<24xf32> to vector<24x1xf32>
    %cst_68 = arith.constant 3.200000e+01 : f32
    %165 = vector.broadcast %cst_68 : f32 to vector<24x1xf32>
    %166 = arith.divf %164, %165 : vector<24x1xf32>
    %167 = vector.broadcast %159 : vector<24x1xf32> to vector<24x32xf32>
    %168 = arith.subf %151, %167 : vector<24x32xf32>
    %cst_69 = arith.constant 9.99999996E-13 : f32
    %169 = vector.broadcast %cst_69 : f32 to vector<24x1xf32>
    %170 = arith.addf %166, %169 : vector<24x1xf32>
    %171 = math.rsqrt %170 : vector<24x1xf32>
    %172 = vector.broadcast %171 : vector<24x1xf32> to vector<24x32xf32>
    %173 = arith.mulf %168, %172 : vector<24x32xf32>
    %174 = vector.broadcast %153 : vector<1x32xf32> to vector<24x32xf32>
    %175 = arith.mulf %173, %174 : vector<24x32xf32>
    %176 = vector.broadcast %155 : vector<1x32xf32> to vector<24x32xf32>
    %177 = arith.addf %175, %176 : vector<24x32xf32>
    %c0_70 = arith.constant 0 : index
    %c0_71 = arith.constant 0 : index
    %c0_72 = arith.constant 0 : index
    %178 = vector.load %arg13[%c0_70, %c0_71, %c0_72] : memref<2x32x64xbf16, #tpu.memory_space<vmem>>, vector<1x32x64xbf16>
    %179 = vector.shape_cast %178 : vector<1x32x64xbf16> to vector<32x64xbf16>
    %180 = arith.truncf %177 : vector<24x32xf32> to vector<24x32xbf16>
    %cst_73 = arith.constant dense<0.000000e+00> : vector<24x64xf32>
    %181 = tpu.matmul %180, %179, %cst_73 {dimension_numbers = #tpu.dot_dimension_numbers<[1], [0], [0], [1], [0, 0, 1, 1], [], []>} : vector<24x32xbf16>, vector<32x64xbf16>, vector<24x64xf32> -> vector<24x64xf32>
    %c0_74 = arith.constant 0 : index
    %c0_75 = arith.constant 0 : index
    %c0_76 = arith.constant 0 : index
    %182 = vector.load %arg14[%c0_74, %c0_75, %c0_76] : memref<2x1x64xf32, #tpu.memory_space<vmem>>, vector<1x1x64xf32>
    %183 = vector.shape_cast %182 : vector<1x1x64xf32> to vector<1x64xf32>
    %184 = vector.broadcast %183 : vector<1x64xf32> to vector<24x64xf32>
    %185 = arith.addf %181, %184 : vector<24x64xf32>
    %cst_77 = arith.constant 5.000000e-01 : f32
    %186 = vector.broadcast %cst_77 : f32 to vector<24x64xf32>
    %187 = arith.mulf %186, %185 : vector<24x64xf32>
    %cst_78 = arith.constant 0.707106769 : f32
    %188 = vector.broadcast %cst_78 : f32 to vector<24x64xf32>
    %189 = arith.mulf %185, %188 : vector<24x64xf32>
    %190 = math.erf %189 : vector<24x64xf32>
    %cst_79 = arith.constant 1.000000e+00 : f32
    %191 = vector.broadcast %cst_79 : f32 to vector<24x64xf32>
    %192 = arith.addf %191, %190 : vector<24x64xf32>
    %193 = arith.mulf %187, %192 : vector<24x64xf32>
    %c0_80 = arith.constant 0 : index
    %c0_81 = arith.constant 0 : index
    %c0_82 = arith.constant 0 : index
    %194 = vector.load %arg15[%c0_80, %c0_81, %c0_82] : memref<2x64x32xbf16, #tpu.memory_space<vmem>>, vector<1x64x32xbf16>
    %195 = vector.shape_cast %194 : vector<1x64x32xbf16> to vector<64x32xbf16>
    %196 = arith.truncf %193 : vector<24x64xf32> to vector<24x64xbf16>
    %cst_83 = arith.constant dense<0.000000e+00> : vector<24x32xf32>
    %197 = tpu.matmul %196, %195, %cst_83 {dimension_numbers = #tpu.dot_dimension_numbers<[1], [0], [0], [1], [0, 0, 1, 1], [], []>} : vector<24x64xbf16>, vector<64x32xbf16>, vector<24x32xf32> -> vector<24x32xf32>
    %198 = arith.addf %151, %197 : vector<24x32xf32>
    %c0_84 = arith.constant 0 : index
    %c0_85 = arith.constant 0 : index
    %c0_86 = arith.constant 0 : index
    %199 = vector.load %arg16[%c0_84, %c0_85, %c0_86] : memref<2x1x32xf32, #tpu.memory_space<vmem>>, vector<1x1x32xf32>
    %200 = vector.shape_cast %199 : vector<1x1x32xf32> to vector<1x32xf32>
    %201 = vector.broadcast %200 : vector<1x32xf32> to vector<24x32xf32>
    %202 = arith.addf %198, %201 : vector<24x32xf32>
    %c1 = arith.constant 1 : index
    %c0_87 = arith.constant 0 : index
    %c0_88 = arith.constant 0 : index
    %203 = vector.load %arg5[%c1, %c0_87, %c0_88] : memref<2x1x32xf32, #tpu.memory_space<vmem>>, vector<1x1x32xf32>
    %204 = vector.shape_cast %203 : vector<1x1x32xf32> to vector<1x32xf32>
    %c1_89 = arith.constant 1 : index
    %c0_90 = arith.constant 0 : index
    %c0_91 = arith.constant 0 : index
    %205 = vector.load %arg6[%c1_89, %c0_90, %c0_91] : memref<2x1x32xf32, #tpu.memory_space<vmem>>, vector<1x1x32xf32>
    %206 = vector.shape_cast %205 : vector<1x1x32xf32> to vector<1x32xf32>
    %cst_92 = arith.constant dense<0.000000e+00> : vector<24xf32>
    %207 = vector.multi_reduction <add>, %202, %cst_92 [1] : vector<24x32xf32> to vector<24xf32>
    %208 = vector.shape_cast %207 : vector<24xf32> to vector<24x1xf32>
    %cst_93 = arith.constant 3.200000e+01 : f32
    %209 = vector.broadcast %cst_93 : f32 to vector<24x1xf32>
    %210 = arith.divf %208, %209 : vector<24x1xf32>
    %211 = vector.broadcast %210 : vector<24x1xf32> to vector<24x32xf32>
    %212 = arith.subf %202, %211 : vector<24x32xf32>
    %213 = arith.mulf %212, %212 : vector<24x32xf32>
    %cst_94 = arith.constant dense<0.000000e+00> : vector<24xf32>
    %214 = vector.multi_reduction <add>, %213, %cst_94 [1] : vector<24x32xf32> to vector<24xf32>
    %215 = vector.shape_cast %214 : vector<24xf32> to vector<24x1xf32>
    %cst_95 = arith.constant 3.200000e+01 : f32
    %216 = vector.broadcast %cst_95 : f32 to vector<24x1xf32>
    %217 = arith.divf %215, %216 : vector<24x1xf32>
    %218 = vector.broadcast %210 : vector<24x1xf32> to vector<24x32xf32>
    %219 = arith.subf %202, %218 : vector<24x32xf32>
    %cst_96 = arith.constant 9.99999996E-13 : f32
    %220 = vector.broadcast %cst_96 : f32 to vector<24x1xf32>
    %221 = arith.addf %217, %220 : vector<24x1xf32>
    %222 = math.rsqrt %221 : vector<24x1xf32>
    %223 = vector.broadcast %222 : vector<24x1xf32> to vector<24x32xf32>
    %224 = arith.mulf %219, %223 : vector<24x32xf32>
    %225 = vector.broadcast %204 : vector<1x32xf32> to vector<24x32xf32>
    %226 = arith.mulf %224, %225 : vector<24x32xf32>
    %227 = vector.broadcast %206 : vector<1x32xf32> to vector<24x32xf32>
    %228 = arith.addf %226, %227 : vector<24x32xf32>
    %c1_97 = arith.constant 1 : index
    %c0_98 = arith.constant 0 : index
    %c0_99 = arith.constant 0 : index
    %229 = vector.load %arg7[%c1_97, %c0_98, %c0_99] : memref<2x32x96xbf16, #tpu.memory_space<vmem>>, vector<1x32x96xbf16>
    %230 = vector.shape_cast %229 : vector<1x32x96xbf16> to vector<32x96xbf16>
    %231 = arith.truncf %228 : vector<24x32xf32> to vector<24x32xbf16>
    %cst_100 = arith.constant dense<0.000000e+00> : vector<24x96xf32>
    %232 = tpu.matmul %231, %230, %cst_100 {dimension_numbers = #tpu.dot_dimension_numbers<[1], [0], [0], [1], [0, 0, 1, 1], [], []>} : vector<24x32xbf16>, vector<32x96xbf16>, vector<24x96xf32> -> vector<24x96xf32>
    %c1_101 = arith.constant 1 : index
    %c0_102 = arith.constant 0 : index
    %c0_103 = arith.constant 0 : index
    %233 = vector.load %arg8[%c1_101, %c0_102, %c0_103] : memref<2x1x96xf32, #tpu.memory_space<vmem>>, vector<1x1x96xf32>
    %234 = vector.shape_cast %233 : vector<1x1x96xf32> to vector<1x96xf32>
    %235 = vector.broadcast %234 : vector<1x96xf32> to vector<24x96xf32>
    %236 = arith.addf %232, %235 : vector<24x96xf32>
    %237 = vector.extract_strided_slice %236 {offsets = [0, 0], sizes = [24, 8], strides = [1, 1]} : vector<24x96xf32> to vector<24x8xf32>
    %238 = vector.extract_strided_slice %236 {offsets = [0, 32], sizes = [24, 8], strides = [1, 1]} : vector<24x96xf32> to vector<24x8xf32>
    %239 = vector.extract_strided_slice %236 {offsets = [0, 64], sizes = [24, 8], strides = [1, 1]} : vector<24x96xf32> to vector<24x8xf32>
    %240 = arith.truncf %237 : vector<24x8xf32> to vector<24x8xbf16>
    %241 = arith.truncf %238 : vector<24x8xf32> to vector<24x8xbf16>
    %cst_104 = arith.constant dense<0.000000e+00> : vector<24x24xf32>
    %242 = tpu.matmul %240, %241, %cst_104 {dimension_numbers = #tpu.dot_dimension_numbers<[1], [1], [0], [0], [0, 0, 1, 0], [], []>} : vector<24x8xbf16>, vector<24x8xbf16>, vector<24x24xf32> -> vector<24x24xf32>
    %cst_105 = arith.constant 0.353553385 : f32
    %243 = vector.broadcast %cst_105 : f32 to vector<24x24xf32>
    %244 = arith.mulf %242, %243 : vector<24x24xf32>
    %cst_106 = arith.constant -1.000000e+30 : f32
    %245 = vector.broadcast %cst_106 : f32 to vector<24x24xf32>
    %246 = arith.select %15, %244, %245 : vector<24x24xi1>, vector<24x24xf32>
    %cst_107 = arith.constant dense<0xFF800000> : vector<24xf32>
    %247 = vector.multi_reduction <maximumf>, %246, %cst_107 [1] : vector<24x24xf32> to vector<24xf32>
    %248 = vector.shape_cast %247 : vector<24xf32> to vector<24x1xf32>
    %249 = vector.broadcast %248 : vector<24x1xf32> to vector<24x24xf32>
    %250 = arith.subf %246, %249 : vector<24x24xf32>
    %251 = math.exp %250 : vector<24x24xf32>
    %cst_108 = arith.constant dense<0.000000e+00> : vector<24xf32>
    %252 = vector.multi_reduction <add>, %251, %cst_108 [1] : vector<24x24xf32> to vector<24xf32>
    %253 = vector.shape_cast %252 : vector<24xf32> to vector<24x1xf32>
    %254 = tpu.reciprocal %253 {approx = true} : vector<24x1xf32> -> vector<24x1xf32>
    %255 = vector.broadcast %254 : vector<24x1xf32> to vector<24x24xf32>
    %256 = arith.mulf %251, %255 : vector<24x24xf32>
    %257 = arith.truncf %256 : vector<24x24xf32> to vector<24x24xbf16>
    %258 = arith.truncf %239 : vector<24x8xf32> to vector<24x8xbf16>
    %cst_109 = arith.constant dense<0.000000e+00> : vector<24x8xf32>
    %259 = tpu.matmul %257, %258, %cst_109 {dimension_numbers = #tpu.dot_dimension_numbers<[1], [0], [0], [1], [0, 0, 1, 1], [], []>} : vector<24x24xbf16>, vector<24x8xbf16>, vector<24x8xf32> -> vector<24x8xf32>
    %260 = vector.extract_strided_slice %236 {offsets = [0, 8], sizes = [24, 8], strides = [1, 1]} : vector<24x96xf32> to vector<24x8xf32>
    %261 = vector.extract_strided_slice %236 {offsets = [0, 40], sizes = [24, 8], strides = [1, 1]} : vector<24x96xf32> to vector<24x8xf32>
    %262 = vector.extract_strided_slice %236 {offsets = [0, 72], sizes = [24, 8], strides = [1, 1]} : vector<24x96xf32> to vector<24x8xf32>
    %263 = arith.truncf %260 : vector<24x8xf32> to vector<24x8xbf16>
    %264 = arith.truncf %261 : vector<24x8xf32> to vector<24x8xbf16>
    %cst_110 = arith.constant dense<0.000000e+00> : vector<24x24xf32>
    %265 = tpu.matmul %263, %264, %cst_110 {dimension_numbers = #tpu.dot_dimension_numbers<[1], [1], [0], [0], [0, 0, 1, 0], [], []>} : vector<24x8xbf16>, vector<24x8xbf16>, vector<24x24xf32> -> vector<24x24xf32>
    %cst_111 = arith.constant 0.353553385 : f32
    %266 = vector.broadcast %cst_111 : f32 to vector<24x24xf32>
    %267 = arith.mulf %265, %266 : vector<24x24xf32>
    %cst_112 = arith.constant -1.000000e+30 : f32
    %268 = vector.broadcast %cst_112 : f32 to vector<24x24xf32>
    %269 = arith.select %15, %267, %268 : vector<24x24xi1>, vector<24x24xf32>
    %cst_113 = arith.constant dense<0xFF800000> : vector<24xf32>
    %270 = vector.multi_reduction <maximumf>, %269, %cst_113 [1] : vector<24x24xf32> to vector<24xf32>
    %271 = vector.shape_cast %270 : vector<24xf32> to vector<24x1xf32>
    %272 = vector.broadcast %271 : vector<24x1xf32> to vector<24x24xf32>
    %273 = arith.subf %269, %272 : vector<24x24xf32>
    %274 = math.exp %273 : vector<24x24xf32>
    %cst_114 = arith.constant dense<0.000000e+00> : vector<24xf32>
    %275 = vector.multi_reduction <add>, %274, %cst_114 [1] : vector<24x24xf32> to vector<24xf32>
    %276 = vector.shape_cast %275 : vector<24xf32> to vector<24x1xf32>
    %277 = tpu.reciprocal %276 {approx = true} : vector<24x1xf32> -> vector<24x1xf32>
    %278 = vector.broadcast %277 : vector<24x1xf32> to vector<24x24xf32>
    %279 = arith.mulf %274, %278 : vector<24x24xf32>
    %280 = arith.truncf %279 : vector<24x24xf32> to vector<24x24xbf16>
    %281 = arith.truncf %262 : vector<24x8xf32> to vector<24x8xbf16>
    %cst_115 = arith.constant dense<0.000000e+00> : vector<24x8xf32>
    %282 = tpu.matmul %280, %281, %cst_115 {dimension_numbers = #tpu.dot_dimension_numbers<[1], [0], [0], [1], [0, 0, 1, 1], [], []>} : vector<24x24xbf16>, vector<24x8xbf16>, vector<24x8xf32> -> vector<24x8xf32>
    %283 = vector.extract_strided_slice %236 {offsets = [0, 16], sizes = [24, 8], strides = [1, 1]} : vector<24x96xf32> to vector<24x8xf32>
    %284 = vector.extract_strided_slice %236 {offsets = [0, 48], sizes = [24, 8], strides = [1, 1]} : vector<24x96xf32> to vector<24x8xf32>
    %285 = vector.extract_strided_slice %236 {offsets = [0, 80], sizes = [24, 8], strides = [1, 1]} : vector<24x96xf32> to vector<24x8xf32>
    %286 = arith.truncf %283 : vector<24x8xf32> to vector<24x8xbf16>
    %287 = arith.truncf %284 : vector<24x8xf32> to vector<24x8xbf16>
    %cst_116 = arith.constant dense<0.000000e+00> : vector<24x24xf32>
    %288 = tpu.matmul %286, %287, %cst_116 {dimension_numbers = #tpu.dot_dimension_numbers<[1], [1], [0], [0], [0, 0, 1, 0], [], []>} : vector<24x8xbf16>, vector<24x8xbf16>, vector<24x24xf32> -> vector<24x24xf32>
    %cst_117 = arith.constant 0.353553385 : f32
    %289 = vector.broadcast %cst_117 : f32 to vector<24x24xf32>
    %290 = arith.mulf %288, %289 : vector<24x24xf32>
    %cst_118 = arith.constant -1.000000e+30 : f32
    %291 = vector.broadcast %cst_118 : f32 to vector<24x24xf32>
    %292 = arith.select %15, %290, %291 : vector<24x24xi1>, vector<24x24xf32>
    %cst_119 = arith.constant dense<0xFF800000> : vector<24xf32>
    %293 = vector.multi_reduction <maximumf>, %292, %cst_119 [1] : vector<24x24xf32> to vector<24xf32>
    %294 = vector.shape_cast %293 : vector<24xf32> to vector<24x1xf32>
    %295 = vector.broadcast %294 : vector<24x1xf32> to vector<24x24xf32>
    %296 = arith.subf %292, %295 : vector<24x24xf32>
    %297 = math.exp %296 : vector<24x24xf32>
    %cst_120 = arith.constant dense<0.000000e+00> : vector<24xf32>
    %298 = vector.multi_reduction <add>, %297, %cst_120 [1] : vector<24x24xf32> to vector<24xf32>
    %299 = vector.shape_cast %298 : vector<24xf32> to vector<24x1xf32>
    %300 = tpu.reciprocal %299 {approx = true} : vector<24x1xf32> -> vector<24x1xf32>
    %301 = vector.broadcast %300 : vector<24x1xf32> to vector<24x24xf32>
    %302 = arith.mulf %297, %301 : vector<24x24xf32>
    %303 = arith.truncf %302 : vector<24x24xf32> to vector<24x24xbf16>
    %304 = arith.truncf %285 : vector<24x8xf32> to vector<24x8xbf16>
    %cst_121 = arith.constant dense<0.000000e+00> : vector<24x8xf32>
    %305 = tpu.matmul %303, %304, %cst_121 {dimension_numbers = #tpu.dot_dimension_numbers<[1], [0], [0], [1], [0, 0, 1, 1], [], []>} : vector<24x24xbf16>, vector<24x8xbf16>, vector<24x8xf32> -> vector<24x8xf32>
    %306 = vector.extract_strided_slice %236 {offsets = [0, 24], sizes = [24, 8], strides = [1, 1]} : vector<24x96xf32> to vector<24x8xf32>
    %307 = vector.extract_strided_slice %236 {offsets = [0, 56], sizes = [24, 8], strides = [1, 1]} : vector<24x96xf32> to vector<24x8xf32>
    %308 = vector.extract_strided_slice %236 {offsets = [0, 88], sizes = [24, 8], strides = [1, 1]} : vector<24x96xf32> to vector<24x8xf32>
    %309 = arith.truncf %306 : vector<24x8xf32> to vector<24x8xbf16>
    %310 = arith.truncf %307 : vector<24x8xf32> to vector<24x8xbf16>
    %cst_122 = arith.constant dense<0.000000e+00> : vector<24x24xf32>
    %311 = tpu.matmul %309, %310, %cst_122 {dimension_numbers = #tpu.dot_dimension_numbers<[1], [1], [0], [0], [0, 0, 1, 0], [], []>} : vector<24x8xbf16>, vector<24x8xbf16>, vector<24x24xf32> -> vector<24x24xf32>
    %cst_123 = arith.constant 0.353553385 : f32
    %312 = vector.broadcast %cst_123 : f32 to vector<24x24xf32>
    %313 = arith.mulf %311, %312 : vector<24x24xf32>
    %cst_124 = arith.constant -1.000000e+30 : f32
    %314 = vector.broadcast %cst_124 : f32 to vector<24x24xf32>
    %315 = arith.select %15, %313, %314 : vector<24x24xi1>, vector<24x24xf32>
    %cst_125 = arith.constant dense<0xFF800000> : vector<24xf32>
    %316 = vector.multi_reduction <maximumf>, %315, %cst_125 [1] : vector<24x24xf32> to vector<24xf32>
    %317 = vector.shape_cast %316 : vector<24xf32> to vector<24x1xf32>
    %318 = vector.broadcast %317 : vector<24x1xf32> to vector<24x24xf32>
    %319 = arith.subf %315, %318 : vector<24x24xf32>
    %320 = math.exp %319 : vector<24x24xf32>
    %cst_126 = arith.constant dense<0.000000e+00> : vector<24xf32>
    %321 = vector.multi_reduction <add>, %320, %cst_126 [1] : vector<24x24xf32> to vector<24xf32>
    %322 = vector.shape_cast %321 : vector<24xf32> to vector<24x1xf32>
    %323 = tpu.reciprocal %322 {approx = true} : vector<24x1xf32> -> vector<24x1xf32>
    %324 = vector.broadcast %323 : vector<24x1xf32> to vector<24x24xf32>
    %325 = arith.mulf %320, %324 : vector<24x24xf32>
    %326 = arith.truncf %325 : vector<24x24xf32> to vector<24x24xbf16>
    %327 = arith.truncf %308 : vector<24x8xf32> to vector<24x8xbf16>
    %cst_127 = arith.constant dense<0.000000e+00> : vector<24x8xf32>
    %328 = tpu.matmul %326, %327, %cst_127 {dimension_numbers = #tpu.dot_dimension_numbers<[1], [0], [0], [1], [0, 0, 1, 1], [], []>} : vector<24x24xbf16>, vector<24x8xbf16>, vector<24x8xf32> -> vector<24x8xf32>
    %329 = tpu.concatenate %259, %282, %305, %328 in 1 : vector<24x8xf32>, vector<24x8xf32>, vector<24x8xf32>, vector<24x8xf32> -> vector<24x32xf32>
    %c1_128 = arith.constant 1 : index
    %c0_129 = arith.constant 0 : index
    %c0_130 = arith.constant 0 : index
    %330 = vector.load %arg9[%c1_128, %c0_129, %c0_130] : memref<2x32x32xbf16, #tpu.memory_space<vmem>>, vector<1x32x32xbf16>
    %331 = vector.shape_cast %330 : vector<1x32x32xbf16> to vector<32x32xbf16>
    %332 = arith.truncf %329 : vector<24x32xf32> to vector<24x32xbf16>
    %cst_131 = arith.constant dense<0.000000e+00> : vector<24x32xf32>
    %333 = tpu.matmul %332, %331, %cst_131 {dimension_numbers = #tpu.dot_dimension_numbers<[1], [0], [0], [1], [0, 0, 1, 1], [], []>} : vector<24x32xbf16>, vector<32x32xbf16>, vector<24x32xf32> -> vector<24x32xf32>
    %334 = arith.addf %202, %333 : vector<24x32xf32>
    %c1_132 = arith.constant 1 : index
    %c0_133 = arith.constant 0 : index
    %c0_134 = arith.constant 0 : index
    %335 = vector.load %arg10[%c1_132, %c0_133, %c0_134] : memref<2x1x32xf32, #tpu.memory_space<vmem>>, vector<1x1x32xf32>
    %336 = vector.shape_cast %335 : vector<1x1x32xf32> to vector<1x32xf32>
    %337 = vector.broadcast %336 : vector<1x32xf32> to vector<24x32xf32>
    %338 = arith.addf %334, %337 : vector<24x32xf32>
    %c1_135 = arith.constant 1 : index
    %c0_136 = arith.constant 0 : index
    %c0_137 = arith.constant 0 : index
    %339 = vector.load %arg11[%c1_135, %c0_136, %c0_137] : memref<2x1x32xf32, #tpu.memory_space<vmem>>, vector<1x1x32xf32>
    %340 = vector.shape_cast %339 : vector<1x1x32xf32> to vector<1x32xf32>
    %c1_138 = arith.constant 1 : index
    %c0_139 = arith.constant 0 : index
    %c0_140 = arith.constant 0 : index
    %341 = vector.load %arg12[%c1_138, %c0_139, %c0_140] : memref<2x1x32xf32, #tpu.memory_space<vmem>>, vector<1x1x32xf32>
    %342 = vector.shape_cast %341 : vector<1x1x32xf32> to vector<1x32xf32>
    %cst_141 = arith.constant dense<0.000000e+00> : vector<24xf32>
    %343 = vector.multi_reduction <add>, %338, %cst_141 [1] : vector<24x32xf32> to vector<24xf32>
    %344 = vector.shape_cast %343 : vector<24xf32> to vector<24x1xf32>
    %cst_142 = arith.constant 3.200000e+01 : f32
    %345 = vector.broadcast %cst_142 : f32 to vector<24x1xf32>
    %346 = arith.divf %344, %345 : vector<24x1xf32>
    %347 = vector.broadcast %346 : vector<24x1xf32> to vector<24x32xf32>
    %348 = arith.subf %338, %347 : vector<24x32xf32>
    %349 = arith.mulf %348, %348 : vector<24x32xf32>
    %cst_143 = arith.constant dense<0.000000e+00> : vector<24xf32>
    %350 = vector.multi_reduction <add>, %349, %cst_143 [1] : vector<24x32xf32> to vector<24xf32>
    %351 = vector.shape_cast %350 : vector<24xf32> to vector<24x1xf32>
    %cst_144 = arith.constant 3.200000e+01 : f32
    %352 = vector.broadcast %cst_144 : f32 to vector<24x1xf32>
    %353 = arith.divf %351, %352 : vector<24x1xf32>
    %354 = vector.broadcast %346 : vector<24x1xf32> to vector<24x32xf32>
    %355 = arith.subf %338, %354 : vector<24x32xf32>
    %cst_145 = arith.constant 9.99999996E-13 : f32
    %356 = vector.broadcast %cst_145 : f32 to vector<24x1xf32>
    %357 = arith.addf %353, %356 : vector<24x1xf32>
    %358 = math.rsqrt %357 : vector<24x1xf32>
    %359 = vector.broadcast %358 : vector<24x1xf32> to vector<24x32xf32>
    %360 = arith.mulf %355, %359 : vector<24x32xf32>
    %361 = vector.broadcast %340 : vector<1x32xf32> to vector<24x32xf32>
    %362 = arith.mulf %360, %361 : vector<24x32xf32>
    %363 = vector.broadcast %342 : vector<1x32xf32> to vector<24x32xf32>
    %364 = arith.addf %362, %363 : vector<24x32xf32>
    %c1_146 = arith.constant 1 : index
    %c0_147 = arith.constant 0 : index
    %c0_148 = arith.constant 0 : index
    %365 = vector.load %arg13[%c1_146, %c0_147, %c0_148] : memref<2x32x64xbf16, #tpu.memory_space<vmem>>, vector<1x32x64xbf16>
    %366 = vector.shape_cast %365 : vector<1x32x64xbf16> to vector<32x64xbf16>
    %367 = arith.truncf %364 : vector<24x32xf32> to vector<24x32xbf16>
    %cst_149 = arith.constant dense<0.000000e+00> : vector<24x64xf32>
    %368 = tpu.matmul %367, %366, %cst_149 {dimension_numbers = #tpu.dot_dimension_numbers<[1], [0], [0], [1], [0, 0, 1, 1], [], []>} : vector<24x32xbf16>, vector<32x64xbf16>, vector<24x64xf32> -> vector<24x64xf32>
    %c1_150 = arith.constant 1 : index
    %c0_151 = arith.constant 0 : index
    %c0_152 = arith.constant 0 : index
    %369 = vector.load %arg14[%c1_150, %c0_151, %c0_152] : memref<2x1x64xf32, #tpu.memory_space<vmem>>, vector<1x1x64xf32>
    %370 = vector.shape_cast %369 : vector<1x1x64xf32> to vector<1x64xf32>
    %371 = vector.broadcast %370 : vector<1x64xf32> to vector<24x64xf32>
    %372 = arith.addf %368, %371 : vector<24x64xf32>
    %cst_153 = arith.constant 5.000000e-01 : f32
    %373 = vector.broadcast %cst_153 : f32 to vector<24x64xf32>
    %374 = arith.mulf %373, %372 : vector<24x64xf32>
    %cst_154 = arith.constant 0.707106769 : f32
    %375 = vector.broadcast %cst_154 : f32 to vector<24x64xf32>
    %376 = arith.mulf %372, %375 : vector<24x64xf32>
    %377 = math.erf %376 : vector<24x64xf32>
    %cst_155 = arith.constant 1.000000e+00 : f32
    %378 = vector.broadcast %cst_155 : f32 to vector<24x64xf32>
    %379 = arith.addf %378, %377 : vector<24x64xf32>
    %380 = arith.mulf %374, %379 : vector<24x64xf32>
    %c1_156 = arith.constant 1 : index
    %c0_157 = arith.constant 0 : index
    %c0_158 = arith.constant 0 : index
    %381 = vector.load %arg15[%c1_156, %c0_157, %c0_158] : memref<2x64x32xbf16, #tpu.memory_space<vmem>>, vector<1x64x32xbf16>
    %382 = vector.shape_cast %381 : vector<1x64x32xbf16> to vector<64x32xbf16>
    %383 = arith.truncf %380 : vector<24x64xf32> to vector<24x64xbf16>
    %cst_159 = arith.constant dense<0.000000e+00> : vector<24x32xf32>
    %384 = tpu.matmul %383, %382, %cst_159 {dimension_numbers = #tpu.dot_dimension_numbers<[1], [0], [0], [1], [0, 0, 1, 1], [], []>} : vector<24x64xbf16>, vector<64x32xbf16>, vector<24x32xf32> -> vector<24x32xf32>
    %385 = arith.addf %338, %384 : vector<24x32xf32>
    %c1_160 = arith.constant 1 : index
    %c0_161 = arith.constant 0 : index
    %c0_162 = arith.constant 0 : index
    %386 = vector.load %arg16[%c1_160, %c0_161, %c0_162] : memref<2x1x32xf32, #tpu.memory_space<vmem>>, vector<1x1x32xf32>
    %387 = vector.shape_cast %386 : vector<1x1x32xf32> to vector<1x32xf32>
    %388 = vector.broadcast %387 : vector<1x32xf32> to vector<24x32xf32>
    %389 = arith.addf %385, %388 : vector<24x32xf32>
    %c0_163 = arith.constant 0 : index
    %c0_164 = arith.constant 0 : index
    %390 = vector.load %arg17[%c0_163, %c0_164] : memref<1x32xf32, #tpu.memory_space<vmem>>, vector<1x32xf32>
    %c0_165 = arith.constant 0 : index
    %c0_166 = arith.constant 0 : index
    %391 = vector.load %arg18[%c0_165, %c0_166] : memref<1x32xf32, #tpu.memory_space<vmem>>, vector<1x32xf32>
    %cst_167 = arith.constant dense<0.000000e+00> : vector<24xf32>
    %392 = vector.multi_reduction <add>, %389, %cst_167 [1] : vector<24x32xf32> to vector<24xf32>
    %393 = vector.shape_cast %392 : vector<24xf32> to vector<24x1xf32>
    %cst_168 = arith.constant 3.200000e+01 : f32
    %394 = vector.broadcast %cst_168 : f32 to vector<24x1xf32>
    %395 = arith.divf %393, %394 : vector<24x1xf32>
    %396 = vector.broadcast %395 : vector<24x1xf32> to vector<24x32xf32>
    %397 = arith.subf %389, %396 : vector<24x32xf32>
    %398 = arith.mulf %397, %397 : vector<24x32xf32>
    %cst_169 = arith.constant dense<0.000000e+00> : vector<24xf32>
    %399 = vector.multi_reduction <add>, %398, %cst_169 [1] : vector<24x32xf32> to vector<24xf32>
    %400 = vector.shape_cast %399 : vector<24xf32> to vector<24x1xf32>
    %cst_170 = arith.constant 3.200000e+01 : f32
    %401 = vector.broadcast %cst_170 : f32 to vector<24x1xf32>
    %402 = arith.divf %400, %401 : vector<24x1xf32>
    %403 = vector.broadcast %395 : vector<24x1xf32> to vector<24x32xf32>
    %404 = arith.subf %389, %403 : vector<24x32xf32>
    %cst_171 = arith.constant 9.99999996E-13 : f32
    %405 = vector.broadcast %cst_171 : f32 to vector<24x1xf32>
    %406 = arith.addf %402, %405 : vector<24x1xf32>
    %407 = math.rsqrt %406 : vector<24x1xf32>
    %408 = vector.broadcast %407 : vector<24x1xf32> to vector<24x32xf32>
    %409 = arith.mulf %404, %408 : vector<24x32xf32>
    %410 = vector.broadcast %390 : vector<1x32xf32> to vector<24x32xf32>
    %411 = arith.mulf %409, %410 : vector<24x32xf32>
    %412 = vector.broadcast %391 : vector<1x32xf32> to vector<24x32xf32>
    %413 = arith.addf %411, %412 : vector<24x32xf32>
    %414 = vector.extract_strided_slice %413 {offsets = [0, 0], sizes = [1, 32], strides = [1, 1]} : vector<24x32xf32> to vector<1x32xf32>
    %c0_172 = arith.constant 0 : index
    %c0_173 = arith.constant 0 : index
    %415 = vector.load %arg19[%c0_172, %c0_173] : memref<32x2xbf16, #tpu.memory_space<vmem>>, vector<32x2xbf16>
    %416 = arith.truncf %414 : vector<1x32xf32> to vector<1x32xbf16>
    %cst_174 = arith.constant dense<0.000000e+00> : vector<1x2xf32>
    %417 = tpu.matmul %416, %415, %cst_174 {dimension_numbers = #tpu.dot_dimension_numbers<[1], [0], [0], [1], [0, 0, 1, 1], [], []>} : vector<1x32xbf16>, vector<32x2xbf16>, vector<1x2xf32> -> vector<1x2xf32>
    %c0_175 = arith.constant 0 : index
    %c0_176 = arith.constant 0 : index
    %418 = vector.load %arg20[%c0_175, %c0_176] : memref<1x2xf32, #tpu.memory_space<vmem>>, vector<1x2xf32>
    %419 = arith.addf %417, %418 : vector<1x2xf32>
    %420 = vector.shape_cast %419 : vector<1x2xf32> to vector<1x1x2xf32>
    %c0_177 = arith.constant 0 : index
    %c0_178 = arith.constant 0 : index
    %c0_179 = arith.constant 0 : index
    %421 = vector.load %arg21[%c0_177, %c0_178, %c0_179] : memref<1x1x2xf32, #tpu.memory_space<vmem>>, vector<1x1x2xf32>
    tpu.vector_store %arg21[%c0_177, %c0_178, %c0_179], %420 {strides = array<i32>} : memref<1x1x2xf32, #tpu.memory_space<vmem>>, vector<1x1x2xf32>,
    return
  }
  func.func @transform_0(%arg0: i32) -> (i32, i32, i32) {
    %c0_i32 = arith.constant 0 : i32
    %c0_i32_0 = arith.constant 0 : i32
    %c0_i32_1 = arith.constant 0 : i32
    return %arg0, %c0_i32, %c0_i32_0 : i32, i32, i32
  }
  func.func @transform_1(%arg0: i32) -> (i32, i32) {
    %c0_i32 = arith.constant 0 : i32
    %c0_i32_0 = arith.constant 0 : i32
    %c0_i32_1 = arith.constant 0 : i32
    return %c0_i32, %c0_i32_0 : i32, i32
  }
  func.func @transform_2(%arg0: i32) -> (i32, i32) {
    %c0_i32 = arith.constant 0 : i32
    %c0_i32_0 = arith.constant 0 : i32
    %c0_i32_1 = arith.constant 0 : i32
    return %c0_i32, %c0_i32_0 : i32, i32
  }
  func.func @transform_3(%arg0: i32) -> (i32, i32) {
    %c0_i32 = arith.constant 0 : i32
    %c0_i32_0 = arith.constant 0 : i32
    %c0_i32_1 = arith.constant 0 : i32
    return %c0_i32, %c0_i32_0 : i32, i32
  }
  func.func @transform_4(%arg0: i32) -> (i32, i32, i32) {
    %c0_i32 = arith.constant 0 : i32
    %c0_i32_0 = arith.constant 0 : i32
    %c0_i32_1 = arith.constant 0 : i32
    %c0_i32_2 = arith.constant 0 : i32
    return %c0_i32, %c0_i32_0, %c0_i32_1 : i32, i32, i32
  }
  func.func @transform_5(%arg0: i32) -> (i32, i32, i32) {
    %c0_i32 = arith.constant 0 : i32
    %c0_i32_0 = arith.constant 0 : i32
    %c0_i32_1 = arith.constant 0 : i32
    %c0_i32_2 = arith.constant 0 : i32
    return %c0_i32, %c0_i32_0, %c0_i32_1 : i32, i32, i32
  }
  func.func @transform_6(%arg0: i32) -> (i32, i32, i32) {
    %c0_i32 = arith.constant 0 : i32
    %c0_i32_0 = arith.constant 0 : i32
    %c0_i32_1 = arith.constant 0 : i32
    %c0_i32_2 = arith.constant 0 : i32
    return %c0_i32, %c0_i32_0, %c0_i32_1 : i32, i32, i32
  }
  func.func @transform_7(%arg0: i32) -> (i32, i32, i32) {
    %c0_i32 = arith.constant 0 : i32
    %c0_i32_0 = arith.constant 0 : i32
    %c0_i32_1 = arith.constant 0 : i32
    %c0_i32_2 = arith.constant 0 : i32
    return %c0_i32, %c0_i32_0, %c0_i32_1 : i32, i32, i32
  }
  func.func @transform_8(%arg0: i32) -> (i32, i32, i32) {
    %c0_i32 = arith.constant 0 : i32
    %c0_i32_0 = arith.constant 0 : i32
    %c0_i32_1 = arith.constant 0 : i32
    %c0_i32_2 = arith.constant 0 : i32
    return %c0_i32, %c0_i32_0, %c0_i32_1 : i32, i32, i32
  }
  func.func @transform_9(%arg0: i32) -> (i32, i32, i32) {
    %c0_i32 = arith.constant 0 : i32
    %c0_i32_0 = arith.constant 0 : i32
    %c0_i32_1 = arith.constant 0 : i32
    %c0_i32_2 = arith.constant 0 : i32
    return %c0_i32, %c0_i32_0, %c0_i32_1 : i32, i32, i32
  }
  func.func @transform_10(%arg0: i32) -> (i32, i32, i32) {
    %c0_i32 = arith.constant 0 : i32
    %c0_i32_0 = arith.constant 0 : i32
    %c0_i32_1 = arith.constant 0 : i32
    %c0_i32_2 = arith.constant 0 : i32
    return %c0_i32, %c0_i32_0, %c0_i32_1 : i32, i32, i32
  }
  func.func @transform_11(%arg0: i32) -> (i32, i32, i32) {
    %c0_i32 = arith.constant 0 : i32
    %c0_i32_0 = arith.constant 0 : i32
    %c0_i32_1 = arith.constant 0 : i32
    %c0_i32_2 = arith.constant 0 : i32
    return %c0_i32, %c0_i32_0, %c0_i32_1 : i32, i32, i32
  }
  func.func @transform_12(%arg0: i32) -> (i32, i32, i32) {
    %c0_i32 = arith.constant 0 : i32
    %c0_i32_0 = arith.constant 0 : i32
    %c0_i32_1 = arith.constant 0 : i32
    %c0_i32_2 = arith.constant 0 : i32
    return %c0_i32, %c0_i32_0, %c0_i32_1 : i32, i32, i32
  }
  func.func @transform_13(%arg0: i32) -> (i32, i32, i32) {
    %c0_i32 = arith.constant 0 : i32
    %c0_i32_0 = arith.constant 0 : i32
    %c0_i32_1 = arith.constant 0 : i32
    %c0_i32_2 = arith.constant 0 : i32
    return %c0_i32, %c0_i32_0, %c0_i32_1 : i32, i32, i32
  }
  func.func @transform_14(%arg0: i32) -> (i32, i32, i32) {
    %c0_i32 = arith.constant 0 : i32
    %c0_i32_0 = arith.constant 0 : i32
    %c0_i32_1 = arith.constant 0 : i32
    %c0_i32_2 = arith.constant 0 : i32
    return %c0_i32, %c0_i32_0, %c0_i32_1 : i32, i32, i32
  }
  func.func @transform_15(%arg0: i32) -> (i32, i32, i32) {
    %c0_i32 = arith.constant 0 : i32
    %c0_i32_0 = arith.constant 0 : i32
    %c0_i32_1 = arith.constant 0 : i32
    %c0_i32_2 = arith.constant 0 : i32
    return %c0_i32, %c0_i32_0, %c0_i32_1 : i32, i32, i32
  }
  func.func @transform_16(%arg0: i32) -> (i32, i32) {
    %c0_i32 = arith.constant 0 : i32
    %c0_i32_0 = arith.constant 0 : i32
    %c0_i32_1 = arith.constant 0 : i32
    return %c0_i32, %c0_i32_0 : i32, i32
  }
  func.func @transform_17(%arg0: i32) -> (i32, i32) {
    %c0_i32 = arith.constant 0 : i32
    %c0_i32_0 = arith.constant 0 : i32
    %c0_i32_1 = arith.constant 0 : i32
    return %c0_i32, %c0_i32_0 : i32, i32
  }
  func.func @transform_18(%arg0: i32) -> (i32, i32) {
    %c0_i32 = arith.constant 0 : i32
    %c0_i32_0 = arith.constant 0 : i32
    %c0_i32_1 = arith.constant 0 : i32
    return %c0_i32, %c0_i32_0 : i32, i32
  }
  func.func @transform_19(%arg0: i32) -> (i32, i32) {
    %c0_i32 = arith.constant 0 : i32
    %c0_i32_0 = arith.constant 0 : i32
    %c0_i32_1 = arith.constant 0 : i32
    return %c0_i32, %c0_i32_0 : i32, i32
  }
  func.func @transform_20(%arg0: i32) -> (i32, i32, i32) {
    %c0_i32 = arith.constant 0 : i32
    %c0_i32_0 = arith.constant 0 : i32
    %c0_i32_1 = arith.constant 0 : i32
    return %arg0, %c0_i32, %c0_i32_0 : i32, i32, i32
  }
}

</mosaic_0001>

<bundles_post_ra>
// kernel: vit_forward.1
= control target key start
LH: loop header
LB: loop body
LE: loop exit
PB: predicated region body
PF: predicated region fallthrough
CT: control target
= control target key end

     0   :  { %s4917_s0 = inlined_call_operand.vmem [shape: f32[2,16,48], index: 0, kind: input, shape index: {}]   ;;  %s4918_s1 = inlined_call_operand.vmem [shape: bf16[48,32], index: 1, kind: input, shape index: {}]   ;;  %s4919_s2 = inlined_call_operand.vmem [shape: f32[1,32], index: 2, kind: input, shape index: {}]   ;;  %s4920_s3 = inlined_call_operand.vmem [shape: f32[24,32], index: 3, kind: input, shape index: {}]   ;;  %s4921_s4 = inlined_call_operand.vmem [shape: f32[2,1,32], index: 4, kind: input, shape index: {}]   ;;  %s4922_s5 = inlined_call_operand.vmem [shape: f32[2,1,32], index: 5, kind: input, shape index: {}]   ;;  %s4923_s6 = inlined_call_operand.vmem [shape: bf16[2,32,96], index: 6, kind: input, shape index: {}]   ;;  %s4924_s7 = inlined_call_operand.vmem [shape: f32[2,1,96], index: 7, kind: input, shape index: {}]   ;;  %s4925_s8 = inlined_call_operand.vmem [shape: bf16[2,32,32], index: 8, kind: input, shape index: {}]   ;;  %s4926_s9 = inlined_call_operand.vmem [shape: f32[2,1,32], index: 9, kind: input, shape index: {}]   ;;  %s4927_s10 = inlined_call_operand.vmem [shape: f32[2,1,32], index: 10, kind: input, shape index: {}]   ;;  %s4928_s11 = inlined_call_operand.vmem [shape: f32[2,1,32], index: 11, kind: input, shape index: {}]   ;;  %s4929_s12 = inlined_call_operand.vmem [shape: bf16[2,32,64], index: 12, kind: input, shape index: {}]   ;;  %s4930_s13 = inlined_call_operand.vmem [shape: f32[2,1,64], index: 13, kind: input, shape index: {}]   ;;  %s4931_s14 = inlined_call_operand.vmem [shape: bf16[2,64,32], index: 14, kind: input, shape index: {}]   ;;  %s4932_s15 = inlined_call_operand.vmem [shape: f32[2,1,32], index: 15, kind: input, shape index: {}]   ;;  %s4933_s16 = inlined_call_operand.vmem [shape: f32[1,32], index: 16, kind: input, shape index: {}]   ;;  %s4934_s17 = inlined_call_operand.vmem [shape: f32[1,32], index: 17, kind: input, shape index: {}]   ;;  %s4935_s18 = inlined_call_operand.vmem [shape: bf16[32,2], index: 18, kind: input, shape index: {}]   ;;  %s4936_s19 = inlined_call_operand.vmem [shape: f32[1,2], index: 19, kind: input, shape index: {}]   ;;  %s4937_s20 = inlined_call_operand.hbm [shape: f32[2,1,2], index: 20, kind: output, shape index: {}]  }
   0x1   :  { %4975 = sst [smem:[#allocation11_spill]] %s4917_s0 }
   0x2   :  { %4976 = sst [smem:[#allocation12_spill]] %s4918_s1 }
   0x3   :  { %4977 = sst [smem:[#allocation13_spill]] %s4919_s2 }
   0x4   :  { %4978 = sst [smem:[#allocation14_spill]] %s4920_s3 }
   0x5   :  { %4979 = sst [smem:[#allocation15_spill]] %s4921_s4 }
   0x6   :  { %25 = vsyncpa [#allocation3], 0 }
   0x7   :  { %27 = vsyncpa [#allocation3 + $0x1], 0  ;;  %s4221_s1 = smov 0   ;;  %s4223_s22 = smov 0  }
   0x8   :  { %s4225_s23 = smov 0   ;;  %s4227_s24 = smov 0  }
   0x9 LB: > { %4980 = sst [smem:[#allocation5_spill]] %s4085_s1  ;;  %s4242_s2 = sadd.s32 4294967295, %s4097_s24   ;;  %s4097_s24 = sphi %s4227_s24, %s5010_s24   ;;  %s4093_s23 = sphi %s4225_s23, %s5012_s23   ;;  %s4089_s22 = sphi %s4223_s22, %s5014_s22   ;;  %s4085_s1 = sphi %s4221_s1, %s5013_s1  }
   0xa   : > { %4981 = sst [smem:[#allocation6_spill]] %s4093_s23  ;;  %s3312_s25 = sadd.s32 4294967294, %s4097_s24  }
   0xb   : > { %4982 = sst [smem:[#allocation7_spill]] %s4097_s24  ;;  %s4246_s3 = sadd.s32 1, %s4097_s24  }
   0xc   : > { %4983 = sst [smem:[#allocation8_spill]] %s4246_s3  ;;  %s465_s26 = sadd.s32 1, %s4093_s23 }
   0xd   : > { %s462_s27 = ssub.s32 %s4097_s24, %s4246_s3  ;;  %p475_p0 = scmp.ne.s32.totalorder %s4093_s23, %s4089_s22 }
   0xe   : > { %p463_p1 = scmp.eq.s32.totalorder %s462_s27, 0  ;;  %p476_p2 = scmp.eq.s32.totalorder %s4242_s2, 1 }
   0xf   : > { %p481_p3 = scmp.ne.s32.totalorder %s4089_s22, %s4085_s1  ;;  %p482_p4 = scmp.eq.s32.totalorder %s3312_s25, 1 }
  0x10   : > { %s4257_s28 = scalar_select %p463_p1, %s4093_s23, %s465_s26  }
  0x11   : > { %p4259_p5 = por %p476_p2, %p475_p0  ;;  %p4263_p6 = por %p482_p4, %p481_p3 }
  0x12   : > { %4984 = sst [smem:[#allocation9_spill]] %s4257_s28  ;;  %p3315_p7 = scmp.ge.s32.totalorder %s4097_s24, 1 }
  0x13   : > { %s4986_s29 = scalar_select %p4263_p6, 1, 0 }
  0x14   : > { %p565_p8 = scmp.lt.s32.totalorder %s4097_s24, 3 }
  0x15   : > { %4987 = sst [smem:[#allocation10_spill]] %s4986_s29 }
  0x16   : > { %p566_p9 = pnand %p3315_p7, %p565_p8 }
  0x17   : > { %s4988_s21 = sld [smem:[#allocation12_spill]] (!%p566_p9)  ;;  %p622_p10 = scmp.lt.s32.totalorder (!%p566_p9), %s4242_s2, 1 }
  0x18   : > { %569 = sbr.rel (%p566_p9) target bundleno = 8820 (0x2274), region = 100  ;;  %s4989_s25 = sld [smem:[#allocation11_spill]] (!%p566_p9) }
  0x19   : > { %s4990_s24 = sld [smem:[#allocation13_spill]] (!%p566_p9)  ;;  %s4967_s30 = smov (!%p566_p9), 88  }
  0x1a   : > { %s4991_s0 = sld [smem:[#allocation14_spill]] (!%p566_p9)  ;;  %s4961_s1 = smov (!%p566_p9), 80  }
  0x1b   : > { %s4992_s23 = sld [smem:[#allocation15_spill]] (!%p566_p9)  ;;  %s4951_s29 = smov (!%p566_p9), 72  }
  0x1d   : > { %v3878_v0 = vld [vmem:[%s4988_s21 + $0x10] sm:$0xff]   ;;  %v4099_v1 = vmov 0.0   ;;  %v3879_v2 = vld [vmem:[%s4988_s21 + $0x8] sm:$0xff]   ;;  %vm4100_vm0 = vmmov 0   ;;  %s623_s27 = scalar_select %p622_p10, %s4242_s2, 1  ;;  %v3880_v3 = vld [vmem:[%s4988_s21] sm:$0xff]  }
  0x1e   : > { %3551 = vmatprep.subr.bf16.mxu0 %v4099_v1  ;;  %3557 = vmatprep.mubr.msk.bf16.mxu0 %vm4100_vm0, %v4099_v1  ;;  %vm662_vm1 = vcmask 392192   ;;  %vm709_vm2 = vcmask 1040384   ;;  %vm729_vm3 = vcmask 261120   ;;  %v3881_v43 = vld [vmem:[%s4923_s6 + $0x8] sm:$0xff]   ;;  %v3882_v44 = vld [vmem:[%s4923_s6] sm:$0xff]   ;;  %vm875_vm4 = vcmask 64512  }
  0x1f   : > { %3552 = vmatpush3.bf16.msra.mxu0 %v3878_v0  ;;  %s3443_s28 = sshll.u32 %s623_s27, 4  ;;  %v3318_v7 = vld [vmem:[%s4990_s24] ss:$0 sm:$0xff]  ;;  %3561 = vmatprep.subr.bf16.mxu1 %v3881_v43  ;;  %vm942_vm6 = vcmask 195584   ;;  %s4969_s27 = smov 120   ;;  %vm989_vm7 = vcmask 1043456  }
  0x20   : > { %3553 = vmatprep.subr.bf16.mxu0 %v4099_v1  ;;  %s626_s26 = scalar_lea.vmem %s4989_s25, %s3443_s28  ;;  %v718_v12 = vld [vmem:[%s4991_s0] sm:$0xff]  ;;  %v720_v19 = vld [vmem:[%s4991_s0 + $0x10] sm:$0xff]  ;;  %v719_v20 = vld [vmem:[%s4991_s0 + $0x8] sm:$0xff]  ;;  %3562 = vmatpush3.bf16.msra.mxu1 %v3881_v43  ;;  %s4101_s25 = smov 96   ;;  %vm1593_vm8 = vcmask 130048   ;;  %vm1872_vm9 = vcmask 523264  }
  0x21   : > { %v628_v4 = vld [vmem:[%s626_s26] sm:$0xff]  ;;  %v629_v5 = vld [vmem:[%s626_s26 + $0x8] sm:$0xff]  ;;  %3563 = vmatprep.subr.bf16.mxu1 %v3882_v44  ;;  %s4993_s3 = smov %s4992_s23  ;;  %s4971_s26 = smov 64   ;;  %vm3242_vm10 = vcmask 8192  }
  0x22   : > { %v636_v6 = vpack.c.bf16 %v629_v5, %v628_v4  ;;  %v3323_v56 = vld [vmem:[%s4992_s23] ss:$0 sm:$0xff]  ;;  %s4963_s23 = smov 56   ;;  %s4947_s24 = smov 112  }
  0x23   : > { %3554 = vmatpush3.bf16.msra.mxu0 %v3879_v2  ;;  %v3324_v62 = vld [vmem:[%s4922_s5] ss:$0 sm:$0xff]  ;;  %s4953_s28 = smov 48  }
  0x24   : > { %3555 = vmatprep.subr.bf16.mxu0 %v4099_v1  ;;  %3564 = vmatpush3.bf16.msra.mxu1 %v3882_v44 }
  0x27   : > { %3556 = vmatpush3.bf16.msra.mxu0 %v3880_v3 }
  0x2a   : > { %3558 = vmatmul.mubr.msk.bf16.vlgmr.msra.gmra.mxu0 %vm662_vm1, %v636_v6 }
  0xea   : > { %v700_v8 = vpop.f32.mrf.mxu0 }
  0xeb   : > { %v701_v9 = vadd.f32 %v3318_v7, %v700_v8 }
  0xec   : > { %v3559_v10 = vpop.f32.mrf.mxu0 }
  0xed   : > { %v710_v11 = vrot.slane %v701_v9, 7 }
  0xee   : > { %v703_v13 = vpop.f32.mrf.mxu0 }
  0xef   : > { %v716_v14 = vsel %vm709_vm2, 0.0, %v710_v11  ;;  %v704_v15 = vadd.f32 %v3318_v7, %v703_v13  ;;  %v3325_v7 = vld [vmem:[%s4924_s7] ss:$0 sm:$0xff] }
  0xf0   : > { %v4294_v16 = vadd.f32 %v718_v12, %v716_v14  ;;  %v3560_v17 = vpop.f32.mrf.mxu0 }
  0xf1   : > { %v711_v18 = vrot.slane %v704_v15, 7 }
  0xf2   : > { %v730_v21 = vsel %vm729_vm3, %v4294_v16, 0.0 }
  0xf3   : > { %v712_v22 = vsel %vm709_vm2, %v710_v11, %v711_v18  ;;  %v717_v23 = vsel %vm709_vm2, %v711_v18, 0.0  ;;  %731 = vadd.xlane.f32.xlu0 %v730_v21 }
  0xf4   : > { %v4304_v24 = vadd.f32 %v720_v19, %v717_v23  ;;  %v4306_v25 = vadd.f32 %v719_v20, %v712_v22  ;;  %v724_v22 = vlaneseq }
  0xf6   : > { %v736_v26 = vsel %vm729_vm3, %v4304_v24, 0.0  ;;  %v733_v27 = vsel %vm729_vm3, %v4306_v25, 0.0 }
  0xf7   : > { %737 = vadd.xlane.f32.xlu1 %v736_v26  ;;  %734 = vadd.xlane.f32.xlu0 %v733_v27  ;;  %v4351_v26 = vand.u32 127, %v724_v22 }
  0xf9   : > { %vm726_vm5 = vcmp.lt.s32.totalorder %v4351_v26, 17 }
 0x17c   : > { %v732_v28 = vpop.xlane.xlu0 %731 }
 0x17d   : > { %v740_v29 = vmul.f32 0.03125, %v732_v28 }
 0x17f   : > { %v743_v30 = vsub.f32 %v4294_v16, %v740_v29 }
 0x180   : > { %v738_v31 = vpop.xlane.xlu1 %737  ;;  %v735_v32 = vpop.xlane.xlu0 %734 }
 0x181   : > { %v742_v33 = vmul.f32 0.03125, %v738_v31  ;;  %v741_v34 = vmul.f32 0.03125, %v735_v32  ;;  %v746_v35 = vmul.f32 %v743_v30, %v743_v30 }
 0x183   : > { %v745_v36 = vsub.f32 %v4304_v24, %v742_v33  ;;  %v744_v37 = vsub.f32 %v4306_v25, %v741_v34  ;;  %v749_v38 = vsel %vm729_vm3, %v746_v35, 0.0 }
 0x184   : > { %750 = vadd.xlane.f32.xlu1 %v749_v38 }
 0x185   : > { %v748_v39 = vmul.f32 %v745_v36, %v745_v36  ;;  %v747_v40 = vmul.f32 %v744_v37, %v744_v37 }
 0x187   : > { %v755_v41 = vsel %vm729_vm3, %v748_v39, 0.0  ;;  %v752_v42 = vsel %vm729_vm3, %v747_v40, 0.0 }
 0x188   : > { %756 = vadd.xlane.f32.xlu1 %v755_v41  ;;  %753 = vadd.xlane.f32.xlu0 %v752_v42 }
 0x20d   : > { %v751_v45 = vpop.xlane.xlu1 %750 }
 0x20e   : > { %v758_v46 = vmul.f32 0.03125, %v751_v45 }
 0x210   : > { %v761_v47 = vadd.f32 1e-12, %v758_v46 }
 0x211   : > { %v757_v48 = vpop.xlane.xlu1 %756  ;;  %v754_v49 = vpop.xlane.xlu0 %753 }
 0x212   : > { %3903 = vrsqrt.f32 %v761_v47  ;;  %v760_v50 = vmul.f32 0.03125, %v757_v48  ;;  %v759_v51 = vmul.f32 0.03125, %v754_v49 }
 0x214   : > { %v763_v52 = vadd.f32 1e-12, %v760_v50  ;;  %v762_v53 = vadd.f32 1e-12, %v759_v51 }
 0x216   : > { %3905 = vrsqrt.f32 %v763_v52 }
 0x217   : > { %3907 = vrsqrt.f32 %v762_v53 }
 0x21f   : > { %v3904_v54 = vpop.eup %3903 }
 0x220   : > { %v767_v55 = vmul.f32 %v3904_v54, %v743_v30 }
 0x222   : > { %v776_v61 = vmul.f32 %v3323_v56, %v767_v55 }
 0x223   : > { %v3906_v57 = vpop.eup %3905 }
 0x224   : > { %v3908_v58 = vpop.eup %3907  ;;  %v769_v59 = vmul.f32 %v3906_v57, %v745_v36  ;;  %v785_v3 = vadd.f32 %v3324_v62, %v776_v61 }
 0x225   : > { %v768_v60 = vmul.f32 %v3908_v58, %v744_v37 }
 0x226   : > { %v778_v63 = vmul.f32 %v3323_v56, %v769_v59 }
 0x227   : > { %v777_v0 = vmul.f32 %v3323_v56, %v768_v60 }
 0x228   : > { %v787_v2 = vadd.f32 %v3324_v62, %v778_v63 }
 0x229   : > { %v786_v4 = vadd.f32 %v3324_v62, %v777_v0 }
 0x22a   : > { %v793_v5 = vpack.c.bf16 %v787_v2, %v787_v2 }
 0x22b   : > { %v792_v6 = vpack.c.bf16 %v786_v4, %v785_v3 }
 0x22d   : > { %3565 = vmatprep.mubr.msk.bf16.mxu1 %vm729_vm3, %v792_v6 }
 0x22e   : > { %3566 = vmatmul.mubr.msk.bf16.vlgmr.msra.gmra.mxu1 %vm729_vm3, %v793_v5 }
 0x2ee   : > { %v3567_v8 = vpop.f32.mrf.mxu1 }
 0x2ef   : > { %v862_v9 = vadd.f32 %v3567_v8, %v3325_v7 }
 0x2f0   : > { %v853_v10 = vpop.f32.mrf.mxu1 }
 0x2f1   : > { %v4335_v11 = vpack.c.bf16 %v862_v9, %v862_v9  ;;  %v854_v14 = vadd.f32 %v3325_v7, %v853_v10 }
 0x2f2   : > { %v3568_v12 = vpop.f32.mrf.mxu1 }
 0x2f3   : > { %873 = vrot.lane.b32.xlu0 %v4335_v11, %s4101_s25 }
 0x2f4   : > { %v856_v13 = vpop.f32.mrf.mxu1 }
 0x2f5   : > { %v857_v15 = vadd.f32 %v3325_v7, %v856_v13 }
 0x2f7   : > { %v4339_v17 = vpack.c.bf16 %v857_v15, %v854_v14 }
 0x2f9   : > { %871 = vrot.lane.b32.xlu1 %v4339_v17, %s4101_s25  ;;  %3573 = vmatprep.mubr.msk.bf16.mxu1 %vm875_vm4, %v4339_v17 }
 0x365   : > { %v874_v18 = vpop.permute.xlu0 %873 }
 0x366   : > { %3769 = vmatprep.subr.msk.bf16.mxu1 %vm875_vm4, %v874_v18  ;;  %v886_v19 = vsel %vm875_vm4, %v874_v18, 0 }
 0x367   : > { %3570 = vmatpush3.bf16.xpose.msra.mxu1 %v886_v19 }
 0x36b   : > { %v872_v20 = vpop.permute.xlu1 %871 }
 0x36c   : > { %3770 = vmatprep.subr.msk.bf16.mxu1 %vm875_vm4, %v872_v20  ;;  %v883_v21 = vsel %vm875_vm4, %v872_v20, 0 }
 0x36f   : > { %3572 = vmatpush3.bf16.xpose.msra.mxu1 %v883_v21 }
 0x376   : > { %3574 = vmatmul.mubr.msk.bf16.vlgmr.msra.gmra.mxu1 %vm875_vm4, %v4335_v11 }
 0x436   : > { %v3575_v23 = vpop.f32.mrf.mxu1 }
 0x437   : > { %v938_v33 = vmul.f32 0.35355338, %v3575_v23 }
 0x438   : > { %v922_v27 = vpop.f32.mrf.mxu1 }
 0x439   : > { %v936_v28 = vmul.f32 0.35355338, %v922_v27  ;;  %v941_v37 = vsel %vm726_vm5, %v938_v33, -1e+30 }
 0x43a   : > { %v3576_v29 = vpop.f32.mrf.mxu1  ;;  %v949_v38 = vsel %vm942_vm6, %v941_v37, -inf }
 0x43b   : > { %v939_v30 = vsel %vm726_vm5, %v936_v28, -1e+30 }
 0x43c   : > { %v925_v31 = vpop.f32.mrf.mxu1  ;;  %v943_v32 = vsel %vm942_vm6, %v939_v30, -inf }
 0x43d   : > { %v937_v34 = vmul.f32 0.35355338, %v925_v31  ;;  %944 = vmax.xlane.f32.xlu1 %v943_v32 }
 0x43f   : > { %v940_v35 = vsel %vm726_vm5, %v937_v34, -1e+30 }
 0x440   : > { %v946_v36 = vsel %vm942_vm6, %v940_v35, -inf }
 0x441   : > { %947 = vmax.xlane.f32.xlu0 %v946_v36 }
 0x445   : > { %950 = vmax.xlane.f32.xlu0 %v949_v38 }
 0x4c6   : > { %v945_v39 = vpop.xlane.xlu1 %944 }
 0x4c7   : > { %v952_v42 = vsub.f32 %v939_v30, %v945_v39 }
 0x4c9   : > { %v955_v46 = vmul.f32 1.442695, %v952_v42 }
 0x4ca   : > { %v948_v40 = vpop.xlane.xlu0 %947 }
 0x4cb   : > { %v953_v41 = vsub.f32 %v940_v35, %v948_v40 }
 0x4cd   : > { %v957_v43 = vmul.f32 1.442695, %v953_v41 }
 0x4ce   : > { %v951_v44 = vpop.xlane.xlu0 %950 }
 0x4cf   : > { %3909 = vpow2.f32 %v957_v43  ;;  %v954_v45 = vsub.f32 %v941_v37, %v951_v44 }
 0x4d1   : > { %v959_v47 = vmul.f32 1.442695, %v954_v45 }
 0x4d3   : > { %3911 = vpow2.f32 %v959_v47 }
 0x4d4   : > { %3913 = vpow2.f32 %v955_v46 }
 0x4dc   : > { %v3910_v48 = vpop.eup %3909 }
 0x4dd   : > { %v964_v49 = vsel %vm942_vm6, %v3910_v48, 0.0 }
 0x4de   : > { %965 = vadd.xlane.f32.xlu0 %v964_v49 }
 0x4e0   : > { %v3912_v50 = vpop.eup %3911 }
 0x4e1   : > { %v967_v51 = vsel %vm942_vm6, %v3912_v50, 0.0  ;;  %v3914_v52 = vpop.eup %3913 }
 0x4e2   : > { %968 = vadd.xlane.f32.xlu1 %v967_v51  ;;  %v961_v53 = vsel %vm942_vm6, %v3914_v52, 0.0 }
 0x4e6   : > { %962 = vadd.xlane.f32.xlu1 %v961_v53 }
 0x4f4   : > { %980 = vrot.lane.b32.xlu0 %v4335_v11, %s4971_s26 }
 0x4f7   : > { %978 = vrot.lane.b32.xlu1 %v4339_v17, %s4971_s26  ;;  %s4999_s26 = smov 112  }
 0x4f8   : > { %1041 = vrot.lane.b32.xlu0 %v4339_v17, %s4969_s27 }
 0x4fb   : > { %1047 = vrot.lane.b32.xlu1 %v4335_v11, %s4967_s30 }
 0x4ff   : > { %1045 = vrot.lane.b32.xlu1 %v4339_v17, %s4967_s30  ;;  %s5001_s30 = smov 72  }
 0x503   : > { %1043 = vrot.lane.b32.xlu1 %v4335_v11, %s4969_s27  ;;  %s5000_s27 = smov 48  }
 0x567   : > { %v966_v54 = vpop.xlane.xlu0 %965 }
 0x56b   : > { %v969_v55 = vpop.xlane.xlu1 %968  ;;  %v981_v56 = vpop.permute.xlu0 %980 }
 0x56c   : > { %3771 = vmatprep.subr.msk.bf16.mxu0 %vm989_vm7, %v981_v56  ;;  %v991_v57 = vsel %vm989_vm7, %v981_v56, 0  ;;  %3915 = vrcp.f32 %v969_v55 }
 0x56d   : > { %3578 = vmatpush3.bf16.msra.mxu0 %v991_v57  ;;  %3917 = vrcp.f32 %v966_v54 }
 0x56f   : > { %v963_v58 = vpop.xlane.xlu1 %962  ;;  %v1042_v6 = vpop.permute.xlu0 %1041 }
 0x570   : > { %3919 = vrcp.f32 %v963_v58 }
 0x573   : > { %v979_v59 = vpop.permute.xlu1 %978 }
 0x574   : > { %3579 = vmatprep.subr.bf16.mxu0 %v979_v59 }
 0x575   : > { %3580 = vmatpush3.bf16.msra.mxu0 %v979_v59 }
 0x577   : > { %v1048_v60 = vpop.permute.xlu1 %1047 }
 0x578   : > { %3772 = vmatprep.subr.msk.bf16.mxu0 %vm875_vm4, %v1048_v60  ;;  %v1059_v7 = vsel %vm875_vm4, %v1048_v60, 0 }
 0x579   : > { %v3916_v61 = vpop.eup %3915 }
 0x57a   : > { %v3918_v62 = vpop.eup %3917  ;;  %v975_v0 = vmul.f32 %v3916_v61, %v3912_v50 }
 0x57b   : > { %v974_v3 = vmul.f32 %v3918_v62, %v3910_v48  ;;  %v1046_v8 = vpop.permute.xlu1 %1045 }
 0x57c   : > { %v977_v5 = vpack.c.bf16 %v975_v0, %v975_v0  ;;  %v1056_v9 = vsel %vm875_vm4, %v1046_v8, 0 }
 0x57d   : > { %v3920_v63 = vpop.eup %3919 }
 0x57e   : > { %v973_v2 = vmul.f32 %v3920_v63, %v3914_v52 }
 0x57f   : > { %v1044_v10 = vpop.permute.xlu1 %1043 }
 0x580   : > { %v976_v4 = vpack.c.bf16 %v974_v3, %v973_v2 }
 0x582   : > { %3581 = vmatprep.mubr.msk.bf16.mxu0 %vm942_vm6, %v976_v4 }
 0x583   : > { %3582 = vmatmul.mubr.msk.bf16.vlgmr.msra.gmra.mxu0 %vm942_vm6, %v977_v5 }
 0x584   : > { %3586 = vmatpush3.bf16.xpose.msra.mxu0 %v1059_v7  ;;  %3589 = vmatprep.mubr.msk.bf16.mxu0 %vm875_vm4, %v1042_v6 }
 0x585   : > { %3773 = vmatprep.subr.msk.bf16.mxu0 %vm875_vm4, %v1046_v8 }
 0x58c   : > { %3588 = vmatpush3.bf16.xpose.msra.mxu0 %v1056_v9 }
 0x593   : > { %3590 = vmatmul.mubr.msk.bf16.vlgmr.msra.gmra.mxu0 %vm875_vm4, %v1044_v10 }
 0x643   : > { %v4388_v12 = vpop.f32.mrf.mxu0 }
 0x645   : > { %v4390_v13 = vpop.f32.mrf.mxu0 }
 0x647   : > { %v3584_v14 = vpop.f32.mrf.mxu0 }
 0x649   : > { %v4392_v15 = vpop.f32.mrf.mxu0 }
 0x653   : > { %v3591_v18 = vpop.f32.mrf.mxu0 }
 0x654   : > { %v1111_v20 = vmul.f32 0.35355338, %v3591_v18 }
 0x655   : > { %v1095_v19 = vpop.f32.mrf.mxu0 }
 0x656   : > { %v1109_v21 = vmul.f32 0.35355338, %v1095_v19  ;;  %v1114_v30 = vsel %vm726_vm5, %v1111_v20, -1e+30 }
 0x657   : > { %v3592_v22 = vpop.f32.mrf.mxu0  ;;  %v1121_v32 = vsel %vm942_vm6, %v1114_v30, -inf }
 0x658   : > { %v1112_v23 = vsel %vm726_vm5, %v1109_v21, -1e+30 }
 0x659   : > { %v1098_v27 = vpop.f32.mrf.mxu0  ;;  %v1115_v28 = vsel %vm942_vm6, %v1112_v23, -inf }
 0x65a   : > { %v1110_v29 = vmul.f32 0.35355338, %v1098_v27  ;;  %1116 = vmax.xlane.f32.xlu0 %v1115_v28 }
 0x65c   : > { %v1113_v31 = vsel %vm726_vm5, %v1110_v29, -1e+30 }
 0x65d   : > { %v1118_v33 = vsel %vm942_vm6, %v1113_v31, -inf }
 0x65e   : > { %1122 = vmax.xlane.f32.xlu0 %v1121_v32  ;;  %1119 = vmax.xlane.f32.xlu1 %v1118_v33 }
 0x6e3   : > { %v1117_v34 = vpop.xlane.xlu0 %1116 }
 0x6e4   : > { %v1124_v35 = vsub.f32 %v1112_v23, %v1117_v34 }
 0x6e6   : > { %v1127_v36 = vmul.f32 1.442695, %v1124_v35 }
 0x6e7   : > { %v1123_v37 = vpop.xlane.xlu0 %1122  ;;  %v1120_v38 = vpop.xlane.xlu1 %1119 }
 0x6e8   : > { %3921 = vpow2.f32 %v1127_v36  ;;  %v1126_v39 = vsub.f32 %v1114_v30, %v1123_v37  ;;  %v1125_v40 = vsub.f32 %v1113_v31, %v1120_v38 }
 0x6ea   : > { %v1131_v41 = vmul.f32 1.442695, %v1126_v39  ;;  %v1129_v42 = vmul.f32 1.442695, %v1125_v40 }
 0x6ec   : > { %3923 = vpow2.f32 %v1131_v41 }
 0x6ed   : > { %3925 = vpow2.f32 %v1129_v42 }
 0x6f5   : > { %v3922_v43 = vpop.eup %3921 }
 0x6f6   : > { %v1133_v44 = vsel %vm942_vm6, %v3922_v43, 0.0 }
 0x6f7   : > { %1134 = vadd.xlane.f32.xlu0 %v1133_v44 }
 0x6f9   : > { %v3924_v45 = vpop.eup %3923 }
 0x6fa   : > { %v3926_v46 = vpop.eup %3925  ;;  %v1139_v47 = vsel %vm942_vm6, %v3924_v45, 0.0 }
 0x6fb   : > { %1140 = vadd.xlane.f32.xlu1 %v1139_v47  ;;  %v1136_v48 = vsel %vm942_vm6, %v3926_v46, 0.0 }
 0x6fc   : > { %1137 = vadd.xlane.f32.xlu0 %v1136_v48 }
 0x70c   : > { %1150 = vrot.lane.b32.xlu1 %v4339_v17, %s4963_s23 }
 0x710   : > { %1218 = vrot.lane.b32.xlu1 %v4335_v11, %s4961_s1 }
 0x712   : > { %1152 = vrot.lane.b32.xlu0 %v4335_v11, %s4963_s23  ;;  %s4965_s23 = smov 24  }
 0x714   : > { %1216 = vrot.lane.b32.xlu1 %v4339_v17, %s4961_s1  ;;  %s4995_s1 = smov 120  }
 0x716   : > { %1212 = vrot.lane.b32.xlu0 %v4339_v17, %s4947_s24 }
 0x718   : > { %1214 = vrot.lane.b32.xlu1 %v4335_v11, %s4947_s24  ;;  %s4949_s24 = smov 104  }
 0x780   : > { %v1135_v49 = vpop.xlane.xlu0 %1134 }
 0x781   : > { %3927 = vrcp.f32 %v1135_v49 }
 0x784   : > { %v1141_v50 = vpop.xlane.xlu1 %1140 }
 0x785   : > { %v1138_v51 = vpop.xlane.xlu0 %1137  ;;  %3929 = vrcp.f32 %v1141_v50 }
 0x786   : > { %3931 = vrcp.f32 %v1138_v51 }
 0x788   : > { %v1151_v53 = vpop.permute.xlu1 %1150 }
 0x789   : > { %v1153_v52 = vpop.permute.xlu0 %1152 }
 0x78a   : > { %3774 = vmatprep.subr.msk.bf16.mxu1 %vm989_vm7, %v1153_v52  ;;  %v1162_v54 = vsel %vm989_vm7, %v1153_v52, 0 }
 0x78b   : > { %3594 = vmatpush3.bf16.msra.mxu1 %v1162_v54 }
 0x78c   : > { %3595 = vmatprep.subr.bf16.mxu1 %v1151_v53  ;;  %v1219_v55 = vpop.permute.xlu1 %1218 }
 0x78d   : > { %v1213_v0 = vpop.permute.xlu0 %1212  ;;  %v1230_v2 = vsel %vm875_vm4, %v1219_v55, 0 }
 0x78e   : > { %v3928_v56 = vpop.eup %3927 }
 0x78f   : > { %3596 = vmatpush3.bf16.msra.mxu1 %v1151_v53  ;;  %v1145_v60 = vmul.f32 %v3928_v56, %v3922_v43 }
 0x790   : > { %3775 = vmatprep.subr.msk.bf16.mxu1 %vm875_vm4, %v1219_v55  ;;  %v1217_v3 = vpop.permute.xlu1 %1216 }
 0x791   : > { %v1227_v4 = vsel %vm875_vm4, %v1217_v3, 0 }
 0x792   : > { %v3930_v57 = vpop.eup %3929 }
 0x793   : > { %v3932_v58 = vpop.eup %3931  ;;  %v1147_v59 = vmul.f32 %v3930_v57, %v3924_v45 }
 0x794   : > { %v1146_v61 = vmul.f32 %v3932_v58, %v3926_v46  ;;  %v1215_v5 = vpop.permute.xlu1 %1214 }
 0x795   : > { %v1149_v62 = vpack.c.bf16 %v1147_v59, %v1147_v59 }
 0x796   : > { %v1148_v63 = vpack.c.bf16 %v1146_v61, %v1145_v60 }
 0x798   : > { %3597 = vmatprep.mubr.msk.bf16.mxu1 %vm942_vm6, %v1148_v63 }
 0x799   : > { %3598 = vmatmul.mubr.msk.bf16.vlgmr.msra.gmra.mxu1 %vm942_vm6, %v1149_v62 }
 0x79a   : > { %3602 = vmatpush3.bf16.xpose.msra.mxu1 %v1230_v2  ;;  %3605 = vmatprep.mubr.msk.bf16.mxu1 %vm875_vm4, %v1213_v0 }
 0x79b   : > { %3776 = vmatprep.subr.msk.bf16.mxu1 %vm875_vm4, %v1217_v3 }
 0x7a2   : > { %3604 = vmatpush3.bf16.xpose.msra.mxu1 %v1227_v4 }
 0x7a9   : > { %3606 = vmatmul.mubr.msk.bf16.vlgmr.msra.gmra.mxu1 %vm875_vm4, %v1215_v5 }
 0x859   : > { %v4428_v6 = vpop.f32.mrf.mxu1 }
 0x85b   : > { %v4430_v7 = vpop.f32.mrf.mxu1 }
 0x85d   : > { %v3600_v8 = vpop.f32.mrf.mxu1 }
 0x85f   : > { %v4432_v9 = vpop.f32.mrf.mxu1 }
 0x860   : > { %v3848_v10 = vpack.i.bf16 %v4432_v9, %v4430_v7 }
 0x869   : > { %v3607_v14 = vpop.f32.mrf.mxu1 }
 0x86a   : > { %v1282_v19 = vmul.f32 0.35355338, %v3607_v14 }
 0x86b   : > { %v1266_v18 = vpop.f32.mrf.mxu1 }
 0x86c   : > { %v1280_v20 = vmul.f32 0.35355338, %v1266_v18  ;;  %v1285_v29 = vsel %vm726_vm5, %v1282_v19, -1e+30 }
 0x86d   : > { %v3608_v21 = vpop.f32.mrf.mxu1  ;;  %v1292_v31 = vsel %vm942_vm6, %v1285_v29, -inf }
 0x86e   : > { %v1283_v22 = vsel %vm726_vm5, %v1280_v20, -1e+30 }
 0x86f   : > { %v1269_v23 = vpop.f32.mrf.mxu1  ;;  %v1286_v27 = vsel %vm942_vm6, %v1283_v22, -inf }
 0x870   : > { %v1281_v28 = vmul.f32 0.35355338, %v1269_v23  ;;  %1287 = vmax.xlane.f32.xlu0 %v1286_v27 }
 0x872   : > { %v1284_v30 = vsel %vm726_vm5, %v1281_v28, -1e+30 }
 0x873   : > { %v1289_v32 = vsel %vm942_vm6, %v1284_v30, -inf }
 0x874   : > { %1293 = vmax.xlane.f32.xlu0 %v1292_v31  ;;  %1290 = vmax.xlane.f32.xlu1 %v1289_v32 }
 0x8f9   : > { %v1288_v33 = vpop.xlane.xlu0 %1287 }
 0x8fa   : > { %v1295_v34 = vsub.f32 %v1283_v22, %v1288_v33 }
 0x8fc   : > { %v1298_v35 = vmul.f32 1.442695, %v1295_v34 }
 0x8fd   : > { %v1294_v36 = vpop.xlane.xlu0 %1293  ;;  %v1291_v37 = vpop.xlane.xlu1 %1290 }
 0x8fe   : > { %3933 = vpow2.f32 %v1298_v35  ;;  %v1297_v38 = vsub.f32 %v1285_v29, %v1294_v36  ;;  %v1296_v39 = vsub.f32 %v1284_v30, %v1291_v37 }
 0x900   : > { %v1302_v40 = vmul.f32 1.442695, %v1297_v38  ;;  %v1300_v41 = vmul.f32 1.442695, %v1296_v39 }
 0x902   : > { %3935 = vpow2.f32 %v1302_v40 }
 0x903   : > { %3937 = vpow2.f32 %v1300_v41 }
 0x90b   : > { %v3934_v42 = vpop.eup %3933 }
 0x90c   : > { %v1304_v43 = vsel %vm942_vm6, %v3934_v42, 0.0 }
 0x90d   : > { %1305 = vadd.xlane.f32.xlu0 %v1304_v43 }
 0x90f   : > { %v3936_v44 = vpop.eup %3935 }
 0x910   : > { %v3938_v45 = vpop.eup %3937  ;;  %v1310_v46 = vsel %vm942_vm6, %v3936_v44, 0.0 }
 0x911   : > { %1311 = vadd.xlane.f32.xlu1 %v1310_v46  ;;  %v1307_v47 = vsel %vm942_vm6, %v3938_v45, 0.0 }
 0x912   : > { %1308 = vadd.xlane.f32.xlu0 %v1307_v47 }
 0x922   : > { %1321 = vrot.lane.b32.xlu1 %v4339_v17, %s4953_s28 }
 0x926   : > { %1389 = vrot.lane.b32.xlu1 %v4335_v11, %s4951_s29 }
 0x928   : > { %1323 = vrot.lane.b32.xlu0 %v4335_v11, %s4953_s28  ;;  %s4955_s28 = smov 16  }
 0x92a   : > { %1387 = vrot.lane.b32.xlu1 %v4339_v17, %s4951_s29  ;;  %s4957_s29 = smov 8  }
 0x92c   : > { %1383 = vrot.lane.b32.xlu0 %v4339_v17, %s4949_s24 }
 0x92e   : > { %1385 = vrot.lane.b32.xlu1 %v4335_v11, %s4949_s24  ;;  %s4959_s24 = smov 40  }
 0x996   : > { %v1306_v48 = vpop.xlane.xlu0 %1305 }
 0x997   : > { %3939 = vrcp.f32 %v1306_v48 }
 0x99a   : > { %v1312_v49 = vpop.xlane.xlu1 %1311 }
 0x99b   : > { %v1309_v50 = vpop.xlane.xlu0 %1308  ;;  %3941 = vrcp.f32 %v1312_v49 }
 0x99c   : > { %3943 = vrcp.f32 %v1309_v50 }
 0x99e   : > { %v1322_v52 = vpop.permute.xlu1 %1321 }
 0x99f   : > { %v1324_v51 = vpop.permute.xlu0 %1323 }
 0x9a0   : > { %v1333_v53 = vsel %vm989_vm7, %v1324_v51, 0  ;;  %3777 = vmatprep.subr.msk.bf16.mxu0 %vm989_vm7, %v1324_v51 }
 0x9a1   : > { %3610 = vmatpush3.bf16.msra.mxu0 %v1333_v53 }
 0x9a2   : > { %3611 = vmatprep.subr.bf16.mxu0 %v1322_v52  ;;  %v1390_v54 = vpop.permute.xlu1 %1389 }
 0x9a3   : > { %v1384_v63 = vpop.permute.xlu0 %1383  ;;  %v1401_v0 = vsel %vm875_vm4, %v1390_v54, 0 }
 0x9a4   : > { %v3940_v55 = vpop.eup %3939 }
 0x9a5   : > { %3612 = vmatpush3.bf16.msra.mxu0 %v1322_v52  ;;  %v1316_v59 = vmul.f32 %v3940_v55, %v3934_v42 }
 0x9a6   : > { %3778 = vmatprep.subr.msk.bf16.mxu0 %vm875_vm4, %v1390_v54  ;;  %v1388_v2 = vpop.permute.xlu1 %1387 }
 0x9a7   : > { %v1398_v3 = vsel %vm875_vm4, %v1388_v2, 0 }
 0x9a8   : > { %v3942_v56 = vpop.eup %3941 }
 0x9a9   : > { %v3944_v57 = vpop.eup %3943  ;;  %v1318_v58 = vmul.f32 %v3942_v56, %v3936_v44 }
 0x9aa   : > { %v1317_v60 = vmul.f32 %v3944_v57, %v3938_v45  ;;  %v1386_v4 = vpop.permute.xlu1 %1385 }
 0x9ab   : > { %v1320_v61 = vpack.c.bf16 %v1318_v58, %v1318_v58 }
 0x9ac   : > { %v1319_v62 = vpack.c.bf16 %v1317_v60, %v1316_v59  ;;  %v3883_v59 = vld [vmem:[%s4925_s8 + $0x8] sm:$0xff]   ;;  %v3884_v60 = vld [vmem:[%s4925_s8] sm:$0xff]  }
 0x9ae   : > { %3613 = vmatprep.mubr.msk.bf16.mxu0 %vm942_vm6, %v1319_v62 }
 0x9af   : > { %3614 = vmatmul.mubr.msk.bf16.vlgmr.msra.gmra.mxu0 %vm942_vm6, %v1320_v61 }
 0x9b0   : > { %3618 = vmatpush3.bf16.xpose.msra.mxu0 %v1401_v0  ;;  %3621 = vmatprep.mubr.msk.bf16.mxu0 %vm875_vm4, %v1384_v63 }
 0x9b1   : > { %3779 = vmatprep.subr.msk.bf16.mxu0 %vm875_vm4, %v1388_v2 }
 0x9b8   : > { %3620 = vmatpush3.bf16.xpose.msra.mxu0 %v1398_v3 }
 0x9bf   : > { %3622 = vmatmul.mubr.msk.bf16.vlgmr.msra.gmra.mxu0 %vm875_vm4, %v1386_v4 }
 0xa6f   : > { %v3615_v5 = vpop.f32.mrf.mxu0 }
 0xa71   : > { %v1369_v8 = vpop.f32.mrf.mxu0 }
 0xa73   : > { %v3616_v14 = vpop.f32.mrf.mxu0 }
 0xa75   : > { %v1372_v18 = vpop.f32.mrf.mxu0 }
 0xa76   : > { %v3853_v19 = vpack.i.bf16 %v1372_v18, %v1369_v8 }
 0xa7f   : > { %v3623_v20 = vpop.f32.mrf.mxu0 }
 0xa80   : > { %v1453_v22 = vmul.f32 0.35355338, %v3623_v20 }
 0xa81   : > { %v1437_v21 = vpop.f32.mrf.mxu0 }
 0xa82   : > { %v1451_v23 = vmul.f32 0.35355338, %v1437_v21  ;;  %v1456_v32 = vsel %vm726_vm5, %v1453_v22, -1e+30 }
 0xa83   : > { %v3624_v27 = vpop.f32.mrf.mxu0  ;;  %v1463_v34 = vsel %vm942_vm6, %v1456_v32, -inf }
 0xa84   : > { %v1454_v28 = vsel %vm726_vm5, %v1451_v23, -1e+30 }
 0xa85   : > { %v1440_v29 = vpop.f32.mrf.mxu0  ;;  %v1457_v30 = vsel %vm942_vm6, %v1454_v28, -inf }
 0xa86   : > { %v1452_v31 = vmul.f32 0.35355338, %v1440_v29  ;;  %1458 = vmax.xlane.f32.xlu0 %v1457_v30 }
 0xa88   : > { %v1455_v33 = vsel %vm726_vm5, %v1452_v31, -1e+30 }
 0xa89   : > { %v1460_v35 = vsel %vm942_vm6, %v1455_v33, -inf }
 0xa8a   : > { %1464 = vmax.xlane.f32.xlu0 %v1463_v34  ;;  %1461 = vmax.xlane.f32.xlu1 %v1460_v35 }
 0xb0f   : > { %v1459_v36 = vpop.xlane.xlu0 %1458 }
 0xb10   : > { %v1466_v37 = vsub.f32 %v1454_v28, %v1459_v36 }
 0xb12   : > { %v1469_v38 = vmul.f32 1.442695, %v1466_v37 }
 0xb13   : > { %v1465_v39 = vpop.xlane.xlu0 %1464  ;;  %v1462_v40 = vpop.xlane.xlu1 %1461 }
 0xb14   : > { %3945 = vpow2.f32 %v1469_v38  ;;  %v1468_v41 = vsub.f32 %v1456_v32, %v1465_v39  ;;  %v1467_v42 = vsub.f32 %v1455_v33, %v1462_v40  ;;  %v3350_v40 = vld [vmem:[%s4926_s9] ss:$0 sm:$0xff] }
 0xb16   : > { %v1473_v43 = vmul.f32 1.442695, %v1468_v41  ;;  %v1471_v44 = vmul.f32 1.442695, %v1467_v42 }
 0xb18   : > { %3947 = vpow2.f32 %v1473_v43 }
 0xb19   : > { %3949 = vpow2.f32 %v1471_v44 }
 0xb21   : > { %v3946_v45 = vpop.eup %3945 }
 0xb22   : > { %v1475_v46 = vsel %vm942_vm6, %v3946_v45, 0.0 }
 0xb23   : > { %1476 = vadd.xlane.f32.xlu0 %v1475_v46 }
 0xb25   : > { %v3948_v47 = vpop.eup %3947 }
 0xb26   : > { %v3950_v48 = vpop.eup %3949  ;;  %v1481_v49 = vsel %vm942_vm6, %v3948_v47, 0.0 }
 0xb27   : > { %1482 = vadd.xlane.f32.xlu1 %v1481_v49  ;;  %v1478_v50 = vsel %vm942_vm6, %v3950_v48, 0.0 }
 0xb28   : > { %1479 = vadd.xlane.f32.xlu0 %v1478_v50 }
 0xb38   : > { %1492 = vrot.lane.b32.xlu1 %v4339_v17, %s4959_s24 }
 0xb3c   : > { %3849 = vrot.lane.b32.xlu1 %v3848_v10, %s4957_s29 }
 0xb3e   : > { %1494 = vrot.lane.b32.xlu0 %v4335_v11, %s4959_s24  ;;  %s4996_s24 = smov 88  }
 0xb40   : > { %1561 = vrot.lane.b32.xlu1 %v4428_v6, %s4957_s29  ;;  %s4998_s29 = smov 80  }
 0xb42   : > { %3854 = vrot.lane.b32.xlu0 %v3853_v19, %s4955_s28 }
 0xb44   : > { %1573 = vrot.lane.b32.xlu1 %v3615_v5, %s4955_s28  ;;  %s4997_s28 = smov 56  }
 0xbac   : > { %v1477_v51 = vpop.xlane.xlu0 %1476 }
 0xbad   : > { %3951 = vrcp.f32 %v1477_v51 }
 0xbb0   : > { %v1483_v17 = vpop.xlane.xlu1 %1482 }
 0xbb1   : > { %v1480_v52 = vpop.xlane.xlu0 %1479  ;;  %3953 = vrcp.f32 %v1483_v17 }
 0xbb2   : > { %3955 = vrcp.f32 %v1480_v52 }
 0xbb4   : > { %v1493_v11 = vpop.permute.xlu1 %1492 }
 0xbb5   : > { %v1495_v53 = vpop.permute.xlu0 %1494 }
 0xbb6   : > { %v1504_v7 = vsel %vm989_vm7, %v1495_v53, 0  ;;  %3780 = vmatprep.subr.msk.bf16.mxu1 %vm989_vm7, %v1495_v53 }
 0xbb7   : > { %3626 = vmatpush3.bf16.msra.mxu1 %v1504_v7 }
 0xbb8   : > { %3627 = vmatprep.subr.bf16.mxu1 %v1493_v11  ;;  %v3850_v3 = vpop.permute.xlu1 %3849 }
 0xbb9   : > { %v3855_v5 = vpop.permute.xlu0 %3854  ;;  %v3852_v8 = vunpack.i.h.bf16 %v3850_v3  ;;  %v3851_v14 = vunpack.i.l.bf16 %v3850_v3 }
 0xbba   : > { %v3952_v6 = vpop.eup %3951  ;;  %v3857_v19 = vunpack.i.h.bf16 %v3855_v5  ;;  %v3856_v20 = vunpack.i.l.bf16 %v3855_v5 }
 0xbbb   : > { %3628 = vmatpush3.bf16.msra.mxu1 %v1493_v11  ;;  %v1487_v55 = vmul.f32 %v3952_v6, %v3946_v45  ;;  %v1591_v21 = vsel %vm875_vm4, %v4392_v15, %v3852_v8  ;;  %v1590_v22 = vsel %vm875_vm4, %v4390_v13, %v3851_v14  ;;  %v3351_v8 = vld [vmem:[%s4927_s10] ss:$0 sm:$0xff] }
 0xbbc   : > { %3633 = vmatprep.subr.bf16.mxu1 %v3883_v59  ;;  %v1562_v4 = vpop.permute.xlu1 %1561  ;;  %v1594_v33 = vsel %vm1593_vm8, %v1590_v22, %v3856_v20  ;;  %v1595_v34 = vsel %vm1593_vm8, %v1591_v21, %v3857_v19  ;;  %v3352_v22 = vld [vmem:[%s4928_s11] ss:$0 sm:$0xff] }
 0xbbd   : > { %v1592_v27 = vsel %vm875_vm4, %v4388_v12, %v1562_v4 }
 0xbbe   : > { %v3954_v9 = vpop.eup %3953 }
 0xbbf   : > { %v3956_v10 = vpop.eup %3955  ;;  %v1489_v54 = vmul.f32 %v3954_v9, %v3948_v47 }
 0xbc0   : > { %v1488_v56 = vmul.f32 %v3956_v10, %v3950_v48  ;;  %v1574_v18 = vpop.permute.xlu1 %1573 }
 0xbc1   : > { %v1491_v57 = vpack.c.bf16 %v1489_v54, %v1489_v54  ;;  %v1596_v29 = vsel %vm1593_vm8, %v1592_v27, %v1574_v18 }
 0xbc2   : > { %v1490_v58 = vpack.c.bf16 %v1488_v56, %v1487_v55  ;;  %v3885_v56 = vld [vmem:[%s4929_s12 + $0x8] sm:$0xff]  }
 0xbc3   : > { %3641 = vmatprep.subr.bf16.mxu0 %v3885_v56 }
 0xbc4   : > { %3629 = vmatprep.mubr.msk.bf16.mxu1 %vm942_vm6, %v1490_v58  ;;  %3642 = vmatpush3.bf16.msra.mxu0 %v3885_v56 }
 0xbc5   : > { %3630 = vmatmul.mubr.msk.bf16.vlgmr.msra.gmra.mxu1 %vm942_vm6, %v1491_v57  ;;  %v3886_v57 = vld [vmem:[%s4929_s12] sm:$0xff]  }
 0xbc6   : > { %3634 = vmatpush3.bf16.msra.mxu1 %v3883_v59  ;;  %3643 = vmatprep.subr.bf16.mxu0 %v3886_v57 }
 0xbc7   : > { %3635 = vmatprep.subr.bf16.mxu1 %v3884_v60 }
 0xbc8   : > { %3644 = vmatpush3.bf16.msra.mxu0 %v3886_v57  ;;  %v3364_v57 = vld [vmem:[%s4932_s15] ss:$0 sm:$0xff] }
 0xbca   : > { %3636 = vmatpush3.bf16.msra.mxu1 %v3884_v60 }
 0xc85   : > { %v3631_v61 = vpop.f32.mrf.mxu1 }
 0xc86   : > { %1585 = vrot.lane.b32.xlu1 %v3631_v61, %s4965_s23 }
 0xc87   : > { %v1540_v62 = vpop.f32.mrf.mxu1 }
 0xc89   : > { %v3632_v63 = vpop.f32.mrf.mxu1 }
 0xc8b   : > { %v1543_v0 = vpop.f32.mrf.mxu1 }
 0xc8c   : > { %v3858_v2 = vpack.i.bf16 %v1543_v0, %v1540_v62 }
 0xc8e   : > { %3859 = vrot.lane.b32.xlu0 %v3858_v2, %s4965_s23  ;;  %s5002_s23 = smov 104  }
 0xcf8   : > { %v1586_v23 = vpop.permute.xlu1 %1585 }
 0xcf9   : > { %v1599_v32 = vsel %vm942_vm6, %v1596_v29, %v1586_v23 }
 0xcfa   : > { %v1605_v36 = vpack.c.bf16 %v1599_v32, %v1599_v32 }
 0xd00   : > { %v3860_v28 = vpop.permute.xlu0 %3859 }
 0xd01   : > { %v3862_v30 = vunpack.i.h.bf16 %v3860_v28  ;;  %v3861_v31 = vunpack.i.l.bf16 %v3860_v28 }
 0xd03   : > { %v1597_v15 = vsel %vm942_vm6, %v1594_v33, %v3861_v31  ;;  %v1598_v13 = vsel %vm942_vm6, %v1595_v34, %v3862_v30  ;;  %v3887_v33 = vld [vmem:[%s4931_s14 + $0x18] sm:$0xff]   ;;  %v3888_v34 = vld [vmem:[%s4931_s14 + $0x10] sm:$0xff]  }
 0xd04   : > { %v1604_v35 = vpack.c.bf16 %v1598_v13, %v1597_v15  ;;  %3649 = vmatprep.subr.bf16.mxu1 %v3887_v33  ;;  %v3889_v15 = vld [vmem:[%s4931_s14 + $0x8] sm:$0xff]   ;;  %v3890_v13 = vld [vmem:[%s4931_s14] sm:$0xff]  }
 0xd06   : > { %3637 = vmatprep.mubr.msk.bf16.mxu1 %vm729_vm3, %v1604_v35  ;;  %v3353_v35 = vld [vmem:[%s4930_s13] ss:$0 sm:$0xff] }
 0xd07   : > { %3638 = vmatmul.mubr.msk.bf16.vlgmr.msra.gmra.mxu1 %vm729_vm3, %v1605_v36 }
 0xd08   : > { %3650 = vmatpush3.bf16.msra.mxu1 %v3887_v33 }
 0xd09   : > { %3651 = vmatprep.subr.bf16.mxu1 %v3888_v34 }
 0xd0c   : > { %3652 = vmatpush3.bf16.msra.mxu1 %v3888_v34 }
 0xd0d   : > { %3653 = vmatprep.subr.bf16.mxu1 %v3889_v15 }
 0xd10   : > { %3654 = vmatpush3.bf16.msra.mxu1 %v3889_v15 }
 0xd11   : > { %3655 = vmatprep.subr.bf16.mxu1 %v3890_v13 }
 0xd14   : > { %3656 = vmatpush3.bf16.msra.mxu1 %v3890_v13 }
 0xdc7   : > { %v3639_v12 = vpop.f32.mrf.mxu1 }
 0xdc8   : > { %v1674_v38 = vadd.f32 %v3639_v12, %v4304_v24 }
 0xdc9   : > { %v1658_v37 = vpop.f32.mrf.mxu1 }
 0xdca   : > { %v1672_v39 = vadd.f32 %v1658_v37, %v4294_v16  ;;  %v4527_v44 = vadd.f32 %v3350_v40, %v1674_v38 }
 0xdcb   : > { %v3640_v41 = vpop.f32.mrf.mxu1 }
 0xdcc   : > { %v4525_v42 = vadd.f32 %v3350_v40, %v1672_v39  ;;  %v1693_v16 = vsel %vm729_vm3, %v4527_v44, 0.0 }
 0xdcd   : > { %v1661_v43 = vpop.f32.mrf.mxu1 }
 0xdce   : > { %v1673_v45 = vadd.f32 %v1661_v43, %v4306_v25  ;;  %v1687_v46 = vsel %vm729_vm3, %v4525_v42, 0.0 }
 0xdcf   : > { %1688 = vadd.xlane.f32.xlu0 %v1687_v46 }
 0xdd0   : > { %v4532_v47 = vadd.f32 %v3350_v40, %v1673_v45 }
 0xdd2   : > { %v1690_v24 = vsel %vm729_vm3, %v4532_v47, 0.0 }
 0xdd3   : > { %1694 = vadd.xlane.f32.xlu0 %v1693_v16  ;;  %1691 = vadd.xlane.f32.xlu1 %v1690_v24 }
 0xe58   : > { %v1689_v48 = vpop.xlane.xlu0 %1688 }
 0xe59   : > { %v1696_v49 = vmul.f32 0.03125, %v1689_v48 }
 0xe5b   : > { %v1699_v50 = vsub.f32 %v4525_v42, %v1696_v49 }
 0xe5c   : > { %v1695_v51 = vpop.xlane.xlu0 %1694  ;;  %v1692_v25 = vpop.xlane.xlu1 %1691 }
 0xe5d   : > { %v1698_v17 = vmul.f32 0.03125, %v1695_v51  ;;  %v1697_v52 = vmul.f32 0.03125, %v1692_v25  ;;  %v1702_v53 = vmul.f32 %v1699_v50, %v1699_v50 }
 0xe5f   : > { %v1701_v7 = vsub.f32 %v4527_v44, %v1698_v17  ;;  %v1700_v11 = vsub.f32 %v4532_v47, %v1697_v52  ;;  %v1705_v6 = vsel %vm729_vm3, %v1702_v53, 0.0 }
 0xe60   : > { %1706 = vadd.xlane.f32.xlu0 %v1705_v6 }
 0xe61   : > { %v1704_v9 = vmul.f32 %v1701_v7, %v1701_v7  ;;  %v1703_v10 = vmul.f32 %v1700_v11, %v1700_v11 }
 0xe63   : > { %v1711_v54 = vsel %vm729_vm3, %v1704_v9, 0.0  ;;  %v1708_v55 = vsel %vm729_vm3, %v1703_v10, 0.0 }
 0xe64   : > { %1712 = vadd.xlane.f32.xlu1 %v1711_v54  ;;  %1709 = vadd.xlane.f32.xlu0 %v1708_v55 }
 0xee9   : > { %v1707_v58 = vpop.xlane.xlu0 %1706 }
 0xeea   : > { %v1714_v59 = vmul.f32 0.03125, %v1707_v58 }
 0xeec   : > { %v1717_v60 = vadd.f32 1e-12, %v1714_v59 }
 0xeed   : > { %v1710_v61 = vpop.xlane.xlu0 %1709  ;;  %v1713_v62 = vpop.xlane.xlu1 %1712 }
 0xeee   : > { %3957 = vrsqrt.f32 %v1717_v60  ;;  %v1715_v63 = vmul.f32 0.03125, %v1710_v61  ;;  %v1716_v0 = vmul.f32 0.03125, %v1713_v62 }
 0xef0   : > { %v1718_v2 = vadd.f32 1e-12, %v1715_v63  ;;  %v1719_v3 = vadd.f32 1e-12, %v1716_v0 }
 0xef2   : > { %3959 = vrsqrt.f32 %v1718_v2 }
 0xef3   : > { %3961 = vrsqrt.f32 %v1719_v3 }
 0xefb   : > { %v3958_v4 = vpop.eup %3957 }
 0xefc   : > { %v1723_v5 = vmul.f32 %v3958_v4, %v1699_v50 }
 0xefe   : > { %v1732_v20 = vmul.f32 %v3351_v8, %v1723_v5 }
 0xeff   : > { %v3960_v14 = vpop.eup %3959 }
 0xf00   : > { %v3962_v18 = vpop.eup %3961  ;;  %v1724_v19 = vmul.f32 %v3960_v14, %v1700_v11  ;;  %v1741_v28 = vadd.f32 %v3352_v22, %v1732_v20 }
 0xf01   : > { %v1725_v21 = vmul.f32 %v3962_v18, %v1701_v7 }
 0xf02   : > { %v1733_v23 = vmul.f32 %v3351_v8, %v1724_v19 }
 0xf03   : > { %v1734_v27 = vmul.f32 %v3351_v8, %v1725_v21 }
 0xf04   : > { %v1742_v29 = vadd.f32 %v3352_v22, %v1733_v23 }
 0xf05   : > { %v1743_v30 = vadd.f32 %v3352_v22, %v1734_v27 }
 0xf06   : > { %v1748_v31 = vpack.c.bf16 %v1742_v29, %v1741_v28  ;;  %v3891_v29 = vld [vmem:[%s4923_s6 + $0x18] sm:$0xff]  }
 0xf07   : > { %v1749_v32 = vpack.c.bf16 %v1743_v30, %v1743_v30  ;;  %v3892_v30 = vld [vmem:[%s4923_s6 + $0x10] sm:$0xff]   ;;  %3661 = vmatprep.subr.bf16.mxu0 %v3891_v29 }
 0xf08   : > { %3645 = vmatprep.mubr.msk.bf16.mxu0 %vm729_vm3, %v1748_v31 }
 0xf09   : > { %3646 = vmatmul.mubr.msk.bf16.vlgmr.msra.gmra.mxu0 %vm729_vm3, %v1749_v32 }
 0xf0a   : > { %3662 = vmatpush3.bf16.msra.mxu0 %v3891_v29 }
 0xf0b   : > { %3663 = vmatprep.subr.bf16.mxu0 %v3892_v30 }
 0xf0e   : > { %3664 = vmatpush3.bf16.msra.mxu0 %v3892_v30 }
 0xfc9   : > { %v3647_v36 = vpop.f32.mrf.mxu0 }
 0xfca   : > { %v1818_v12 = vadd.f32 %v3647_v36, %v3353_v35 }
 0xfcb   : > { %v1809_v37 = vpop.f32.mrf.mxu0 }
 0xfcc   : > { %v1828_v38 = vmul.f32 0.70710677, %v1818_v12  ;;  %v1810_v39 = vadd.f32 %v3353_v35, %v1809_v37  ;;  %v1825_v51 = vmul.f32 0.5, %v1818_v12 }
 0xfcd   : > { %v3648_v40 = vpop.f32.mrf.mxu0 }
 0xfce   : > { %v1826_v41 = vmul.f32 0.70710677, %v1810_v39  ;;  %3963 = verf.f32 %v1828_v38  ;;  %v1823_v25 = vmul.f32 0.5, %v1810_v39  ;;  %v3367_v39 = vld [vmem:[%s4993_s3 + $0x1] ss:$0 sm:$0xff] }
 0xfcf   : > { %v1812_v43 = vpop.f32.mrf.mxu0 }
 0xfd0   : > { %3965 = verf.f32 %v1826_v41  ;;  %v1813_v45 = vadd.f32 %v3353_v35, %v1812_v43 }
 0xfd2   : > { %v1827_v46 = vmul.f32 0.70710677, %v1813_v45  ;;  %v1824_v17 = vmul.f32 0.5, %v1813_v45 }
 0xfd4   : > { %3967 = verf.f32 %v1827_v46 }
 0xfdb   : > { %v3964_v16 = vpop.eup %3963 }
 0xfdc   : > { %v1834_v48 = vadd.f32 1.0, %v3964_v16  ;;  %v3368_v16 = vld [vmem:[%s4922_s5 + $0x1] ss:$0 sm:$0xff] }
 0xfdd   : > { %v3966_v24 = vpop.eup %3965 }
 0xfde   : > { %v1832_v49 = vadd.f32 1.0, %v3966_v24  ;;  %v1837_v53 = vmul.f32 %v1834_v48, %v1825_v51 }
 0xfe0   : > { %v1835_v7 = vmul.f32 %v1832_v49, %v1823_v25  ;;  %v1847_v9 = vpack.c.bf16 %v1837_v53, %v1837_v53 }
 0xfe1   : > { %v3968_v50 = vpop.eup %3967 }
 0xfe2   : > { %v1833_v52 = vadd.f32 1.0, %v3968_v50 }
 0xfe4   : > { %v1836_v11 = vmul.f32 %v1833_v52, %v1824_v17  ;;  %v3374_v52 = vld [vmem:[%s4924_s7 + $0x1] ss:$0 sm:$0xff] }
 0xfe6   : > { %v1846_v6 = vpack.c.bf16 %v1836_v11, %v1835_v7 }
 0xfe8   : > { %3657 = vmatprep.mubr.msk.bf16.mxu1 %vm1872_vm9, %v1846_v6 }
 0xfe9   : > { %3658 = vmatmul.mubr.msk.bf16.vlgmr.msra.gmra.mxu1 %vm1872_vm9, %v1847_v9 }
0x10a9   : > { %v3659_v10 = vpop.f32.mrf.mxu1 }
0x10aa   : > { %v1929_v55 = vadd.f32 %v3659_v10, %v4527_v44 }
0x10ab   : > { %v1913_v54 = vpop.f32.mrf.mxu1 }
0x10ac   : > { %v1927_v56 = vadd.f32 %v1913_v54, %v4525_v42  ;;  %v4582_v61 = vadd.f32 %v3364_v57, %v1929_v55 }
0x10ad   : > { %v3660_v58 = vpop.f32.mrf.mxu1 }
0x10ae   : > { %v4580_v59 = vadd.f32 %v3364_v57, %v1927_v56  ;;  %v1950_v42 = vsel %vm729_vm3, %v4582_v61, 0.0 }
0x10af   : > { %v1916_v60 = vpop.f32.mrf.mxu1 }
0x10b0   : > { %v1928_v62 = vadd.f32 %v1916_v60, %v4532_v47  ;;  %v1944_v63 = vsel %vm729_vm3, %v4580_v59, 0.0 }
0x10b1   : > { %1945 = vadd.xlane.f32.xlu0 %v1944_v63 }
0x10b2   : > { %v4587_v0 = vadd.f32 %v3364_v57, %v1928_v62 }
0x10b4   : > { %v1947_v44 = vsel %vm729_vm3, %v4587_v0, 0.0 }
0x10b5   : > { %1951 = vadd.xlane.f32.xlu0 %v1950_v42  ;;  %1948 = vadd.xlane.f32.xlu1 %v1947_v44 }
0x113a   : > { %v1946_v2 = vpop.xlane.xlu0 %1945 }
0x113b   : > { %v1953_v3 = vmul.f32 0.03125, %v1946_v2 }
0x113d   : > { %v1956_v4 = vsub.f32 %v4580_v59, %v1953_v3 }
0x113e   : > { %v1952_v5 = vpop.xlane.xlu0 %1951  ;;  %v1949_v47 = vpop.xlane.xlu1 %1948 }
0x113f   : > { %v1955_v8 = vmul.f32 0.03125, %v1952_v5  ;;  %v1954_v14 = vmul.f32 0.03125, %v1949_v47  ;;  %v1959_v18 = vmul.f32 %v1956_v4, %v1956_v4 }
0x1141   : > { %v1958_v19 = vsub.f32 %v4582_v61, %v1955_v8  ;;  %v1957_v20 = vsub.f32 %v4587_v0, %v1954_v14  ;;  %v1962_v21 = vsel %vm729_vm3, %v1959_v18, 0.0 }
0x1142   : > { %1963 = vadd.xlane.f32.xlu1 %v1962_v21 }
0x1143   : > { %v1961_v22 = vmul.f32 %v1958_v19, %v1958_v19  ;;  %v1960_v23 = vmul.f32 %v1957_v20, %v1957_v20 }
0x1145   : > { %v1968_v27 = vsel %vm729_vm3, %v1961_v22, 0.0  ;;  %v1965_v28 = vsel %vm729_vm3, %v1960_v23, 0.0 }
0x1146   : > { %1969 = vadd.xlane.f32.xlu1 %v1968_v27  ;;  %1966 = vadd.xlane.f32.xlu0 %v1965_v28 }
0x11cb   : > { %v1964_v31 = vpop.xlane.xlu1 %1963 }
0x11cc   : > { %v1971_v32 = vmul.f32 0.03125, %v1964_v31 }
0x11ce   : > { %v1974_v33 = vadd.f32 1e-12, %v1971_v32 }
0x11cf   : > { %v1967_v34 = vpop.xlane.xlu0 %1966  ;;  %v1970_v15 = vpop.xlane.xlu1 %1969 }
0x11d0   : > { %3969 = vrsqrt.f32 %v1974_v33  ;;  %v1972_v13 = vmul.f32 0.03125, %v1967_v34  ;;  %v1973_v35 = vmul.f32 0.03125, %v1970_v15 }
0x11d2   : > { %v1975_v36 = vadd.f32 1e-12, %v1972_v13  ;;  %v1976_v12 = vadd.f32 1e-12, %v1973_v35 }
0x11d4   : > { %3971 = vrsqrt.f32 %v1975_v36 }
0x11d5   : > { %3973 = vrsqrt.f32 %v1976_v12 }
0x11dd   : > { %v3970_v37 = vpop.eup %3969 }
0x11de   : > { %v1980_v38 = vmul.f32 %v3970_v37, %v1956_v4 }
0x11e0   : > { %v1989_v45 = vmul.f32 %v3367_v39, %v1980_v38 }
0x11e1   : > { %v3972_v40 = vpop.eup %3971 }
0x11e2   : > { %v3974_v41 = vpop.eup %3973  ;;  %v1981_v43 = vmul.f32 %v3972_v40, %v1957_v20  ;;  %v1998_v49 = vadd.f32 %v3368_v16, %v1989_v45 }
0x11e3   : > { %v1982_v46 = vmul.f32 %v3974_v41, %v1958_v19 }
0x11e4   : > { %v1990_v24 = vmul.f32 %v3367_v39, %v1981_v43 }
0x11e5   : > { %v1991_v48 = vmul.f32 %v3367_v39, %v1982_v46 }
0x11e6   : > { %v1999_v50 = vadd.f32 %v3368_v16, %v1990_v24 }
0x11e7   : > { %v2000_v51 = vadd.f32 %v3368_v16, %v1991_v48 }
0x11e8   : > { %v2006_v25 = vpack.c.bf16 %v1999_v50, %v1998_v49 }
0x11e9   : > { %v2007_v17 = vpack.c.bf16 %v2000_v51, %v2000_v51 }
0x11ea   : > { %3665 = vmatprep.mubr.msk.bf16.mxu0 %vm729_vm3, %v2006_v25 }
0x11eb   : > { %3666 = vmatmul.mubr.msk.bf16.vlgmr.msra.gmra.mxu0 %vm729_vm3, %v2007_v17 }
0x12ab   : > { %v3667_v53 = vpop.f32.mrf.mxu0 }
0x12ac   : > { %v2077_v7 = vadd.f32 %v3667_v53, %v3374_v52 }
0x12ad   : > { %v2068_v11 = vpop.f32.mrf.mxu0 }
0x12ae   : > { %v4616_v6 = vpack.c.bf16 %v2077_v7, %v2077_v7  ;;  %v2069_v54 = vadd.f32 %v3374_v52, %v2068_v11 }
0x12af   : > { %v3668_v9 = vpop.f32.mrf.mxu0 }
0x12b0   : > { %2088 = vrot.lane.b32.xlu0 %v4616_v6, %s4101_s25 }
0x12b1   : > { %v2071_v10 = vpop.f32.mrf.mxu0 }
0x12b2   : > { %v2072_v55 = vadd.f32 %v3374_v52, %v2071_v10 }
0x12b4   : > { %v4620_v56 = vpack.c.bf16 %v2072_v55, %v2069_v54 }
0x12b6   : > { %2086 = vrot.lane.b32.xlu1 %v4620_v56, %s4101_s25  ;;  %3673 = vmatprep.mubr.msk.bf16.mxu0 %vm875_vm4, %v4620_v56  ;;  %s4994_s25 = smov 64  }
0x1322   : > { %v2089_v57 = vpop.permute.xlu0 %2088 }
0x1323   : > { %v2100_v58 = vsel %vm875_vm4, %v2089_v57, 0  ;;  %3781 = vmatprep.subr.msk.bf16.mxu0 %vm875_vm4, %v2089_v57 }
0x1324   : > { %3670 = vmatpush3.bf16.xpose.msra.mxu0 %v2100_v58 }
0x1328   : > { %v2087_v60 = vpop.permute.xlu1 %2086 }
0x1329   : > { %3782 = vmatprep.subr.msk.bf16.mxu0 %vm875_vm4, %v2087_v60  ;;  %v2097_v62 = vsel %vm875_vm4, %v2087_v60, 0 }
0x132c   : > { %3672 = vmatpush3.bf16.xpose.msra.mxu0 %v2097_v62 }
0x1333   : > { %3674 = vmatmul.mubr.msk.bf16.vlgmr.msra.gmra.mxu0 %vm875_vm4, %v4616_v6 }
0x13f3   : > { %v3675_v63 = vpop.f32.mrf.mxu0 }
0x13f4   : > { %v2152_v47 = vmul.f32 0.35355338, %v3675_v63 }
0x13f5   : > { %v2136_v42 = vpop.f32.mrf.mxu0 }
0x13f6   : > { %v2150_v44 = vmul.f32 0.35355338, %v2136_v42  ;;  %v2155_v19 = vsel %vm726_vm5, %v2152_v47, -1e+30 }
0x13f7   : > { %v3676_v2 = vpop.f32.mrf.mxu0  ;;  %v2162_v20 = vsel %vm942_vm6, %v2155_v19, -inf }
0x13f8   : > { %v2153_v3 = vsel %vm726_vm5, %v2150_v44, -1e+30 }
0x13f9   : > { %v2139_v4 = vpop.f32.mrf.mxu0  ;;  %v2156_v5 = vsel %vm942_vm6, %v2153_v3, -inf }
0x13fa   : > { %v2151_v8 = vmul.f32 0.35355338, %v2139_v4  ;;  %2157 = vmax.xlane.f32.xlu1 %v2156_v5 }
0x13fc   : > { %v2154_v14 = vsel %vm726_vm5, %v2151_v8, -1e+30 }
0x13fd   : > { %v2159_v18 = vsel %vm942_vm6, %v2154_v14, -inf }
0x13fe   : > { %2160 = vmax.xlane.f32.xlu0 %v2159_v18 }
0x1402   : > { %2163 = vmax.xlane.f32.xlu0 %v2162_v20 }
0x1483   : > { %v2158_v21 = vpop.xlane.xlu1 %2157 }
0x1484   : > { %v2165_v27 = vsub.f32 %v2153_v3, %v2158_v21 }
0x1486   : > { %v2168_v31 = vmul.f32 1.442695, %v2165_v27 }
0x1487   : > { %v2161_v22 = vpop.xlane.xlu0 %2160 }
0x1488   : > { %v2166_v23 = vsub.f32 %v2154_v14, %v2161_v22 }
0x148a   : > { %v2170_v28 = vmul.f32 1.442695, %v2166_v23 }
0x148b   : > { %v2164_v29 = vpop.xlane.xlu0 %2163 }
0x148c   : > { %3975 = vpow2.f32 %v2170_v28  ;;  %v2167_v30 = vsub.f32 %v2155_v19, %v2164_v29 }
0x148e   : > { %v2172_v32 = vmul.f32 1.442695, %v2167_v30 }
0x1490   : > { %3977 = vpow2.f32 %v2172_v32 }
0x1491   : > { %3979 = vpow2.f32 %v2168_v31 }
0x1499   : > { %v3976_v33 = vpop.eup %3975 }
0x149a   : > { %v2177_v34 = vsel %vm942_vm6, %v3976_v33, 0.0 }
0x149b   : > { %2178 = vadd.xlane.f32.xlu0 %v2177_v34 }
0x149d   : > { %v3978_v15 = vpop.eup %3977 }
0x149e   : > { %v2180_v13 = vsel %vm942_vm6, %v3978_v15, 0.0  ;;  %v3980_v35 = vpop.eup %3979 }
0x149f   : > { %2181 = vadd.xlane.f32.xlu1 %v2180_v13  ;;  %v2174_v36 = vsel %vm942_vm6, %v3980_v35, 0.0 }
0x14a3   : > { %2175 = vadd.xlane.f32.xlu1 %v2174_v36 }
0x14b1   : > { %2193 = vrot.lane.b32.xlu0 %v4616_v6, %s4994_s25 }
0x14b4   : > { %2191 = vrot.lane.b32.xlu1 %v4620_v56, %s4994_s25  ;;  %s5003_s25 = smov 40  }
0x14b5   : > { %2253 = vrot.lane.b32.xlu0 %v4620_v56, %s4995_s1 }
0x14b8   : > { %2259 = vrot.lane.b32.xlu1 %v4616_v6, %s4996_s24 }
0x14bc   : > { %2257 = vrot.lane.b32.xlu1 %v4620_v56, %s4996_s24  ;;  %s5005_s24 = smov 16  }
0x14c0   : > { %2255 = vrot.lane.b32.xlu1 %v4616_v6, %s4995_s1  ;;  %s5004_s1 = smov 8  }
0x1524   : > { %v2179_v12 = vpop.xlane.xlu0 %2178 }
0x1528   : > { %v2182_v37 = vpop.xlane.xlu1 %2181  ;;  %v2194_v38 = vpop.permute.xlu0 %2193 }
0x1529   : > { %v2203_v39 = vsel %vm989_vm7, %v2194_v38, 0  ;;  %3783 = vmatprep.subr.msk.bf16.mxu1 %vm989_vm7, %v2194_v38  ;;  %3981 = vrcp.f32 %v2182_v37 }
0x152a   : > { %3678 = vmatpush3.bf16.msra.mxu1 %v2203_v39  ;;  %3983 = vrcp.f32 %v2179_v12 }
0x152c   : > { %v2176_v40 = vpop.xlane.xlu1 %2175  ;;  %v2254_v25 = vpop.permute.xlu0 %2253 }
0x152d   : > { %3985 = vrcp.f32 %v2176_v40 }
0x1530   : > { %v2192_v41 = vpop.permute.xlu1 %2191 }
0x1531   : > { %3679 = vmatprep.subr.bf16.mxu1 %v2192_v41 }
0x1532   : > { %3680 = vmatpush3.bf16.msra.mxu1 %v2192_v41 }
0x1534   : > { %v2260_v43 = vpop.permute.xlu1 %2259 }
0x1535   : > { %3784 = vmatprep.subr.msk.bf16.mxu1 %vm875_vm4, %v2260_v43  ;;  %v2271_v17 = vsel %vm875_vm4, %v2260_v43, 0 }
0x1536   : > { %v3982_v45 = vpop.eup %3981 }
0x1537   : > { %v3984_v46 = vpop.eup %3983  ;;  %v2188_v24 = vmul.f32 %v3982_v45, %v3978_v15 }
0x1538   : > { %v2187_v49 = vmul.f32 %v3984_v46, %v3976_v33  ;;  %v2258_v52 = vpop.permute.xlu1 %2257 }
0x1539   : > { %v2190_v51 = vpack.c.bf16 %v2188_v24, %v2188_v24  ;;  %v2268_v53 = vsel %vm875_vm4, %v2258_v52, 0 }
0x153a   : > { %v3986_v16 = vpop.eup %3985 }
0x153b   : > { %v2186_v48 = vmul.f32 %v3986_v16, %v3980_v35 }
0x153c   : > { %v2256_v7 = vpop.permute.xlu1 %2255 }
0x153d   : > { %v2189_v50 = vpack.c.bf16 %v2187_v49, %v2186_v48 }
0x153f   : > { %3681 = vmatprep.mubr.msk.bf16.mxu1 %vm942_vm6, %v2189_v50 }
0x1540   : > { %3682 = vmatmul.mubr.msk.bf16.vlgmr.msra.gmra.mxu1 %vm942_vm6, %v2190_v51 }
0x1541   : > { %3686 = vmatpush3.bf16.xpose.msra.mxu1 %v2271_v17  ;;  %3689 = vmatprep.mubr.msk.bf16.mxu1 %vm875_vm4, %v2254_v25 }
0x1542   : > { %3785 = vmatprep.subr.msk.bf16.mxu1 %vm875_vm4, %v2258_v52 }
0x1549   : > { %3688 = vmatpush3.bf16.xpose.msra.mxu1 %v2268_v53 }
0x1550   : > { %3690 = vmatmul.mubr.msk.bf16.vlgmr.msra.gmra.mxu1 %vm875_vm4, %v2256_v7 }
0x1600   : > { %v4666_v11 = vpop.f32.mrf.mxu1 }
0x1602   : > { %v4668_v9 = vpop.f32.mrf.mxu1 }
0x1604   : > { %v3684_v10 = vpop.f32.mrf.mxu1 }
0x1606   : > { %v4670_v54 = vpop.f32.mrf.mxu1 }
0x1610   : > { %v3691_v55 = vpop.f32.mrf.mxu1 }
0x1611   : > { %v2323_v58 = vmul.f32 0.35355338, %v3691_v55 }
0x1612   : > { %v2307_v57 = vpop.f32.mrf.mxu1 }
0x1613   : > { %v2321_v60 = vmul.f32 0.35355338, %v2307_v57  ;;  %v2326_v3 = vsel %vm726_vm5, %v2323_v58, -1e+30 }
0x1614   : > { %v3692_v62 = vpop.f32.mrf.mxu1  ;;  %v2333_v5 = vsel %vm942_vm6, %v2326_v3, -inf }
0x1615   : > { %v2324_v63 = vsel %vm726_vm5, %v2321_v60, -1e+30 }
0x1616   : > { %v2310_v42 = vpop.f32.mrf.mxu1  ;;  %v2327_v44 = vsel %vm942_vm6, %v2324_v63, -inf }
0x1617   : > { %v2322_v2 = vmul.f32 0.35355338, %v2310_v42  ;;  %2328 = vmax.xlane.f32.xlu0 %v2327_v44 }
0x1619   : > { %v2325_v4 = vsel %vm726_vm5, %v2322_v2, -1e+30 }
0x161a   : > { %v2330_v47 = vsel %vm942_vm6, %v2325_v4, -inf }
0x161b   : > { %2334 = vmax.xlane.f32.xlu0 %v2333_v5  ;;  %2331 = vmax.xlane.f32.xlu1 %v2330_v47 }
0x16a0   : > { %v2329_v8 = vpop.xlane.xlu0 %2328 }
0x16a1   : > { %v2336_v14 = vsub.f32 %v2324_v63, %v2329_v8 }
0x16a3   : > { %v2339_v18 = vmul.f32 1.442695, %v2336_v14 }
0x16a4   : > { %v2335_v19 = vpop.xlane.xlu0 %2334  ;;  %v2332_v20 = vpop.xlane.xlu1 %2331 }
0x16a5   : > { %3987 = vpow2.f32 %v2339_v18  ;;  %v2338_v21 = vsub.f32 %v2326_v3, %v2335_v19  ;;  %v2337_v22 = vsub.f32 %v2325_v4, %v2332_v20 }
0x16a7   : > { %v2343_v23 = vmul.f32 1.442695, %v2338_v21  ;;  %v2341_v27 = vmul.f32 1.442695, %v2337_v22 }
0x16a9   : > { %3989 = vpow2.f32 %v2343_v23 }
0x16aa   : > { %3991 = vpow2.f32 %v2341_v27 }
0x16b2   : > { %v3988_v28 = vpop.eup %3987 }
0x16b3   : > { %v2345_v29 = vsel %vm942_vm6, %v3988_v28, 0.0 }
0x16b4   : > { %2346 = vadd.xlane.f32.xlu0 %v2345_v29 }
0x16b6   : > { %v3990_v30 = vpop.eup %3989 }
0x16b7   : > { %v3992_v31 = vpop.eup %3991  ;;  %v2351_v32 = vsel %vm942_vm6, %v3990_v30, 0.0 }
0x16b8   : > { %2352 = vadd.xlane.f32.xlu1 %v2351_v32  ;;  %v2348_v33 = vsel %vm942_vm6, %v3992_v31, 0.0 }
0x16b9   : > { %2349 = vadd.xlane.f32.xlu0 %v2348_v33 }
0x16c9   : > { %2362 = vrot.lane.b32.xlu1 %v4620_v56, %s4997_s28 }
0x16cd   : > { %2430 = vrot.lane.b32.xlu1 %v4616_v6, %s4998_s29 }
0x16cf   : > { %2364 = vrot.lane.b32.xlu0 %v4616_v6, %s4997_s28 }
0x16d1   : > { %2428 = vrot.lane.b32.xlu1 %v4620_v56, %s4998_s29  ;;  %s4115_s29 = smov [#allocation2]  }
0x16d2   : > { %s4041_s0 = sshll.u32 %s4115_s29, 4  ;;  %s4042_s0 = int_to_ptr.vmem [resolvable:$false] %s4041_s0 }
0x16d3   : > { %2424 = vrot.lane.b32.xlu0 %v4620_v56, %s4999_s26 }
0x16d5   : > { %2426 = vrot.lane.b32.xlu1 %v4616_v6, %s4999_s26  ;;  %s3440_s26 = sshll.u32 %s4242_s2, 4 }
0x173d   : > { %v2347_v34 = vpop.xlane.xlu0 %2346 }
0x173e   : > { %3993 = vrcp.f32 %v2347_v34 }
0x1741   : > { %v2353_v15 = vpop.xlane.xlu1 %2352 }
0x1742   : > { %v2350_v13 = vpop.xlane.xlu0 %2349  ;;  %3995 = vrcp.f32 %v2353_v15 }
0x1743   : > { %3997 = vrcp.f32 %v2350_v13 }
0x1745   : > { %v2363_v36 = vpop.permute.xlu1 %2362 }
0x1746   : > { %v2365_v35 = vpop.permute.xlu0 %2364 }
0x1747   : > { %v2374_v12 = vsel %vm989_vm7, %v2365_v35, 0  ;;  %3786 = vmatprep.subr.msk.bf16.mxu0 %vm989_vm7, %v2365_v35 }
0x1748   : > { %3694 = vmatpush3.bf16.msra.mxu0 %v2374_v12 }
0x1749   : > { %3695 = vmatprep.subr.bf16.mxu0 %v2363_v36  ;;  %v2431_v37 = vpop.permute.xlu1 %2430 }
0x174a   : > { %v2425_v24 = vpop.permute.xlu0 %2424  ;;  %v2442_v48 = vsel %vm875_vm4, %v2431_v37, 0 }
0x174b   : > { %v3994_v38 = vpop.eup %3993 }
0x174c   : > { %3696 = vmatpush3.bf16.msra.mxu0 %v2363_v36  ;;  %v2357_v43 = vmul.f32 %v3994_v38, %v3988_v28 }
0x174d   : > { %3787 = vmatprep.subr.msk.bf16.mxu0 %vm875_vm4, %v2431_v37  ;;  %v2429_v49 = vpop.permute.xlu1 %2428 }
0x174e   : > { %v2439_v50 = vsel %vm875_vm4, %v2429_v49, 0 }
0x174f   : > { %v3996_v39 = vpop.eup %3995 }
0x1750   : > { %v3998_v40 = vpop.eup %3997  ;;  %v2359_v41 = vmul.f32 %v3996_v39, %v3990_v30 }
0x1751   : > { %v2358_v45 = vmul.f32 %v3998_v40, %v3992_v31  ;;  %v2427_v51 = vpop.permute.xlu1 %2426 }
0x1752   : > { %v2361_v46 = vpack.c.bf16 %v2359_v41, %v2359_v41 }
0x1753   : > { %v2360_v16 = vpack.c.bf16 %v2358_v45, %v2357_v43 }
0x1755   : > { %3697 = vmatprep.mubr.msk.bf16.mxu0 %vm942_vm6, %v2360_v16 }
0x1756   : > { %3698 = vmatmul.mubr.msk.bf16.vlgmr.msra.gmra.mxu0 %vm942_vm6, %v2361_v46 }
0x1757   : > { %3702 = vmatpush3.bf16.xpose.msra.mxu0 %v2442_v48  ;;  %3705 = vmatprep.mubr.msk.bf16.mxu0 %vm875_vm4, %v2425_v24 }
0x1758   : > { %3788 = vmatprep.subr.msk.bf16.mxu0 %vm875_vm4, %v2429_v49 }
0x175f   : > { %3704 = vmatpush3.bf16.xpose.msra.mxu0 %v2439_v50 }
0x1766   : > { %3706 = vmatmul.mubr.msk.bf16.vlgmr.msra.gmra.mxu0 %vm875_vm4, %v2427_v51 }
0x1816   : > { %v4706_v25 = vpop.f32.mrf.mxu0 }
0x1818   : > { %v4708_v17 = vpop.f32.mrf.mxu0 }
0x181a   : > { %v3700_v52 = vpop.f32.mrf.mxu0 }
0x181c   : > { %v4710_v53 = vpop.f32.mrf.mxu0 }
0x181d   : > { %v3863_v7 = vpack.i.bf16 %v4710_v53, %v4708_v17 }
0x1826   : > { %v3707_v10 = vpop.f32.mrf.mxu0 }
0x1827   : > { %v2494_v57 = vmul.f32 0.35355338, %v3707_v10 }
0x1828   : > { %v2478_v55 = vpop.f32.mrf.mxu0 }
0x1829   : > { %v2492_v58 = vmul.f32 0.35355338, %v2478_v55  ;;  %v2497_v2 = vsel %vm726_vm5, %v2494_v57, -1e+30 }
0x182a   : > { %v3708_v60 = vpop.f32.mrf.mxu0  ;;  %v2504_v4 = vsel %vm942_vm6, %v2497_v2, -inf }
0x182b   : > { %v2495_v62 = vsel %vm726_vm5, %v2492_v58, -1e+30 }
0x182c   : > { %v2481_v63 = vpop.f32.mrf.mxu0  ;;  %v2498_v42 = vsel %vm942_vm6, %v2495_v62, -inf }
0x182d   : > { %v2493_v44 = vmul.f32 0.35355338, %v2481_v63  ;;  %2499 = vmax.xlane.f32.xlu0 %v2498_v42 }
0x182f   : > { %v2496_v3 = vsel %vm726_vm5, %v2493_v44, -1e+30 }
0x1830   : > { %v2501_v5 = vsel %vm942_vm6, %v2496_v3, -inf }
0x1831   : > { %2505 = vmax.xlane.f32.xlu0 %v2504_v4  ;;  %2502 = vmax.xlane.f32.xlu1 %v2501_v5 }
0x18b6   : > { %v2500_v47 = vpop.xlane.xlu0 %2499 }
0x18b7   : > { %v2507_v8 = vsub.f32 %v2495_v62, %v2500_v47 }
0x18b9   : > { %v2510_v14 = vmul.f32 1.442695, %v2507_v8 }
0x18ba   : > { %v2506_v18 = vpop.xlane.xlu0 %2505  ;;  %v2503_v19 = vpop.xlane.xlu1 %2502 }
0x18bb   : > { %3999 = vpow2.f32 %v2510_v14  ;;  %v2509_v20 = vsub.f32 %v2497_v2, %v2506_v18  ;;  %v2508_v21 = vsub.f32 %v2496_v3, %v2503_v19 }
0x18bd   : > { %v2514_v22 = vmul.f32 1.442695, %v2509_v20  ;;  %v2512_v23 = vmul.f32 1.442695, %v2508_v21 }
0x18bf   : > { %4001 = vpow2.f32 %v2514_v22 }
0x18c0   : > { %4003 = vpow2.f32 %v2512_v23 }
0x18c8   : > { %v4000_v27 = vpop.eup %3999 }
0x18c9   : > { %v2516_v28 = vsel %vm942_vm6, %v4000_v27, 0.0 }
0x18ca   : > { %2517 = vadd.xlane.f32.xlu0 %v2516_v28 }
0x18cc   : > { %v4002_v29 = vpop.eup %4001 }
0x18cd   : > { %v4004_v30 = vpop.eup %4003  ;;  %v2522_v31 = vsel %vm942_vm6, %v4002_v29, 0.0 }
0x18ce   : > { %2523 = vadd.xlane.f32.xlu1 %v2522_v31  ;;  %v2519_v32 = vsel %vm942_vm6, %v4004_v30, 0.0 }
0x18cf   : > { %2520 = vadd.xlane.f32.xlu0 %v2519_v32 }
0x18df   : > { %2533 = vrot.lane.b32.xlu1 %v4620_v56, %s5000_s27 }
0x18e3   : > { %2601 = vrot.lane.b32.xlu1 %v4616_v6, %s5001_s30 }
0x18e5   : > { %2535 = vrot.lane.b32.xlu0 %v4616_v6, %s5000_s27 }
0x18e7   : > { %2599 = vrot.lane.b32.xlu1 %v4620_v56, %s5001_s30  ;;  %s5006_s30 = smov 24  }
0x18e9   : > { %2595 = vrot.lane.b32.xlu0 %v4620_v56, %s5002_s23 }
0x18eb   : > { %2597 = vrot.lane.b32.xlu1 %v4616_v6, %s5002_s23  ;;  %s4043_s23 = scalar_lea.vmem %s4042_s0, 32 }
0x1953   : > { %v2518_v33 = vpop.xlane.xlu0 %2517 }
0x1954   : > { %4005 = vrcp.f32 %v2518_v33 }
0x1957   : > { %v2524_v34 = vpop.xlane.xlu1 %2523 }
0x1958   : > { %v2521_v15 = vpop.xlane.xlu0 %2520  ;;  %4007 = vrcp.f32 %v2524_v34 }
0x1959   : > { %4009 = vrcp.f32 %v2521_v15 }
0x195b   : > { %v2534_v35 = vpop.permute.xlu1 %2533 }
0x195c   : > { %v2536_v13 = vpop.permute.xlu0 %2535 }
0x195d   : > { %v2545_v36 = vsel %vm989_vm7, %v2536_v13, 0  ;;  %3789 = vmatprep.subr.msk.bf16.mxu1 %vm989_vm7, %v2536_v13 }
0x195e   : > { %3710 = vmatpush3.bf16.msra.mxu1 %v2545_v36 }
0x195f   : > { %3711 = vmatprep.subr.bf16.mxu1 %v2534_v35  ;;  %v2602_v12 = vpop.permute.xlu1 %2601 }
0x1960   : > { %v2596_v16 = vpop.permute.xlu0 %2595  ;;  %v2613_v24 = vsel %vm875_vm4, %v2602_v12, 0 }
0x1961   : > { %v4006_v37 = vpop.eup %4005 }
0x1962   : > { %3712 = vmatpush3.bf16.msra.mxu1 %v2534_v35  ;;  %v2528_v41 = vmul.f32 %v4006_v37, %v4000_v27 }
0x1963   : > { %3790 = vmatprep.subr.msk.bf16.mxu1 %vm875_vm4, %v2602_v12  ;;  %v2600_v48 = vpop.permute.xlu1 %2599 }
0x1964   : > { %v2610_v49 = vsel %vm875_vm4, %v2600_v48, 0 }
0x1965   : > { %v4008_v38 = vpop.eup %4007 }
0x1966   : > { %v4010_v39 = vpop.eup %4009  ;;  %v2530_v40 = vmul.f32 %v4008_v38, %v4002_v29 }
0x1967   : > { %v2529_v43 = vmul.f32 %v4010_v39, %v4004_v30  ;;  %v2598_v50 = vpop.permute.xlu1 %2597 }
0x1968   : > { %v2532_v45 = vpack.c.bf16 %v2530_v40, %v2530_v40  ;;  %v3893_v40 = vld [vmem:[%s4925_s8 + $0x18] sm:$0xff]  }
0x1969   : > { %v2531_v46 = vpack.c.bf16 %v2529_v43, %v2528_v41  ;;  %v3894_v41 = vld [vmem:[%s4925_s8 + $0x10] sm:$0xff]  }
0x196b   : > { %3713 = vmatprep.mubr.msk.bf16.mxu1 %vm942_vm6, %v2531_v46 }
0x196c   : > { %3714 = vmatmul.mubr.msk.bf16.vlgmr.msra.gmra.mxu1 %vm942_vm6, %v2532_v45 }
0x196d   : > { %3718 = vmatpush3.bf16.xpose.msra.mxu1 %v2613_v24  ;;  %3721 = vmatprep.mubr.msk.bf16.mxu1 %vm875_vm4, %v2596_v16 }
0x196e   : > { %3791 = vmatprep.subr.msk.bf16.mxu1 %vm875_vm4, %v2600_v48 }
0x1975   : > { %3720 = vmatpush3.bf16.xpose.msra.mxu1 %v2610_v49 }
0x197c   : > { %3722 = vmatmul.mubr.msk.bf16.vlgmr.msra.gmra.mxu1 %vm875_vm4, %v2598_v50 }
0x1a2c   : > { %v3715_v51 = vpop.f32.mrf.mxu1 }
0x1a2e   : > { %v2581_v52 = vpop.f32.mrf.mxu1 }
0x1a30   : > { %v3716_v10 = vpop.f32.mrf.mxu1 }
0x1a32   : > { %v2584_v55 = vpop.f32.mrf.mxu1 }
0x1a33   : > { %v3868_v57 = vpack.i.bf16 %v2584_v55, %v2581_v52 }
0x1a3c   : > { %v3723_v58 = vpop.f32.mrf.mxu1 }
0x1a3d   : > { %v2665_v62 = vmul.f32 0.35355338, %v3723_v58 }
0x1a3e   : > { %v2649_v60 = vpop.f32.mrf.mxu1 }
0x1a3f   : > { %v2663_v63 = vmul.f32 0.35355338, %v2649_v60  ;;  %v2668_v4 = vsel %vm726_vm5, %v2665_v62, -1e+30 }
0x1a40   : > { %v3724_v42 = vpop.f32.mrf.mxu1  ;;  %v2675_v8 = vsel %vm942_vm6, %v2668_v4, -inf }
0x1a41   : > { %v2666_v44 = vsel %vm726_vm5, %v2663_v63, -1e+30 }
0x1a42   : > { %v2652_v2 = vpop.f32.mrf.mxu1  ;;  %v2669_v3 = vsel %vm942_vm6, %v2666_v44, -inf }
0x1a43   : > { %v2664_v5 = vmul.f32 0.35355338, %v2652_v2  ;;  %2670 = vmax.xlane.f32.xlu0 %v2669_v3 }
0x1a45   : > { %v2667_v47 = vsel %vm726_vm5, %v2664_v5, -1e+30 }
0x1a46   : > { %v2672_v14 = vsel %vm942_vm6, %v2667_v47, -inf }
0x1a47   : > { %2676 = vmax.xlane.f32.xlu0 %v2675_v8  ;;  %2673 = vmax.xlane.f32.xlu1 %v2672_v14 }
0x1acc   : > { %v2671_v18 = vpop.xlane.xlu0 %2670 }
0x1acd   : > { %v2678_v19 = vsub.f32 %v2666_v44, %v2671_v18 }
0x1acf   : > { %v2681_v20 = vmul.f32 1.442695, %v2678_v19 }
0x1ad0   : > { %v2677_v21 = vpop.xlane.xlu0 %2676  ;;  %v2674_v22 = vpop.xlane.xlu1 %2673 }
0x1ad1   : > { %4011 = vpow2.f32 %v2681_v20  ;;  %v2680_v23 = vsub.f32 %v2668_v4, %v2677_v21  ;;  %v2679_v27 = vsub.f32 %v2667_v47, %v2674_v22  ;;  %v3404_v21 = vld [vmem:[%s4926_s9 + $0x1] ss:$0 sm:$0xff] }
0x1ad3   : > { %v2685_v28 = vmul.f32 1.442695, %v2680_v23  ;;  %v2683_v29 = vmul.f32 1.442695, %v2679_v27 }
0x1ad5   : > { %4013 = vpow2.f32 %v2685_v28 }
0x1ad6   : > { %4015 = vpow2.f32 %v2683_v29 }
0x1ade   : > { %v4012_v26 = vpop.eup %4011 }
0x1adf   : > { %v2687_v30 = vsel %vm942_vm6, %v4012_v26, 0.0 }
0x1ae0   : > { %2688 = vadd.xlane.f32.xlu0 %v2687_v30 }
0x1ae2   : > { %v4014_v31 = vpop.eup %4013 }
0x1ae3   : > { %v4016_v32 = vpop.eup %4015  ;;  %v2693_v33 = vsel %vm942_vm6, %v4014_v31, 0.0 }
0x1ae4   : > { %2694 = vadd.xlane.f32.xlu1 %v2693_v33  ;;  %v2690_v34 = vsel %vm942_vm6, %v4016_v32, 0.0 }
0x1ae5   : > { %2691 = vadd.xlane.f32.xlu0 %v2690_v34 }
0x1af5   : > { %2704 = vrot.lane.b32.xlu1 %v4620_v56, %s5003_s25 }
0x1af9   : > { %3864 = vrot.lane.b32.xlu1 %v3863_v7, %s5004_s1 }
0x1afb   : > { %2706 = vrot.lane.b32.xlu0 %v4616_v6, %s5003_s25 }
0x1afd   : > { %2773 = vrot.lane.b32.xlu1 %v4706_v25, %s5004_s1  ;;  %s4876_s1 = scalar_lea.hbm %s4937_s20, %s3440_s26 }
0x1aff   : > { %3869 = vrot.lane.b32.xlu0 %v3868_v57, %s5005_s24 }
0x1b01   : > { %2785 = vrot.lane.b32.xlu1 %v3715_v51, %s5005_s24  ;;  %s620_s24 = sand.u32 1, %s4089_s22  }
0x1b02   : > { %s621_s27 = scalar_lea.vmem [#allocation2], %s620_s24  ;;  %s3245_s28 = scalar_lea.sflag [#allocation3], %s620_s24 }
0x1b69   : > { %v2689_v15 = vpop.xlane.xlu0 %2688 }
0x1b6a   : > { %4017 = vrcp.f32 %v2689_v15 }
0x1b6d   : > { %v2695_v13 = vpop.xlane.xlu1 %2694 }
0x1b6e   : > { %v2692_v35 = vpop.xlane.xlu0 %2691  ;;  %4019 = vrcp.f32 %v2695_v13 }
0x1b6f   : > { %4021 = vrcp.f32 %v2692_v35 }
0x1b71   : > { %v2705_v53 = vpop.permute.xlu1 %2704 }
0x1b72   : > { %v2707_v56 = vpop.permute.xlu0 %2706 }
0x1b73   : > { %v2716_v17 = vsel %vm989_vm7, %v2707_v56, 0  ;;  %3792 = vmatprep.subr.msk.bf16.mxu0 %vm989_vm7, %v2707_v56 }
0x1b74   : > { %3726 = vmatpush3.bf16.msra.mxu0 %v2716_v17 }
0x1b75   : > { %3727 = vmatprep.subr.bf16.mxu0 %v2705_v53  ;;  %v3865_v48 = vpop.permute.xlu1 %3864 }
0x1b76   : > { %v3870_v50 = vpop.permute.xlu0 %3869  ;;  %v3867_v51 = vunpack.i.h.bf16 %v3865_v48  ;;  %v3866_v52 = vunpack.i.l.bf16 %v3865_v48 }
0x1b77   : > { %v4018_v6 = vpop.eup %4017  ;;  %v3872_v55 = vunpack.i.h.bf16 %v3870_v50  ;;  %v3871_v57 = vunpack.i.l.bf16 %v3870_v50  ;;  %v3407_v50 = vld [vmem:[%s4927_s10 + $0x1] ss:$0 sm:$0xff] }
0x1b78   : > { %3728 = vmatpush3.bf16.msra.mxu0 %v2705_v53  ;;  %v2699_v12 = vmul.f32 %v4018_v6, %v4012_v26  ;;  %v2803_v58 = vsel %vm875_vm4, %v4670_v54, %v3867_v51  ;;  %v2802_v60 = vsel %vm875_vm4, %v4668_v9, %v3866_v52 }
0x1b79   : > { %3733 = vmatprep.subr.bf16.mxu0 %v3893_v40  ;;  %v2774_v49 = vpop.permute.xlu1 %2773  ;;  %v2805_v5 = vsel %vm1593_vm8, %v2802_v60, %v3871_v57  ;;  %v2806_v47 = vsel %vm1593_vm8, %v2803_v58, %v3872_v55  ;;  %v3408_v58 = vld [vmem:[%s4928_s11 + $0x1] ss:$0 sm:$0xff] }
0x1b7a   : > { %v2804_v63 = vsel %vm875_vm4, %v4666_v11, %v2774_v49 }
0x1b7b   : > { %v4020_v25 = vpop.eup %4019 }
0x1b7c   : > { %v4022_v7 = vpop.eup %4021  ;;  %v2701_v36 = vmul.f32 %v4020_v25, %v4014_v31 }
0x1b7d   : > { %v2700_v37 = vmul.f32 %v4022_v7, %v4016_v32  ;;  %v2786_v10 = vpop.permute.xlu1 %2785 }
0x1b7e   : > { %v2703_v38 = vpack.c.bf16 %v2701_v36, %v2701_v36  ;;  %v2807_v44 = vsel %vm1593_vm8, %v2804_v63, %v2786_v10 }
0x1b7f   : > { %v2702_v39 = vpack.c.bf16 %v2700_v37, %v2699_v12  ;;  %v3895_v12 = vld [vmem:[%s4929_s12 + $0x18] sm:$0xff]   ;;  %v3896_v37 = vld [vmem:[%s4929_s12 + $0x10] sm:$0xff]  }
0x1b80   : > { %3741 = vmatprep.subr.bf16.mxu1 %v3895_v12 }
0x1b81   : > { %3729 = vmatprep.mubr.msk.bf16.mxu0 %vm942_vm6, %v2702_v39  ;;  %3742 = vmatpush3.bf16.msra.mxu1 %v3895_v12 }
0x1b82   : > { %3730 = vmatmul.mubr.msk.bf16.vlgmr.msra.gmra.mxu0 %vm942_vm6, %v2703_v38  ;;  %3743 = vmatprep.subr.bf16.mxu1 %v3896_v37 }
0x1b83   : > { %3734 = vmatpush3.bf16.msra.mxu0 %v3893_v40 }
0x1b84   : > { %3735 = vmatprep.subr.bf16.mxu0 %v3894_v41 }
0x1b85   : > { %3744 = vmatpush3.bf16.msra.mxu1 %v3896_v37 }
0x1b86   : > { %3761 = vmatprep.subr.bf16.mxu1 %v4099_v1 }
0x1b87   : > { %3736 = vmatpush3.bf16.msra.mxu0 %v3894_v41 }
0x1c42   : > { %v3731_v43 = vpop.f32.mrf.mxu0 }
0x1c43   : > { %2797 = vrot.lane.b32.xlu1 %v3731_v43, %s5006_s30 }
0x1c44   : > { %v2752_v45 = vpop.f32.mrf.mxu0 }
0x1c46   : > { %v3732_v46 = vpop.f32.mrf.mxu0 }
0x1c48   : > { %v2755_v16 = vpop.f32.mrf.mxu0 }
0x1c49   : > { %v3873_v24 = vpack.i.bf16 %v2755_v16, %v2752_v45 }
0x1c4b   : > { %3874 = vrot.lane.b32.xlu0 %v3873_v24, %s5006_s30  ;;  %s3257_s30 = sshll.u32 %s621_s27, 4  ;;  %s4878_s30 = int_to_ptr.vmem [resolvable:$true] %s3257_s30 }
0x1c4c   : > { %s4037_s2 = scalar_lea.vmem %s4878_s30, 16  ;;  %p4044_p0 = scmp.lt.s32.totalorder %s4878_s30, %s4042_s0 }
0x1c4d   : > { %p4038_p11 = scmp.ne.s32.totalorder %s4878_s30, %s4037_s2  ;;  %p4045_p1 = scmp.lt.s32.totalorder %s4043_s23, %s4037_s2 }
0x1c4f   : > { %p4039_p12 = pnand %p4038_p11, %p4259_p5  ;;  %p4046_p2 = por %p4045_p1, %p4044_p0 }
0x1c51   : > { %p4040_p13 = pneg %p4039_p12 }
0x1c53   : > { %p4047_p3 = pnand %p4046_p2, %p4040_p13 }
0x1cb5   : > { %v2798_v62 = vpop.permute.xlu1 %2797 }
0x1cb6   : > { %v2810_v4 = vsel %vm942_vm6, %v2807_v44, %v2798_v62 }
0x1cb7   : > { %v2817_v14 = vpack.c.bf16 %v2810_v4, %v2810_v4  ;;  %v3897_v4 = vld [vmem:[%s4931_s14 + $0x38] sm:$0xff]  }
0x1cb8   : > { %3749 = vmatprep.subr.bf16.mxu0 %v3897_v4 }
0x1cbd   : > { %v3875_v42 = vpop.permute.xlu0 %3874 }
0x1cbe   : > { %v3877_v2 = vunpack.i.h.bf16 %v3875_v42  ;;  %v3876_v3 = vunpack.i.l.bf16 %v3875_v42 }
0x1cc0   : > { %v2808_v54 = vsel %vm942_vm6, %v2805_v5, %v3876_v3  ;;  %v2809_v8 = vsel %vm942_vm6, %v2806_v47, %v3877_v2  ;;  %v3898_v5 = vld [vmem:[%s4931_s14 + $0x30] sm:$0xff]   ;;  %v3899_v47 = vld [vmem:[%s4931_s14 + $0x28] sm:$0xff]  }
0x1cc1   : > { %v2816_v9 = vpack.c.bf16 %v2809_v8, %v2808_v54  ;;  %v3900_v54 = vld [vmem:[%s4931_s14 + $0x20] sm:$0xff]  }
0x1cc2   : > { %v3414_v8 = vld [vmem:[%s4930_s13 + $0x1] ss:$0 sm:$0xff] }
0x1cc3   : > { %3737 = vmatprep.mubr.msk.bf16.mxu0 %vm729_vm3, %v2816_v9 }
0x1cc4   : > { %3738 = vmatmul.mubr.msk.bf16.vlgmr.msra.gmra.mxu0 %vm729_vm3, %v2817_v14 }
0x1cc5   : > { %3750 = vmatpush3.bf16.msra.mxu0 %v3897_v4 }
0x1cc6   : > { %3751 = vmatprep.subr.bf16.mxu0 %v3898_v5 }
0x1cc9   : > { %3752 = vmatpush3.bf16.msra.mxu0 %v3898_v5 }
0x1cca   : > { %3753 = vmatprep.subr.bf16.mxu0 %v3899_v47 }
0x1ccd   : > { %3754 = vmatpush3.bf16.msra.mxu0 %v3899_v47 }
0x1cce   : > { %3755 = vmatprep.subr.bf16.mxu0 %v3900_v54 }
0x1cd1   : > { %3756 = vmatpush3.bf16.msra.mxu0 %v3900_v54 }
0x1d84   : > { %v3739_v11 = vpop.f32.mrf.mxu0 }
0x1d85   : > { %v2886_v19 = vadd.f32 %v3739_v11, %v4582_v61 }
0x1d86   : > { %v2870_v18 = vpop.f32.mrf.mxu0 }
0x1d87   : > { %v2884_v20 = vadd.f32 %v2870_v18, %v4580_v59  ;;  %v2897_v28 = vadd.f32 %v3404_v21, %v2886_v19 }
0x1d88   : > { %v3740_v22 = vpop.f32.mrf.mxu0 }
0x1d89   : > { %v4803_v23 = vadd.f32 %v3404_v21, %v2884_v20  ;;  %v2908_v61 = vsel %vm729_vm3, %v2897_v28, 0.0 }
0x1d8a   : > { %v2873_v27 = vpop.f32.mrf.mxu0 }
0x1d8b   : > { %v2885_v29 = vadd.f32 %v2873_v27, %v4587_v0  ;;  %v2902_v26 = vsel %vm729_vm3, %v4803_v23, 0.0 }
0x1d8c   : > { %2903 = vadd.xlane.f32.xlu0 %v2902_v26 }
0x1d8d   : > { %v2896_v30 = vadd.f32 %v3404_v21, %v2885_v29 }
0x1d8f   : > { %v2905_v59 = vsel %vm729_vm3, %v2896_v30, 0.0 }
0x1d90   : > { %2909 = vadd.xlane.f32.xlu0 %v2908_v61  ;;  %2906 = vadd.xlane.f32.xlu1 %v2905_v59 }
0x1e15   : > { %v2904_v31 = vpop.xlane.xlu0 %2903 }
0x1e16   : > { %v2911_v32 = vmul.f32 0.03125, %v2904_v31 }
0x1e18   : > { %v2914_v33 = vsub.f32 %v4803_v23, %v2911_v32 }
0x1e19   : > { %v2910_v34 = vpop.xlane.xlu0 %2909  ;;  %v2907_v15 = vpop.xlane.xlu1 %2906 }
0x1e1a   : > { %v2913_v13 = vmul.f32 0.03125, %v2910_v34  ;;  %v2912_v35 = vmul.f32 0.03125, %v2907_v15  ;;  %v2917_v0 = vmul.f32 %v2914_v33, %v2914_v33 }
0x1e1c   : > { %v2916_v56 = vsub.f32 %v2897_v28, %v2913_v13  ;;  %v2915_v17 = vsub.f32 %v2896_v30, %v2912_v35  ;;  %v2920_v53 = vsel %vm729_vm3, %v2917_v0, 0.0 }
0x1e1d   : > { %2921 = vadd.xlane.f32.xlu0 %v2920_v53 }
0x1e1e   : > { %v2919_v6 = vmul.f32 %v2916_v56, %v2916_v56  ;;  %v2918_v25 = vmul.f32 %v2915_v17, %v2915_v17 }
0x1e20   : > { %v2926_v7 = vsel %vm729_vm3, %v2919_v6, 0.0  ;;  %v2923_v36 = vsel %vm729_vm3, %v2918_v25, 0.0  ;;  %v3434_v6 = vld [vmem:[%s4932_s15 + $0x1] ss:$0 sm:$0xff] }
0x1e21   : > { %2927 = vadd.xlane.f32.xlu1 %v2926_v7  ;;  %2924 = vadd.xlane.f32.xlu0 %v2923_v36 }
0x1ea6   : > { %v2922_v38 = vpop.xlane.xlu0 %2921 }
0x1ea7   : > { %v2929_v39 = vmul.f32 0.03125, %v2922_v38 }
0x1ea9   : > { %v2932_v40 = vadd.f32 1e-12, %v2929_v39 }
0x1eaa   : > { %v2925_v41 = vpop.xlane.xlu0 %2924  ;;  %v2928_v43 = vpop.xlane.xlu1 %2927 }
0x1eab   : > { %4023 = vrsqrt.f32 %v2932_v40  ;;  %v2930_v45 = vmul.f32 0.03125, %v2925_v41  ;;  %v2931_v46 = vmul.f32 0.03125, %v2928_v43 }
0x1ead   : > { %v2933_v16 = vadd.f32 1e-12, %v2930_v45  ;;  %v2934_v24 = vadd.f32 1e-12, %v2931_v46  ;;  %v3901_v45 = vld [vmem:[%s4935_s18 + $0x8] sm:$0xff]  }
0x1eaf   : > { %4025 = vrsqrt.f32 %v2933_v16 }
0x1eb0   : > { %4027 = vrsqrt.f32 %v2934_v24 }
0x1eb8   : > { %v4024_v48 = vpop.eup %4023 }
0x1eb9   : > { %v2938_v49 = vmul.f32 %v4024_v48, %v2914_v33 }
0x1ebb   : > { %v2947_v55 = vmul.f32 %v3407_v50, %v2938_v49  ;;  %v3435_v49 = vld [vmem:[%s4933_s16] ss:$0 sm:$0xff] }
0x1ebc   : > { %v4026_v51 = vpop.eup %4025 }
0x1ebd   : > { %v4028_v52 = vpop.eup %4027  ;;  %v2939_v10 = vmul.f32 %v4026_v51, %v2915_v17  ;;  %v2956_v63 = vadd.f32 %v3408_v58, %v2947_v55  ;;  %v3436_v51 = vld [vmem:[%s4934_s17] ss:$0 sm:$0xff] }
0x1ebe   : > { %v2940_v57 = vmul.f32 %v4028_v52, %v2916_v56 }
0x1ebf   : > { %v2948_v60 = vmul.f32 %v3407_v50, %v2939_v10 }
0x1ec0   : > { %v2949_v62 = vmul.f32 %v3407_v50, %v2940_v57 }
0x1ec1   : > { %v2957_v42 = vadd.f32 %v3408_v58, %v2948_v60 }
0x1ec2   : > { %v2958_v44 = vadd.f32 %v3408_v58, %v2949_v62 }
0x1ec3   : > { %v2964_v2 = vpack.c.bf16 %v2957_v42, %v2956_v63 }
0x1ec4   : > { %v2965_v3 = vpack.c.bf16 %v2958_v44, %v2958_v44 }
0x1ec5   : > { %3745 = vmatprep.mubr.msk.bf16.mxu1 %vm729_vm3, %v2964_v2 }
0x1ec6   : > { %3746 = vmatmul.mubr.msk.bf16.vlgmr.msra.gmra.mxu1 %vm729_vm3, %v2965_v3 }
0x1ec7   : > { %3765 = vmatprep.mubr.msk.bf16.mxu1 %vm4100_vm0, %v4099_v1  ;;  %3762 = vmatpush3.bf16.msra.mxu1 %v3901_v45 }
0x1ec8   : > { %3763 = vmatprep.subr.bf16.mxu1 %v4099_v1  ;;  %v3186_v1 = vld [vmem:[%s4936_s19] sm:$0x1] }
0x1f86   : > { %v3747_v9 = vpop.f32.mrf.mxu1 }
0x1f87   : > { %v3035_v14 = vadd.f32 %v3747_v9, %v3414_v8 }
0x1f88   : > { %v3026_v11 = vpop.f32.mrf.mxu1 }
0x1f89   : > { %v3045_v18 = vmul.f32 0.70710677, %v3035_v14  ;;  %v3027_v19 = vadd.f32 %v3414_v8, %v3026_v11  ;;  %v3042_v31 = vmul.f32 0.5, %v3035_v14 }
0x1f8a   : > { %v3748_v20 = vpop.f32.mrf.mxu1 }
0x1f8b   : > { %v3043_v21 = vmul.f32 0.70710677, %v3027_v19  ;;  %4029 = verf.f32 %v3045_v18  ;;  %v3040_v32 = vmul.f32 0.5, %v3027_v19 }
0x1f8c   : > { %v3029_v22 = vpop.f32.mrf.mxu1 }
0x1f8d   : > { %4031 = verf.f32 %v3043_v21  ;;  %v3030_v27 = vadd.f32 %v3414_v8, %v3029_v22 }
0x1f8f   : > { %v3044_v28 = vmul.f32 0.70710677, %v3030_v27  ;;  %v3041_v33 = vmul.f32 0.5, %v3030_v27 }
0x1f91   : > { %4033 = verf.f32 %v3044_v28 }
0x1f98   : > { %v4030_v29 = vpop.eup %4029 }
0x1f99   : > { %v3051_v30 = vadd.f32 1.0, %v4030_v29 }
0x1f9a   : > { %v4032_v26 = vpop.eup %4031 }
0x1f9b   : > { %v3049_v61 = vadd.f32 1.0, %v4032_v26  ;;  %v3054_v15 = vmul.f32 %v3051_v30, %v3042_v31 }
0x1f9d   : > { %v3052_v13 = vmul.f32 %v3049_v61, %v3040_v32  ;;  %v3065_v56 = vpack.c.bf16 %v3054_v15, %v3054_v15 }
0x1f9e   : > { %v4034_v59 = vpop.eup %4033 }
0x1f9f   : > { %v3050_v34 = vadd.f32 1.0, %v4034_v59 }
0x1fa1   : > { %v3053_v35 = vmul.f32 %v3050_v34, %v3041_v33 }
0x1fa3   : > { %v3064_v0 = vpack.c.bf16 %v3053_v35, %v3052_v13 }
0x1fa5   : > { %3757 = vmatprep.mubr.msk.bf16.mxu0 %vm1872_vm9, %v3064_v0 }
0x1fa6   : > { %3758 = vmatmul.mubr.msk.bf16.vlgmr.msra.gmra.mxu0 %vm1872_vm9, %v3065_v56 }
0x2066   : > { %v3759_v17 = vpop.f32.mrf.mxu0 }
0x2068   : > { %v3130_v53 = vpop.f32.mrf.mxu0 }
0x2069   : > { %v3142_v25 = vadd.f32 %v3130_v53, %v4803_v23  ;;  %v3902_v23 = vld [vmem:[%s4935_s18] sm:$0xff]  }
0x206a   : > { %v3760_v7 = vpop.f32.mrf.mxu0  ;;  %3764 = vmatpush3.bf16.msra.mxu1 %v3902_v23 }
0x206b   : > { %v3151_v36 = vadd.f32 %v3434_v6, %v3142_v25 }
0x206c   : > { %v3133_v12 = vpop.f32.mrf.mxu0 }
0x206d   : > { %v3154_v37 = vsel %vm729_vm3, %v3151_v36, 0.0 }
0x206e   : > { %3155 = vadd.xlane.f32.xlu0 %v3154_v37 }
0x20f7   : > { %v3156_v38 = vpop.xlane.xlu0 %3155 }
0x20f8   : > { %v3157_v39 = vmul.f32 0.03125, %v3156_v38 }
0x20fa   : > { %v3158_v40 = vsub.f32 %v3151_v36, %v3157_v39 }
0x20fc   : > { %v3159_v41 = vmul.f32 %v3158_v40, %v3158_v40 }
0x20fe   : > { %v3160_v43 = vsel %vm729_vm3, %v3159_v41, 0.0 }
0x20ff   : > { %3161 = vadd.xlane.f32.xlu1 %v3160_v43 }
0x2188   : > { %v3162_v46 = vpop.xlane.xlu1 %3161 }
0x2189   : > { %v3163_v16 = vmul.f32 0.03125, %v3162_v46 }
0x218b   : > { %v3164_v24 = vadd.f32 1e-12, %v3163_v16 }
0x218d   : > { %4035 = vrsqrt.f32 %v3164_v24 }
0x219a   : > { %v4036_v48 = vpop.eup %4035 }
0x219b   : > { %v3166_v50 = vmul.f32 %v4036_v48, %v3158_v40 }
0x219d   : > { %v3173_v52 = vmul.f32 %v3435_v49, %v3166_v50 }
0x219f   : > { %v3180_v10 = vadd.f32 %v3436_v51, %v3173_v52 }
0x21a1   : > { %v3185_v55 = vpack.c.bf16 %v3180_v10, %v3180_v10 }
0x21a3   : > { %3766 = vmatmul.mubr.msk.bf16.vlgmr.msra.gmra.mxu1 %vm729_vm3, %v3185_v55 }
0x2263   : > { %v3236_v57 = vpop.f32.mrf.mxu1 }
0x2264   : > { %v3237_v58 = vadd.f32 %v3236_v57, %v3186_v1 }
0x2265   : > { %v3767_v60 = vpop.f32.mrf.mxu1 }
0x2266   : > { %3243 = vst.msk [vmem:[%s621_s27] sm:$0x1] %vm3242_vm10, %v3237_v58 }
0x2267   : > { %v3239_v62 = vpop.f32.mrf.mxu1 }
0x2268   : > { %4050 = shalt.err (!%p4047_p3)
}
0x2269   : > { %s4051_s26 = scalar_lea.hbm %s4876_s1, 16  ;;  %s4055_s25 = scalar_lea.hbm %s4937_s20, 32 }
0x226a   : > { %p4052_p4 = scmp.ne.s32.totalorder %s4876_s1, %s4051_s26  ;;  %p4056_p9 = scmp.lt.s32.totalorder %s4876_s1, %s4937_s20 }
0x226b   : > { %p4057_p10 = scmp.lt.s32.totalorder %s4055_s25, %s4051_s26 }
0x226c   : > { %p4053_p7 = pnand %p4052_p4, %p4259_p5 }
0x226d   : > { %p4058_p11 = por %p4057_p10, %p4056_p9 }
0x226e   : > { %p4054_p8 = pneg %p4053_p7 }
0x2270   : > { %p4059_p12 = pnand %p4058_p11, %p4054_p8 }
0x2272   : > { %4062 = shalt.err (!%p4059_p12)
}
0x2273   : > { %3793 = dma.vmem_to_hbm [thread:$0]  (%p4259_p5), %s4878_s30, 16, %s4876_s1, %s3245_s28   ;;  %v3768_v63 = vpop.f32.mrf.mxu1 }
0x2274 PF: > { %s5007_s0 = sld [smem:[#allocation7_spill]] }
0x2275   : > { %s5008_s2 = sld [smem:[#allocation5_spill]] }
0x227a   : > { %p3799_p13 = scmp.ge.s32.totalorder %s5007_s0, 2 }
0x227b   : > { %s3269_s24 = sand.u32 1, %s5008_s2  }
0x227c   : > { %p3796_p0 = pnand %p3799_p13, %p4263_p6  ;;  %s3270_s3 = scalar_lea.sflag [#allocation3], %s3269_s24 }
0x227e   : > { %p3797_p1 = pneg %p3796_p0 }
0x2280   : > { %4080 = dma.done.wait (%p3797_p1), %s3270_s3, 16  }
0x2281   : > { %4082 = vsyncadd (%p3797_p1), %s3270_s3, 4294967280  ;;  %s5010_s24 = sld [smem:[#allocation8_spill]]  ;;  %s5013_s1 = smov %s4089_s22 }
0x2282   : > { %s5011_s26 = sld [smem:[#allocation6_spill]] }
0x2283   : > { %s5012_s23 = sld [smem:[#allocation9_spill]] }
0x2287   : > { %p30_p2 = scmp.ge.s32.totalorder %s5010_s24, 4  }
0x2288   : > { %s5014_s22 = smov %s5011_s26 }
0x2289   :  { %32 = sbr.rel (!%p30_p2) target bundleno = 9 (0x9), region = 147 }
0x228e   :  { %3274 = vsyncpa [#allocation3], 1 }
0x228f   :  { %3276 = vsyncpa [#allocation3 + $0x1], 1 }

</bundles_post_ra>
